<compile_context>
chip_gen: v5e
topology: v5e:2x2
jax: 0.10.0
libtpu: 0.0.40
codegen_flags: <defaults>
</compile_context>

<pallas_src>
import jax
import jax.numpy as jnp
from jax.experimental import pallas as pl
from jax.experimental.pallas import tpu as pltpu


# ---------------------------------------------------------------------------
# Kernel A: fused DWSConvLSTM2d cell
#   depthwise 3x3 "same" conv on h_prev (groups=C), then
#   gates = x @ Wx + h_conv @ Wh + b  (one lane-dense 4C-wide bf16 matmul pair)
#   gate order [forget, input, output, cell]; cell_update_dropout p=0.
#   Output: [h_t | c_t] concatenated on the lane axis.
# ---------------------------------------------------------------------------
def _convlstm_kernel(x_ref, hpad_ref, c_ref, dww_ref, dwb_ref,
                     wx_ref, wh_ref, bg_ref, hc_ref):
    # x_ref:    (1, H*W, C) f32      hpad_ref: (1, H+2, W+2, C) f32
    # c_ref:    (1, H*W, C) f32      dww_ref:  (9, C) f32   dwb_ref: (1, C) f32
    # wx_ref/wh_ref: (C, 4C) bf16    bg_ref:   (1, 4C) f32
    # hc_ref:   (1, H*W, 2C) f32 out
    Hp, Wp, C = hpad_ref.shape[1], hpad_ref.shape[2], hpad_ref.shape[3]
    H, W = Hp - 2, Wp - 2
    HW = H * W

    # --- depthwise 3x3 conv on the (zero-padded) hidden state ---
    w = dww_ref[...]                                        # (9, C)
    acc = hpad_ref[0, 0:H, 0:W, :] * w[0:1, :]              # start from tap (0,0)
    for dh in range(3):
        for dw in range(3):
            if dh == 0 and dw == 0:
                continue
            k = dh * 3 + dw
            acc = acc + hpad_ref[0, dh:dh + H, dw:dw + W, :] * w[k:k + 1, :]
    h_conv = (acc + dwb_ref[...]).reshape(HW, C)            # bias added once

    # --- fused gates: bf16 MXU matmuls, f32 accumulation ---
    x = x_ref[0]                                            # (HW, C) f32
    gates = (jnp.dot(x.astype(jnp.bfloat16), wx_ref[...],
                     preferred_element_type=jnp.float32)
             + jnp.dot(h_conv.astype(jnp.bfloat16), wh_ref[...],
                       preferred_element_type=jnp.float32)
             + bg_ref[...])                                 # (HW, 4C) f32

    f = jax.nn.sigmoid(gates[:, 0:C])
    i = jax.nn.sigmoid(gates[:, C:2 * C])
    o = jax.nn.sigmoid(gates[:, 2 * C:3 * C])
    g = jnp.tanh(gates[:, 3 * C:4 * C])                     # cell_update_dropout p=0

    c_t = f * c_ref[0] + i * g
    h_t = o * jnp.tanh(c_t)
    hc_ref[0] = jnp.concatenate([h_t, c_t], axis=-1)        # single wide store


def conv_lstm_fused(x_flat, hpad, c_flat, dww, dwb, wx, wh, bg):
    B, HW, C = x_flat.shape
    Hp, Wp = hpad.shape[1], hpad.shape[2]
    return pl.pallas_call(
        _convlstm_kernel,
        out_shape=jax.ShapeDtypeStruct((B, HW, 2 * C), jnp.float32),
        grid=(B,),
        in_specs=[
            pl.BlockSpec((1, HW, C), lambda b: (b, 0, 0)),
            pl.BlockSpec((1, Hp, Wp, C), lambda b: (b, 0, 0, 0)),
            pl.BlockSpec((1, HW, C), lambda b: (b, 0, 0)),
            pl.BlockSpec((9, C), lambda b: (0, 0)),
            pl.BlockSpec((1, C), lambda b: (0, 0)),
            pl.BlockSpec((C, 4 * C), lambda b: (0, 0)),
            pl.BlockSpec((C, 4 * C), lambda b: (0, 0)),
            pl.BlockSpec((1, 4 * C), lambda b: (0, 0)),
        ],
        out_specs=pl.BlockSpec((1, HW, 2 * C), lambda b: (b, 0, 0)),
        compiler_params=pltpu.CompilerParams(dimension_semantics=("parallel",)),
    )(x_flat, hpad, c_flat, dww, dwb, wx, wh, bg)


# ---------------------------------------------------------------------------
# Kernel B: downsample v3 = Conv2d(C, Cout, k=3, s=2, p=1) + LayerNorm(Cout).
# The wrapper only phase-decomposes padded h_t (a permutation, ~1x traffic);
# the 9 im2col taps are built from static VMEM slices inside the kernel and
# accumulated with per-tap (N, C) @ (C, Cout) bf16 matmuls; LN fused in f32.
# ---------------------------------------------------------------------------
def _down_ln_kernel(ph_ref, w_ref, b_ref, g_ref, beta_ref, out_ref):
    # ph_ref: (4, Ho+1, Wo+1, C) f32 — phase p = (row%2)*2 + (col%2) of padded h_t
    # w_ref:  (9, C, Cout) bf16      b/g/beta: (1, Cout) f32
    # out_ref:(1, Ho*Wo, Cout) f32
    Ho, Wo, C = ph_ref.shape[1] - 1, ph_ref.shape[2] - 1, ph_ref.shape[3]
    acc = None
    for dh in range(3):
        for dw in range(3):
            p = (dh % 2) * 2 + (dw % 2)
            r0, c0 = dh // 2, dw // 2
            tap = ph_ref[p, r0:r0 + Ho, c0:c0 + Wo, :]       # (Ho, Wo, C)
            tap = tap.reshape(Ho * Wo, C).astype(jnp.bfloat16)
            y = jnp.dot(tap, w_ref[dh * 3 + dw],
                        preferred_element_type=jnp.float32)
            acc = y if acc is None else acc + y
    y = acc + b_ref[...]
    mean = jnp.mean(y, axis=-1, keepdims=True)
    var = jnp.mean(jnp.square(y - mean), axis=-1, keepdims=True)
    y = (y - mean) * jax.lax.rsqrt(var + 1e-5)
    out_ref[0] = y * g_ref[...] + beta_ref[...]


def downsample_conv_ln(phases, ds_w, ds_b, ln_g, ln_b):
    B4, Hp1, Wp1, C = phases.shape
    B = B4 // 4
    Ho, Wo = Hp1 - 1, Wp1 - 1
    Cout = ds_w.shape[-1]
    return pl.pallas_call(
        _down_ln_kernel,
        out_shape=jax.ShapeDtypeStruct((B, Ho * Wo, Cout), jnp.float32),
        grid=(B,),
        in_specs=[
            pl.BlockSpec((4, Hp1, Wp1, C), lambda b: (b, 0, 0, 0)),
            pl.BlockSpec((9, C, Cout), lambda b: (0, 0, 0)),
            pl.BlockSpec((1, Cout), lambda b: (0, 0)),
            pl.BlockSpec((1, Cout), lambda b: (0, 0)),
            pl.BlockSpec((1, Cout), lambda b: (0, 0)),
        ],
        out_specs=pl.BlockSpec((1, Ho * Wo, Cout), lambda b: (b, 0, 0)),
        compiler_params=pltpu.CompilerParams(dimension_semantics=("parallel",)),
    )(phases, ds_w, ds_b, ln_g, ln_b)


# ---------------------------------------------------------------------------
# Parameters (weights pre-packed into the kernel layouts; matmul weights bf16)
# ---------------------------------------------------------------------------
def init_params(key, C, Cout):
    ks = jax.random.split(key, 6)
    dw_w = jax.random.normal(ks[0], (C, 1, 3, 3), jnp.float32) / 3.0      # Conv2d groups=C
    dw_b = jax.random.normal(ks[1], (C,), jnp.float32) * 0.01
    w1x1 = jax.random.normal(ks[2], (4 * C, 2 * C), jnp.float32) / jnp.sqrt(2.0 * C)
    b1x1 = jax.random.normal(ks[3], (4 * C,), jnp.float32) * 0.01
    ds_w = jax.random.normal(ks[4], (Cout, C, 3, 3), jnp.float32) / jnp.sqrt(9.0 * C)
    ds_b = jax.random.normal(ks[5], (Cout,), jnp.float32) * 0.01
    return dict(
        # depthwise weight -> (9, C), index dh*3+dw
        dw_w9c=jnp.transpose(dw_w[:, 0], (1, 2, 0)).reshape(9, C),
        dw_b=dw_b.reshape(1, C),
        # fused gate matmul: gates = x @ Wx + h_conv @ Wh + b, gate blocks [f,i,o,g]
        wx=jnp.transpose(w1x1[:, :C]).astype(jnp.bfloat16),               # (C, 4C)
        wh=jnp.transpose(w1x1[:, C:]).astype(jnp.bfloat16),               # (C, 4C)
        bg=b1x1.reshape(1, 4 * C),
        # downsample conv as 9 per-tap (C, Cout) matmuls, index dh*3+dw
        ds_w=jnp.transpose(ds_w, (2, 3, 1, 0)).reshape(9, C, Cout).astype(jnp.bfloat16),
        ds_b=ds_b.reshape(1, Cout),
        ln_g=jnp.ones((1, Cout), jnp.float32),                            # LayerNorm affine init
        ln_b=jnp.zeros((1, Cout), jnp.float32),
    )


# ---------------------------------------------------------------------------
# Stage wrapper (NCHW in / NCHW out, matching the PyTorch module contract).
# ---------------------------------------------------------------------------
def rnn_detector_stage(x_nchw, index_token, indices, h_and_c_previous, params):
    """Pallas equivalent of RNNDetectorStage.forward."""
    # TODO(synk): smambalayer (SSM / SCMM VSS blocks with selective scan) source is
    # not included with the reference module; it is treated as identity pass-through.
    _ = (index_token, indices)

    B, C, H, W = x_nchw.shape
    assert H % 2 == 0 and W % 2 == 0, "downsample v3 assumes even spatial dims"
    assert W % 8 == 0 and (W // 2) % 8 == 0, "kernel reshapes assume sublane-aligned W"

    # NCHW <-> NHWC transposes kept only at the module boundary (required by contract).
    x_nhwc = jnp.transpose(x_nchw, (0, 2, 3, 1)).astype(jnp.float32)
    if h_and_c_previous is None or h_and_c_previous[0] is None:
        h_prev = jnp.zeros_like(x_nhwc)
        c_prev = jnp.zeros_like(x_nhwc)
    else:
        h_prev = jnp.transpose(h_and_c_previous[0], (0, 2, 3, 1)).astype(jnp.float32)
        c_prev = jnp.transpose(h_and_c_previous[1], (0, 2, 3, 1)).astype(jnp.float32)

    # --- fused DWSConvLSTM2d (dws_conv=True, only_hidden=True, k=3, dropout=0) ---
    hpad = jnp.pad(h_prev, ((0, 0), (1, 1), (1, 1), (0, 0)))
    hc = conv_lstm_fused(x_nhwc.reshape(B, H * W, C), hpad,
                         c_prev.reshape(B, H * W, C),
                         params["dw_w9c"], params["dw_b"],
                         params["wx"], params["wh"], params["bg"])
    h_t = hc[:, :, :C].reshape(B, H, W, C)
    c_t = hc[:, :, C:].reshape(B, H, W, C)

    # --- downsample v3: Conv2d(C, Cout, 3, 2, 1) + LayerNorm(Cout) ---
    Ho, Wo = H // 2, W // 2
    Cout = params["ds_b"].shape[-1]
    htp = jnp.pad(h_t, ((0, 0), (1, 1), (1, 1), (0, 0)))      # (B, 2(Ho+1), 2(Wo+1), C)
    phases = (htp.reshape(B, Ho + 1, 2, Wo + 1, 2, C)
                 .transpose(0, 2, 4, 1, 3, 5)                 # (B, 2, 2, Ho+1, Wo+1, C)
                 .reshape(B * 4, Ho + 1, Wo + 1, C))
    y = downsample_conv_ln(phases, params["ds_w"], params["ds_b"],
                           params["ln_g"], params["ln_b"])    # (B, Ho*Wo, Cout)
    x_down = jnp.transpose(y.reshape(B, Ho, Wo, Cout), (0, 3, 1, 2))

    h_nchw = jnp.transpose(h_t, (0, 3, 1, 2))
    c_nchw = jnp.transpose(c_t, (0, 3, 1, 2))
    x_fpn = h_nchw
    return x_down, (h_nchw, c_nchw), x_fpn


if __name__ == "__main__":
    key = jax.random.PRNGKey(0)
    B, C, H, W = 2, 32, 16, 16          # dims[i_layer]=32 -> dims[i_layer+1]=64
    Cout = 2 * C

    k_x, k_tok, k_h, k_c, k_p = jax.random.split(key, 5)
    x = jax.random.normal(k_x, (B, C, H, W), jnp.float32)
    index_token = jax.random.normal(k_tok, (B, H * W), jnp.float32)
    indices = jnp.tile(jnp.arange(H * W, dtype=jnp.int32)[None, :], (B, 1))
    h_prev = jax.random.normal(k_h, (B, C, H, W), jnp.float32)
    c_prev = jax.random.normal(k_c, (B, C, H, W), jnp.float32)
    params = init_params(k_p, C, Cout)

    stage = jax.jit(lambda x_, t_, i_, h_, c_: rnn_detector_stage(x_, t_, i_, (h_, c_), params))
    x_down, (h_t, c_t), x_fpn = stage(x, index_token, indices, h_prev, c_prev)
    jax.block_until_ready((x_down, h_t, c_t, x_fpn))

    assert x_down.shape == (B, Cout, H // 2, W // 2)
    assert h_t.shape == (B, C, H, W) and c_t.shape == (B, C, H, W)
    assert x_fpn.shape == (B, C, H, W)
    print("KERNEL_OK")
</pallas_src>

<mosaic_0001>
module attributes {stable_mosaic.version = 11 : i64} {
  func.func @_convlstm_kernel(%arg0: i32, %arg1: memref<1x256x32xf32, #tpu.memory_space<vmem>>, %arg2: memref<1x18x18x32xf32, #tpu.memory_space<vmem>>, %arg3: memref<1x256x32xf32, #tpu.memory_space<vmem>>, %arg4: memref<9x32xf32, #tpu.memory_space<vmem>>, %arg5: memref<1x32xf32, #tpu.memory_space<vmem>>, %arg6: memref<32x128xbf16, #tpu.memory_space<vmem>>, %arg7: memref<32x128xbf16, #tpu.memory_space<vmem>>, %arg8: memref<1x128xf32, #tpu.memory_space<vmem>>, %arg9: memref<1x256x64xf32, #tpu.memory_space<vmem>>) attributes {dimension_semantics = [#tpu.dimension_semantics<parallel>], iteration_bounds = array<i64: 2>, scalar_prefetch = 0 : i64, scratch_operands = 0 : i64, tpu.core_type = #tpu.core_type<tc>, window_params = [{transform_indices = @transform_0, window_bounds = array<i64: 1, 256, 32>}, {transform_indices = @transform_1, window_bounds = array<i64: 1, 18, 18, 32>}, {transform_indices = @transform_2, window_bounds = array<i64: 1, 256, 32>}, {pipeline_mode = #tpu.pipeline_mode<synchronous>, transform_indices = @transform_3, window_bounds = array<i64: 9, 32>}, {pipeline_mode = #tpu.pipeline_mode<synchronous>, transform_indices = @transform_4, window_bounds = array<i64: 1, 32>}, {pipeline_mode = #tpu.pipeline_mode<synchronous>, transform_indices = @transform_5, window_bounds = array<i64: 32, 128>}, {pipeline_mode = #tpu.pipeline_mode<synchronous>, transform_indices = @transform_6, window_bounds = array<i64: 32, 128>}, {pipeline_mode = #tpu.pipeline_mode<synchronous>, transform_indices = @transform_7, window_bounds = array<i64: 1, 128>}, {transform_indices = @transform_8, window_bounds = array<i64: 1, 256, 64>}]} {
    %c0 = arith.constant 0 : index
    %c0_0 = arith.constant 0 : index
    %0 = vector.load %arg4[%c0, %c0_0] : memref<9x32xf32, #tpu.memory_space<vmem>>, vector<9x32xf32>
    %c0_1 = arith.constant 0 : index
    %c0_2 = arith.constant 0 : index
    %c0_3 = arith.constant 0 : index
    %c0_4 = arith.constant 0 : index
    %1 = vector.load %arg2[%c0_1, %c0_2, %c0_3, %c0_4] : memref<1x18x18x32xf32, #tpu.memory_space<vmem>>, vector<1x16x16x32xf32>
    %2 = vector.shape_cast %1 : vector<1x16x16x32xf32> to vector<16x16x32xf32>
    %3 = vector.extract_strided_slice %0 {offsets = [0, 0], sizes = [1, 32], strides = [1, 1]} : vector<9x32xf32> to vector<1x32xf32>
    %4 = vector.shape_cast %3 : vector<1x32xf32> to vector<1x1x32xf32>
    %5 = vector.broadcast %4 : vector<1x1x32xf32> to vector<16x16x32xf32>
    %6 = arith.mulf %2, %5 : vector<16x16x32xf32>
    %c0_5 = arith.constant 0 : index
    %c0_6 = arith.constant 0 : index
    %c1 = arith.constant 1 : index
    %c0_7 = arith.constant 0 : index
    %7 = vector.load %arg2[%c0_5, %c0_6, %c1, %c0_7] : memref<1x18x18x32xf32, #tpu.memory_space<vmem>>, vector<1x16x16x32xf32>
    %8 = vector.shape_cast %7 : vector<1x16x16x32xf32> to vector<16x16x32xf32>
    %9 = vector.extract_strided_slice %0 {offsets = [1, 0], sizes = [1, 32], strides = [1, 1]} : vector<9x32xf32> to vector<1x32xf32>
    %10 = vector.shape_cast %9 : vector<1x32xf32> to vector<1x1x32xf32>
    %11 = vector.broadcast %10 : vector<1x1x32xf32> to vector<16x16x32xf32>
    %12 = arith.mulf %8, %11 : vector<16x16x32xf32>
    %13 = arith.addf %6, %12 : vector<16x16x32xf32>
    %c0_8 = arith.constant 0 : index
    %c0_9 = arith.constant 0 : index
    %c2 = arith.constant 2 : index
    %c0_10 = arith.constant 0 : index
    %14 = vector.load %arg2[%c0_8, %c0_9, %c2, %c0_10] : memref<1x18x18x32xf32, #tpu.memory_space<vmem>>, vector<1x16x16x32xf32>
    %15 = vector.shape_cast %14 : vector<1x16x16x32xf32> to vector<16x16x32xf32>
    %16 = vector.extract_strided_slice %0 {offsets = [2, 0], sizes = [1, 32], strides = [1, 1]} : vector<9x32xf32> to vector<1x32xf32>
    %17 = vector.shape_cast %16 : vector<1x32xf32> to vector<1x1x32xf32>
    %18 = vector.broadcast %17 : vector<1x1x32xf32> to vector<16x16x32xf32>
    %19 = arith.mulf %15, %18 : vector<16x16x32xf32>
    %20 = arith.addf %13, %19 : vector<16x16x32xf32>
    %c0_11 = arith.constant 0 : index
    %c1_12 = arith.constant 1 : index
    %c0_13 = arith.constant 0 : index
    %c0_14 = arith.constant 0 : index
    %21 = vector.load %arg2[%c0_11, %c1_12, %c0_13, %c0_14] : memref<1x18x18x32xf32, #tpu.memory_space<vmem>>, vector<1x16x16x32xf32>
    %22 = vector.shape_cast %21 : vector<1x16x16x32xf32> to vector<16x16x32xf32>
    %23 = vector.extract_strided_slice %0 {offsets = [3, 0], sizes = [1, 32], strides = [1, 1]} : vector<9x32xf32> to vector<1x32xf32>
    %24 = vector.shape_cast %23 : vector<1x32xf32> to vector<1x1x32xf32>
    %25 = vector.broadcast %24 : vector<1x1x32xf32> to vector<16x16x32xf32>
    %26 = arith.mulf %22, %25 : vector<16x16x32xf32>
    %27 = arith.addf %20, %26 : vector<16x16x32xf32>
    %c0_15 = arith.constant 0 : index
    %c1_16 = arith.constant 1 : index
    %c1_17 = arith.constant 1 : index
    %c0_18 = arith.constant 0 : index
    %28 = vector.load %arg2[%c0_15, %c1_16, %c1_17, %c0_18] : memref<1x18x18x32xf32, #tpu.memory_space<vmem>>, vector<1x16x16x32xf32>
    %29 = vector.shape_cast %28 : vector<1x16x16x32xf32> to vector<16x16x32xf32>
    %30 = vector.extract_strided_slice %0 {offsets = [4, 0], sizes = [1, 32], strides = [1, 1]} : vector<9x32xf32> to vector<1x32xf32>
    %31 = vector.shape_cast %30 : vector<1x32xf32> to vector<1x1x32xf32>
    %32 = vector.broadcast %31 : vector<1x1x32xf32> to vector<16x16x32xf32>
    %33 = arith.mulf %29, %32 : vector<16x16x32xf32>
    %34 = arith.addf %27, %33 : vector<16x16x32xf32>
    %c0_19 = arith.constant 0 : index
    %c1_20 = arith.constant 1 : index
    %c2_21 = arith.constant 2 : index
    %c0_22 = arith.constant 0 : index
    %35 = vector.load %arg2[%c0_19, %c1_20, %c2_21, %c0_22] : memref<1x18x18x32xf32, #tpu.memory_space<vmem>>, vector<1x16x16x32xf32>
    %36 = vector.shape_cast %35 : vector<1x16x16x32xf32> to vector<16x16x32xf32>
    %37 = vector.extract_strided_slice %0 {offsets = [5, 0], sizes = [1, 32], strides = [1, 1]} : vector<9x32xf32> to vector<1x32xf32>
    %38 = vector.shape_cast %37 : vector<1x32xf32> to vector<1x1x32xf32>
    %39 = vector.broadcast %38 : vector<1x1x32xf32> to vector<16x16x32xf32>
    %40 = arith.mulf %36, %39 : vector<16x16x32xf32>
    %41 = arith.addf %34, %40 : vector<16x16x32xf32>
    %c0_23 = arith.constant 0 : index
    %c2_24 = arith.constant 2 : index
    %c0_25 = arith.constant 0 : index
    %c0_26 = arith.constant 0 : index
    %42 = vector.load %arg2[%c0_23, %c2_24, %c0_25, %c0_26] : memref<1x18x18x32xf32, #tpu.memory_space<vmem>>, vector<1x16x16x32xf32>
    %43 = vector.shape_cast %42 : vector<1x16x16x32xf32> to vector<16x16x32xf32>
    %44 = vector.extract_strided_slice %0 {offsets = [6, 0], sizes = [1, 32], strides = [1, 1]} : vector<9x32xf32> to vector<1x32xf32>
    %45 = vector.shape_cast %44 : vector<1x32xf32> to vector<1x1x32xf32>
    %46 = vector.broadcast %45 : vector<1x1x32xf32> to vector<16x16x32xf32>
    %47 = arith.mulf %43, %46 : vector<16x16x32xf32>
    %48 = arith.addf %41, %47 : vector<16x16x32xf32>
    %c0_27 = arith.constant 0 : index
    %c2_28 = arith.constant 2 : index
    %c1_29 = arith.constant 1 : index
    %c0_30 = arith.constant 0 : index
    %49 = vector.load %arg2[%c0_27, %c2_28, %c1_29, %c0_30] : memref<1x18x18x32xf32, #tpu.memory_space<vmem>>, vector<1x16x16x32xf32>
    %50 = vector.shape_cast %49 : vector<1x16x16x32xf32> to vector<16x16x32xf32>
    %51 = vector.extract_strided_slice %0 {offsets = [7, 0], sizes = [1, 32], strides = [1, 1]} : vector<9x32xf32> to vector<1x32xf32>
    %52 = vector.shape_cast %51 : vector<1x32xf32> to vector<1x1x32xf32>
    %53 = vector.broadcast %52 : vector<1x1x32xf32> to vector<16x16x32xf32>
    %54 = arith.mulf %50, %53 : vector<16x16x32xf32>
    %55 = arith.addf %48, %54 : vector<16x16x32xf32>
    %c0_31 = arith.constant 0 : index
    %c2_32 = arith.constant 2 : index
    %c2_33 = arith.constant 2 : index
    %c0_34 = arith.constant 0 : index
    %56 = vector.load %arg2[%c0_31, %c2_32, %c2_33, %c0_34] : memref<1x18x18x32xf32, #tpu.memory_space<vmem>>, vector<1x16x16x32xf32>
    %57 = vector.shape_cast %56 : vector<1x16x16x32xf32> to vector<16x16x32xf32>
    %58 = vector.extract_strided_slice %0 {offsets = [8, 0], sizes = [1, 32], strides = [1, 1]} : vector<9x32xf32> to vector<1x32xf32>
    %59 = vector.shape_cast %58 : vector<1x32xf32> to vector<1x1x32xf32>
    %60 = vector.broadcast %59 : vector<1x1x32xf32> to vector<16x16x32xf32>
    %61 = arith.mulf %57, %60 : vector<16x16x32xf32>
    %62 = arith.addf %55, %61 : vector<16x16x32xf32>
    %c0_35 = arith.constant 0 : index
    %c0_36 = arith.constant 0 : index
    %63 = vector.load %arg5[%c0_35, %c0_36] : memref<1x32xf32, #tpu.memory_space<vmem>>, vector<1x32xf32>
    %64 = vector.shape_cast %63 : vector<1x32xf32> to vector<1x1x32xf32>
    %65 = vector.broadcast %64 : vector<1x1x32xf32> to vector<16x16x32xf32>
    %66 = arith.addf %62, %65 : vector<16x16x32xf32>
    %67 = vector.shape_cast %66 : vector<16x16x32xf32> to vector<256x32xf32>
    %c0_37 = arith.constant 0 : index
    %c0_38 = arith.constant 0 : index
    %c0_39 = arith.constant 0 : index
    %68 = vector.load %arg1[%c0_37, %c0_38, %c0_39] : memref<1x256x32xf32, #tpu.memory_space<vmem>>, vector<1x256x32xf32>
    %69 = vector.shape_cast %68 : vector<1x256x32xf32> to vector<256x32xf32>
    %70 = arith.truncf %69 : vector<256x32xf32> to vector<256x32xbf16>
    %c0_40 = arith.constant 0 : index
    %c0_41 = arith.constant 0 : index
    %71 = vector.load %arg6[%c0_40, %c0_41] : memref<32x128xbf16, #tpu.memory_space<vmem>>, vector<32x128xbf16>
    %cst = arith.constant dense<0.000000e+00> : vector<256x128xf32>
    %72 = tpu.matmul %70, %71, %cst {dimension_numbers = #tpu.dot_dimension_numbers<[1], [0], [0], [1], [0, 0, 1, 1], [], []>} : vector<256x32xbf16>, vector<32x128xbf16>, vector<256x128xf32> -> vector<256x128xf32>
    %73 = arith.truncf %67 : vector<256x32xf32> to vector<256x32xbf16>
    %c0_42 = arith.constant 0 : index
    %c0_43 = arith.constant 0 : index
    %74 = vector.load %arg7[%c0_42, %c0_43] : memref<32x128xbf16, #tpu.memory_space<vmem>>, vector<32x128xbf16>
    %cst_44 = arith.constant dense<0.000000e+00> : vector<256x128xf32>
    %75 = tpu.matmul %73, %74, %cst_44 {dimension_numbers = #tpu.dot_dimension_numbers<[1], [0], [0], [1], [0, 0, 1, 1], [], []>} : vector<256x32xbf16>, vector<32x128xbf16>, vector<256x128xf32> -> vector<256x128xf32>
    %76 = arith.addf %72, %75 : vector<256x128xf32>
    %c0_45 = arith.constant 0 : index
    %c0_46 = arith.constant 0 : index
    %77 = vector.load %arg8[%c0_45, %c0_46] : memref<1x128xf32, #tpu.memory_space<vmem>>, vector<1x128xf32>
    %78 = vector.broadcast %77 : vector<1x128xf32> to vector<256x128xf32>
    %79 = arith.addf %76, %78 : vector<256x128xf32>
    %80 = vector.extract_strided_slice %79 {offsets = [0, 0], sizes = [256, 32], strides = [1, 1]} : vector<256x128xf32> to vector<256x32xf32>
    %81 = arith.negf %80 : vector<256x32xf32>
    %82 = math.exp %81 : vector<256x32xf32>
    %cst_47 = arith.constant 1.000000e+00 : f32
    %83 = vector.broadcast %cst_47 : f32 to vector<256x32xf32>
    %84 = arith.addf %83, %82 : vector<256x32xf32>
    %85 = arith.divf %83, %84 : vector<256x32xf32>
    %86 = vector.extract_strided_slice %79 {offsets = [0, 32], sizes = [256, 32], strides = [1, 1]} : vector<256x128xf32> to vector<256x32xf32>
    %87 = arith.negf %86 : vector<256x32xf32>
    %88 = math.exp %87 : vector<256x32xf32>
    %cst_48 = arith.constant 1.000000e+00 : f32
    %89 = vector.broadcast %cst_48 : f32 to vector<256x32xf32>
    %90 = arith.addf %89, %88 : vector<256x32xf32>
    %91 = arith.divf %89, %90 : vector<256x32xf32>
    %92 = vector.extract_strided_slice %79 {offsets = [0, 64], sizes = [256, 32], strides = [1, 1]} : vector<256x128xf32> to vector<256x32xf32>
    %93 = arith.negf %92 : vector<256x32xf32>
    %94 = math.exp %93 : vector<256x32xf32>
    %cst_49 = arith.constant 1.000000e+00 : f32
    %95 = vector.broadcast %cst_49 : f32 to vector<256x32xf32>
    %96 = arith.addf %95, %94 : vector<256x32xf32>
    %97 = arith.divf %95, %96 : vector<256x32xf32>
    %98 = vector.extract_strided_slice %79 {offsets = [0, 96], sizes = [256, 32], strides = [1, 1]} : vector<256x128xf32> to vector<256x32xf32>
    %99 = math.tanh %98 : vector<256x32xf32>
    %c0_50 = arith.constant 0 : index
    %c0_51 = arith.constant 0 : index
    %c0_52 = arith.constant 0 : index
    %100 = vector.load %arg3[%c0_50, %c0_51, %c0_52] : memref<1x256x32xf32, #tpu.memory_space<vmem>>, vector<1x256x32xf32>
    %101 = vector.shape_cast %100 : vector<1x256x32xf32> to vector<256x32xf32>
    %102 = arith.mulf %85, %101 : vector<256x32xf32>
    %103 = arith.mulf %91, %99 : vector<256x32xf32>
    %104 = arith.addf %102, %103 : vector<256x32xf32>
    %105 = math.tanh %104 : vector<256x32xf32>
    %106 = arith.mulf %97, %105 : vector<256x32xf32>
    %107 = tpu.concatenate %106, %104 in 1 : vector<256x32xf32>, vector<256x32xf32> -> vector<256x64xf32>
    %c0_53 = arith.constant 0 : index
    %c0_54 = arith.constant 0 : index
    %c0_55 = arith.constant 0 : index
    %108 = vector.load %arg9[%c0_53, %c0_54, %c0_55] : memref<1x256x64xf32, #tpu.memory_space<vmem>>, vector<1x256x64xf32>
    %109 = vector.shape_cast %108 : vector<1x256x64xf32> to vector<256x64xf32>
    %110 = vector.shape_cast %107 : vector<256x64xf32> to vector<1x256x64xf32>
    tpu.vector_store %arg9[%c0_53, %c0_54, %c0_55], %110 {strides = array<i32>} : memref<1x256x64xf32, #tpu.memory_space<vmem>>, vector<1x256x64xf32>,
    return
  }
  func.func @transform_0(%arg0: i32) -> (i32, i32, i32) {
    %c0_i32 = arith.constant 0 : i32
    %c0_i32_0 = arith.constant 0 : i32
    %c0_i32_1 = arith.constant 0 : i32
    return %arg0, %c0_i32, %c0_i32_0 : i32, i32, i32
  }
  func.func @transform_1(%arg0: i32) -> (i32, i32, i32, i32) {
    %c0_i32 = arith.constant 0 : i32
    %c0_i32_0 = arith.constant 0 : i32
    %c0_i32_1 = arith.constant 0 : i32
    %c0_i32_2 = arith.constant 0 : i32
    return %arg0, %c0_i32, %c0_i32_0, %c0_i32_1 : i32, i32, i32, i32
  }
  func.func @transform_2(%arg0: i32) -> (i32, i32, i32) {
    %c0_i32 = arith.constant 0 : i32
    %c0_i32_0 = arith.constant 0 : i32
    %c0_i32_1 = arith.constant 0 : i32
    return %arg0, %c0_i32, %c0_i32_0 : i32, i32, i32
  }
  func.func @transform_3(%arg0: i32) -> (i32, i32) {
    %c0_i32 = arith.constant 0 : i32
    %c0_i32_0 = arith.constant 0 : i32
    %c0_i32_1 = arith.constant 0 : i32
    return %c0_i32, %c0_i32_0 : i32, i32
  }
  func.func @transform_4(%arg0: i32) -> (i32, i32) {
    %c0_i32 = arith.constant 0 : i32
    %c0_i32_0 = arith.constant 0 : i32
    %c0_i32_1 = arith.constant 0 : i32
    return %c0_i32, %c0_i32_0 : i32, i32
  }
  func.func @transform_5(%arg0: i32) -> (i32, i32) {
    %c0_i32 = arith.constant 0 : i32
    %c0_i32_0 = arith.constant 0 : i32
    %c0_i32_1 = arith.constant 0 : i32
    return %c0_i32, %c0_i32_0 : i32, i32
  }
  func.func @transform_6(%arg0: i32) -> (i32, i32) {
    %c0_i32 = arith.constant 0 : i32
    %c0_i32_0 = arith.constant 0 : i32
    %c0_i32_1 = arith.constant 0 : i32
    return %c0_i32, %c0_i32_0 : i32, i32
  }
  func.func @transform_7(%arg0: i32) -> (i32, i32) {
    %c0_i32 = arith.constant 0 : i32
    %c0_i32_0 = arith.constant 0 : i32
    %c0_i32_1 = arith.constant 0 : i32
    return %c0_i32, %c0_i32_0 : i32, i32
  }
  func.func @transform_8(%arg0: i32) -> (i32, i32, i32) {
    %c0_i32 = arith.constant 0 : i32
    %c0_i32_0 = arith.constant 0 : i32
    %c0_i32_1 = arith.constant 0 : i32
    return %arg0, %c0_i32, %c0_i32_0 : i32, i32, i32
  }
}

module attributes {stable_mosaic.version = 11 : i64} {
  func.func @_down_ln_kernel(%arg0: i32, %arg1: memref<4x9x9x32xf32, #tpu.memory_space<vmem>>, %arg2: memref<9x32x64xbf16, #tpu.memory_space<vmem>>, %arg3: memref<1x64xf32, #tpu.memory_space<vmem>>, %arg4: memref<1x64xf32, #tpu.memory_space<vmem>>, %arg5: memref<1x64xf32, #tpu.memory_space<vmem>>, %arg6: memref<1x64x64xf32, #tpu.memory_space<vmem>>) attributes {dimension_semantics = [#tpu.dimension_semantics<parallel>], iteration_bounds = array<i64: 2>, scalar_prefetch = 0 : i64, scratch_operands = 0 : i64, tpu.core_type = #tpu.core_type<tc>, window_params = [{transform_indices = @transform_0, window_bounds = array<i64: 4, 9, 9, 32>}, {pipeline_mode = #tpu.pipeline_mode<synchronous>, transform_indices = @transform_1, window_bounds = array<i64: 9, 32, 64>}, {pipeline_mode = #tpu.pipeline_mode<synchronous>, transform_indices = @transform_2, window_bounds = array<i64: 1, 64>}, {pipeline_mode = #tpu.pipeline_mode<synchronous>, transform_indices = @transform_3, window_bounds = array<i64: 1, 64>}, {pipeline_mode = #tpu.pipeline_mode<synchronous>, transform_indices = @transform_4, window_bounds = array<i64: 1, 64>}, {transform_indices = @transform_5, window_bounds = array<i64: 1, 64, 64>}]} {
    %c0 = arith.constant 0 : index
    %c0_0 = arith.constant 0 : index
    %c0_1 = arith.constant 0 : index
    %c0_2 = arith.constant 0 : index
    %0 = vector.load %arg1[%c0, %c0_0, %c0_1, %c0_2] : memref<4x9x9x32xf32, #tpu.memory_space<vmem>>, vector<1x8x8x32xf32>
    %1 = vector.shape_cast %0 : vector<1x8x8x32xf32> to vector<8x8x32xf32>
    %2 = vector.shape_cast %1 : vector<8x8x32xf32> to vector<64x32xf32>
    %3 = arith.truncf %2 : vector<64x32xf32> to vector<64x32xbf16>
    %c0_3 = arith.constant 0 : index
    %c0_4 = arith.constant 0 : index
    %c0_5 = arith.constant 0 : index
    %4 = vector.load %arg2[%c0_3, %c0_4, %c0_5] : memref<9x32x64xbf16, #tpu.memory_space<vmem>>, vector<1x32x64xbf16>
    %5 = vector.shape_cast %4 : vector<1x32x64xbf16> to vector<32x64xbf16>
    %cst = arith.constant dense<0.000000e+00> : vector<64x64xf32>
    %6 = tpu.matmul %3, %5, %cst {dimension_numbers = #tpu.dot_dimension_numbers<[1], [0], [0], [1], [0, 0, 1, 1], [], []>} : vector<64x32xbf16>, vector<32x64xbf16>, vector<64x64xf32> -> vector<64x64xf32>
    %c1 = arith.constant 1 : index
    %c0_6 = arith.constant 0 : index
    %c0_7 = arith.constant 0 : index
    %c0_8 = arith.constant 0 : index
    %7 = vector.load %arg1[%c1, %c0_6, %c0_7, %c0_8] : memref<4x9x9x32xf32, #tpu.memory_space<vmem>>, vector<1x8x8x32xf32>
    %8 = vector.shape_cast %7 : vector<1x8x8x32xf32> to vector<8x8x32xf32>
    %9 = vector.shape_cast %8 : vector<8x8x32xf32> to vector<64x32xf32>
    %10 = arith.truncf %9 : vector<64x32xf32> to vector<64x32xbf16>
    %c1_9 = arith.constant 1 : index
    %c0_10 = arith.constant 0 : index
    %c0_11 = arith.constant 0 : index
    %11 = vector.load %arg2[%c1_9, %c0_10, %c0_11] : memref<9x32x64xbf16, #tpu.memory_space<vmem>>, vector<1x32x64xbf16>
    %12 = vector.shape_cast %11 : vector<1x32x64xbf16> to vector<32x64xbf16>
    %cst_12 = arith.constant dense<0.000000e+00> : vector<64x64xf32>
    %13 = tpu.matmul %10, %12, %cst_12 {dimension_numbers = #tpu.dot_dimension_numbers<[1], [0], [0], [1], [0, 0, 1, 1], [], []>} : vector<64x32xbf16>, vector<32x64xbf16>, vector<64x64xf32> -> vector<64x64xf32>
    %14 = arith.addf %6, %13 : vector<64x64xf32>
    %c0_13 = arith.constant 0 : index
    %c0_14 = arith.constant 0 : index
    %c1_15 = arith.constant 1 : index
    %c0_16 = arith.constant 0 : index
    %15 = vector.load %arg1[%c0_13, %c0_14, %c1_15, %c0_16] : memref<4x9x9x32xf32, #tpu.memory_space<vmem>>, vector<1x8x8x32xf32>
    %16 = vector.shape_cast %15 : vector<1x8x8x32xf32> to vector<8x8x32xf32>
    %17 = vector.shape_cast %16 : vector<8x8x32xf32> to vector<64x32xf32>
    %18 = arith.truncf %17 : vector<64x32xf32> to vector<64x32xbf16>
    %c2 = arith.constant 2 : index
    %c0_17 = arith.constant 0 : index
    %c0_18 = arith.constant 0 : index
    %19 = vector.load %arg2[%c2, %c0_17, %c0_18] : memref<9x32x64xbf16, #tpu.memory_space<vmem>>, vector<1x32x64xbf16>
    %20 = vector.shape_cast %19 : vector<1x32x64xbf16> to vector<32x64xbf16>
    %cst_19 = arith.constant dense<0.000000e+00> : vector<64x64xf32>
    %21 = tpu.matmul %18, %20, %cst_19 {dimension_numbers = #tpu.dot_dimension_numbers<[1], [0], [0], [1], [0, 0, 1, 1], [], []>} : vector<64x32xbf16>, vector<32x64xbf16>, vector<64x64xf32> -> vector<64x64xf32>
    %22 = arith.addf %14, %21 : vector<64x64xf32>
    %c2_20 = arith.constant 2 : index
    %c0_21 = arith.constant 0 : index
    %c0_22 = arith.constant 0 : index
    %c0_23 = arith.constant 0 : index
    %23 = vector.load %arg1[%c2_20, %c0_21, %c0_22, %c0_23] : memref<4x9x9x32xf32, #tpu.memory_space<vmem>>, vector<1x8x8x32xf32>
    %24 = vector.shape_cast %23 : vector<1x8x8x32xf32> to vector<8x8x32xf32>
    %25 = vector.shape_cast %24 : vector<8x8x32xf32> to vector<64x32xf32>
    %26 = arith.truncf %25 : vector<64x32xf32> to vector<64x32xbf16>
    %c3 = arith.constant 3 : index
    %c0_24 = arith.constant 0 : index
    %c0_25 = arith.constant 0 : index
    %27 = vector.load %arg2[%c3, %c0_24, %c0_25] : memref<9x32x64xbf16, #tpu.memory_space<vmem>>, vector<1x32x64xbf16>
    %28 = vector.shape_cast %27 : vector<1x32x64xbf16> to vector<32x64xbf16>
    %cst_26 = arith.constant dense<0.000000e+00> : vector<64x64xf32>
    %29 = tpu.matmul %26, %28, %cst_26 {dimension_numbers = #tpu.dot_dimension_numbers<[1], [0], [0], [1], [0, 0, 1, 1], [], []>} : vector<64x32xbf16>, vector<32x64xbf16>, vector<64x64xf32> -> vector<64x64xf32>
    %30 = arith.addf %22, %29 : vector<64x64xf32>
    %c3_27 = arith.constant 3 : index
    %c0_28 = arith.constant 0 : index
    %c0_29 = arith.constant 0 : index
    %c0_30 = arith.constant 0 : index
    %31 = vector.load %arg1[%c3_27, %c0_28, %c0_29, %c0_30] : memref<4x9x9x32xf32, #tpu.memory_space<vmem>>, vector<1x8x8x32xf32>
    %32 = vector.shape_cast %31 : vector<1x8x8x32xf32> to vector<8x8x32xf32>
    %33 = vector.shape_cast %32 : vector<8x8x32xf32> to vector<64x32xf32>
    %34 = arith.truncf %33 : vector<64x32xf32> to vector<64x32xbf16>
    %c4 = arith.constant 4 : index
    %c0_31 = arith.constant 0 : index
    %c0_32 = arith.constant 0 : index
    %35 = vector.load %arg2[%c4, %c0_31, %c0_32] : memref<9x32x64xbf16, #tpu.memory_space<vmem>>, vector<1x32x64xbf16>
    %36 = vector.shape_cast %35 : vector<1x32x64xbf16> to vector<32x64xbf16>
    %cst_33 = arith.constant dense<0.000000e+00> : vector<64x64xf32>
    %37 = tpu.matmul %34, %36, %cst_33 {dimension_numbers = #tpu.dot_dimension_numbers<[1], [0], [0], [1], [0, 0, 1, 1], [], []>} : vector<64x32xbf16>, vector<32x64xbf16>, vector<64x64xf32> -> vector<64x64xf32>
    %38 = arith.addf %30, %37 : vector<64x64xf32>
    %c2_34 = arith.constant 2 : index
    %c0_35 = arith.constant 0 : index
    %c1_36 = arith.constant 1 : index
    %c0_37 = arith.constant 0 : index
    %39 = vector.load %arg1[%c2_34, %c0_35, %c1_36, %c0_37] : memref<4x9x9x32xf32, #tpu.memory_space<vmem>>, vector<1x8x8x32xf32>
    %40 = vector.shape_cast %39 : vector<1x8x8x32xf32> to vector<8x8x32xf32>
    %41 = vector.shape_cast %40 : vector<8x8x32xf32> to vector<64x32xf32>
    %42 = arith.truncf %41 : vector<64x32xf32> to vector<64x32xbf16>
    %c5 = arith.constant 5 : index
    %c0_38 = arith.constant 0 : index
    %c0_39 = arith.constant 0 : index
    %43 = vector.load %arg2[%c5, %c0_38, %c0_39] : memref<9x32x64xbf16, #tpu.memory_space<vmem>>, vector<1x32x64xbf16>
    %44 = vector.shape_cast %43 : vector<1x32x64xbf16> to vector<32x64xbf16>
    %cst_40 = arith.constant dense<0.000000e+00> : vector<64x64xf32>
    %45 = tpu.matmul %42, %44, %cst_40 {dimension_numbers = #tpu.dot_dimension_numbers<[1], [0], [0], [1], [0, 0, 1, 1], [], []>} : vector<64x32xbf16>, vector<32x64xbf16>, vector<64x64xf32> -> vector<64x64xf32>
    %46 = arith.addf %38, %45 : vector<64x64xf32>
    %c0_41 = arith.constant 0 : index
    %c1_42 = arith.constant 1 : index
    %c0_43 = arith.constant 0 : index
    %c0_44 = arith.constant 0 : index
    %47 = vector.load %arg1[%c0_41, %c1_42, %c0_43, %c0_44] : memref<4x9x9x32xf32, #tpu.memory_space<vmem>>, vector<1x8x8x32xf32>
    %48 = vector.shape_cast %47 : vector<1x8x8x32xf32> to vector<8x8x32xf32>
    %49 = vector.shape_cast %48 : vector<8x8x32xf32> to vector<64x32xf32>
    %50 = arith.truncf %49 : vector<64x32xf32> to vector<64x32xbf16>
    %c6 = arith.constant 6 : index
    %c0_45 = arith.constant 0 : index
    %c0_46 = arith.constant 0 : index
    %51 = vector.load %arg2[%c6, %c0_45, %c0_46] : memref<9x32x64xbf16, #tpu.memory_space<vmem>>, vector<1x32x64xbf16>
    %52 = vector.shape_cast %51 : vector<1x32x64xbf16> to vector<32x64xbf16>
    %cst_47 = arith.constant dense<0.000000e+00> : vector<64x64xf32>
    %53 = tpu.matmul %50, %52, %cst_47 {dimension_numbers = #tpu.dot_dimension_numbers<[1], [0], [0], [1], [0, 0, 1, 1], [], []>} : vector<64x32xbf16>, vector<32x64xbf16>, vector<64x64xf32> -> vector<64x64xf32>
    %54 = arith.addf %46, %53 : vector<64x64xf32>
    %c1_48 = arith.constant 1 : index
    %c1_49 = arith.constant 1 : index
    %c0_50 = arith.constant 0 : index
    %c0_51 = arith.constant 0 : index
    %55 = vector.load %arg1[%c1_48, %c1_49, %c0_50, %c0_51] : memref<4x9x9x32xf32, #tpu.memory_space<vmem>>, vector<1x8x8x32xf32>
    %56 = vector.shape_cast %55 : vector<1x8x8x32xf32> to vector<8x8x32xf32>
    %57 = vector.shape_cast %56 : vector<8x8x32xf32> to vector<64x32xf32>
    %58 = arith.truncf %57 : vector<64x32xf32> to vector<64x32xbf16>
    %c7 = arith.constant 7 : index
    %c0_52 = arith.constant 0 : index
    %c0_53 = arith.constant 0 : index
    %59 = vector.load %arg2[%c7, %c0_52, %c0_53] : memref<9x32x64xbf16, #tpu.memory_space<vmem>>, vector<1x32x64xbf16>
    %60 = vector.shape_cast %59 : vector<1x32x64xbf16> to vector<32x64xbf16>
    %cst_54 = arith.constant dense<0.000000e+00> : vector<64x64xf32>
    %61 = tpu.matmul %58, %60, %cst_54 {dimension_numbers = #tpu.dot_dimension_numbers<[1], [0], [0], [1], [0, 0, 1, 1], [], []>} : vector<64x32xbf16>, vector<32x64xbf16>, vector<64x64xf32> -> vector<64x64xf32>
    %62 = arith.addf %54, %61 : vector<64x64xf32>
    %c0_55 = arith.constant 0 : index
    %c1_56 = arith.constant 1 : index
    %c1_57 = arith.constant 1 : index
    %c0_58 = arith.constant 0 : index
    %63 = vector.load %arg1[%c0_55, %c1_56, %c1_57, %c0_58] : memref<4x9x9x32xf32, #tpu.memory_space<vmem>>, vector<1x8x8x32xf32>
    %64 = vector.shape_cast %63 : vector<1x8x8x32xf32> to vector<8x8x32xf32>
    %65 = vector.shape_cast %64 : vector<8x8x32xf32> to vector<64x32xf32>
    %66 = arith.truncf %65 : vector<64x32xf32> to vector<64x32xbf16>
    %c8 = arith.constant 8 : index
    %c0_59 = arith.constant 0 : index
    %c0_60 = arith.constant 0 : index
    %67 = vector.load %arg2[%c8, %c0_59, %c0_60] : memref<9x32x64xbf16, #tpu.memory_space<vmem>>, vector<1x32x64xbf16>
    %68 = vector.shape_cast %67 : vector<1x32x64xbf16> to vector<32x64xbf16>
    %cst_61 = arith.constant dense<0.000000e+00> : vector<64x64xf32>
    %69 = tpu.matmul %66, %68, %cst_61 {dimension_numbers = #tpu.dot_dimension_numbers<[1], [0], [0], [1], [0, 0, 1, 1], [], []>} : vector<64x32xbf16>, vector<32x64xbf16>, vector<64x64xf32> -> vector<64x64xf32>
    %70 = arith.addf %62, %69 : vector<64x64xf32>
    %c0_62 = arith.constant 0 : index
    %c0_63 = arith.constant 0 : index
    %71 = vector.load %arg3[%c0_62, %c0_63] : memref<1x64xf32, #tpu.memory_space<vmem>>, vector<1x64xf32>
    %72 = vector.broadcast %71 : vector<1x64xf32> to vector<64x64xf32>
    %73 = arith.addf %70, %72 : vector<64x64xf32>
    %cst_64 = arith.constant dense<0.000000e+00> : vector<64xf32>
    %74 = vector.multi_reduction <add>, %73, %cst_64 [1] : vector<64x64xf32> to vector<64xf32>
    %75 = vector.shape_cast %74 : vector<64xf32> to vector<64x1xf32>
    %cst_65 = arith.constant 6.400000e+01 : f32
    %76 = vector.broadcast %cst_65 : f32 to vector<64x1xf32>
    %77 = arith.divf %75, %76 : vector<64x1xf32>
    %78 = vector.broadcast %77 : vector<64x1xf32> to vector<64x64xf32>
    %79 = arith.subf %73, %78 : vector<64x64xf32>
    %80 = arith.mulf %79, %79 : vector<64x64xf32>
    %cst_66 = arith.constant dense<0.000000e+00> : vector<64xf32>
    %81 = vector.multi_reduction <add>, %80, %cst_66 [1] : vector<64x64xf32> to vector<64xf32>
    %82 = vector.shape_cast %81 : vector<64xf32> to vector<64x1xf32>
    %cst_67 = arith.constant 6.400000e+01 : f32
    %83 = vector.broadcast %cst_67 : f32 to vector<64x1xf32>
    %84 = arith.divf %82, %83 : vector<64x1xf32>
    %85 = vector.broadcast %77 : vector<64x1xf32> to vector<64x64xf32>
    %86 = arith.subf %73, %85 : vector<64x64xf32>
    %cst_68 = arith.constant 9.99999974E-6 : f32
    %87 = vector.broadcast %cst_68 : f32 to vector<64x1xf32>
    %88 = arith.addf %84, %87 : vector<64x1xf32>
    %89 = math.rsqrt %88 : vector<64x1xf32>
    %90 = vector.broadcast %89 : vector<64x1xf32> to vector<64x64xf32>
    %91 = arith.mulf %86, %90 : vector<64x64xf32>
    %c0_69 = arith.constant 0 : index
    %c0_70 = arith.constant 0 : index
    %92 = vector.load %arg4[%c0_69, %c0_70] : memref<1x64xf32, #tpu.memory_space<vmem>>, vector<1x64xf32>
    %93 = vector.broadcast %92 : vector<1x64xf32> to vector<64x64xf32>
    %94 = arith.mulf %91, %93 : vector<64x64xf32>
    %c0_71 = arith.constant 0 : index
    %c0_72 = arith.constant 0 : index
    %95 = vector.load %arg5[%c0_71, %c0_72] : memref<1x64xf32, #tpu.memory_space<vmem>>, vector<1x64xf32>
    %96 = vector.broadcast %95 : vector<1x64xf32> to vector<64x64xf32>
    %97 = arith.addf %94, %96 : vector<64x64xf32>
    %c0_73 = arith.constant 0 : index
    %c0_74 = arith.constant 0 : index
    %c0_75 = arith.constant 0 : index
    %98 = vector.load %arg6[%c0_73, %c0_74, %c0_75] : memref<1x64x64xf32, #tpu.memory_space<vmem>>, vector<1x64x64xf32>
    %99 = vector.shape_cast %98 : vector<1x64x64xf32> to vector<64x64xf32>
    %100 = vector.shape_cast %97 : vector<64x64xf32> to vector<1x64x64xf32>
    tpu.vector_store %arg6[%c0_73, %c0_74, %c0_75], %100 {strides = array<i32>} : memref<1x64x64xf32, #tpu.memory_space<vmem>>, vector<1x64x64xf32>,
    return
  }
  func.func @transform_0(%arg0: i32) -> (i32, i32, i32, i32) {
    %c0_i32 = arith.constant 0 : i32
    %c0_i32_0 = arith.constant 0 : i32
    %c0_i32_1 = arith.constant 0 : i32
    %c0_i32_2 = arith.constant 0 : i32
    return %arg0, %c0_i32, %c0_i32_0, %c0_i32_1 : i32, i32, i32, i32
  }
  func.func @transform_1(%arg0: i32) -> (i32, i32, i32) {
    %c0_i32 = arith.constant 0 : i32
    %c0_i32_0 = arith.constant 0 : i32
    %c0_i32_1 = arith.constant 0 : i32
    %c0_i32_2 = arith.constant 0 : i32
    return %c0_i32, %c0_i32_0, %c0_i32_1 : i32, i32, i32
  }
  func.func @transform_2(%arg0: i32) -> (i32, i32) {
    %c0_i32 = arith.constant 0 : i32
    %c0_i32_0 = arith.constant 0 : i32
    %c0_i32_1 = arith.constant 0 : i32
    return %c0_i32, %c0_i32_0 : i32, i32
  }
  func.func @transform_3(%arg0: i32) -> (i32, i32) {
    %c0_i32 = arith.constant 0 : i32
    %c0_i32_0 = arith.constant 0 : i32
    %c0_i32_1 = arith.constant 0 : i32
    return %c0_i32, %c0_i32_0 : i32, i32
  }
  func.func @transform_4(%arg0: i32) -> (i32, i32) {
    %c0_i32 = arith.constant 0 : i32
    %c0_i32_0 = arith.constant 0 : i32
    %c0_i32_1 = arith.constant 0 : i32
    return %c0_i32, %c0_i32_0 : i32, i32
  }
  func.func @transform_5(%arg0: i32) -> (i32, i32, i32) {
    %c0_i32 = arith.constant 0 : i32
    %c0_i32_0 = arith.constant 0 : i32
    %c0_i32_1 = arith.constant 0 : i32
    return %arg0, %c0_i32, %c0_i32_0 : i32, i32, i32
  }
}

</mosaic_0001>

<bundles_post_ra>
// kernel: _lambda_.3
= control target key start
LH: loop header
LB: loop body
LE: loop exit
PB: predicated region body
PF: predicated region fallthrough
CT: control target
= control target key end

     0   :  { %10 = vsyncpa [#allocation3], 0  ;;  %s2114_s0 = inlined_call_operand.vmem [shape: f32[8,9,9,32], index: 0, kind: input, shape index: {}]   ;;  %s2115_s1 = inlined_call_operand.vmem [shape: bf16[9,32,64], index: 1, kind: input, shape index: {}]   ;;  %s2116_s2 = inlined_call_operand.vmem [shape: f32[1,64], index: 2, kind: input, shape index: {}]   ;;  %s2117_s3 = inlined_call_operand.vmem [shape: f32[1,64], index: 3, kind: input, shape index: {}]   ;;  %s2118_s4 = inlined_call_operand.vmem [shape: f32[1,64], index: 4, kind: input, shape index: {}]   ;;  %s2119_s5 = inlined_call_operand.hbm [shape: f32[2,64,64], index: 5, kind: output, shape index: {}]  }
   0x1   :  { %12 = vsyncpa [#allocation3 + $0x1], 0  ;;  %s1620_s18 = smov 0   ;;  %s1622_s19 = smov 0  }
   0x2   :  { %s1624_s20 = smov 0   ;;  %s1626_s21 = smov 0  }
   0x3 LB: > { %s1641_s22 = sadd.s32 4294967295, %s1585_s21   ;;  %s1226_s23 = sadd.s32 4294967294, %s1585_s21   ;;  %s1585_s21 = sphi %s1626_s21, %s2125_s21   ;;  %s1581_s20 = sphi %s1624_s20, %s2124_s20   ;;  %s1577_s19 = sphi %s1622_s19, %s2123_s19   ;;  %s1573_s18 = sphi %s1620_s18, %s2122_s18  }
   0x4   : > { %s1645_s24 = sadd.s32 1, %s1585_s21   ;;  %s135_s25 = sadd.s32 1, %s1581_s20 }
   0x5   : > { %s132_s26 = ssub.s32 %s1585_s21, %s1645_s24  ;;  %p145_p0 = scmp.ne.s32.totalorder %s1581_s20, %s1577_s19 }
   0x6   : > { %p133_p1 = scmp.eq.s32.totalorder %s132_s26, 0  ;;  %p146_p2 = scmp.eq.s32.totalorder %s1641_s22, 1 }
   0x7   : > { %p151_p3 = scmp.ne.s32.totalorder %s1577_s19, %s1573_s18  ;;  %p152_p4 = scmp.eq.s32.totalorder %s1226_s23, 1 }
   0x8   : > { %s1656_s27 = scalar_select %p133_p1, %s1581_s20, %s135_s25  }
   0x9   : > { %p1658_p5 = por %p146_p2, %p145_p0  ;;  %p1662_p6 = por %p152_p4, %p151_p3 }
   0xa   : > { %p1229_p7 = scmp.ge.s32.totalorder %s1585_s21, 1  ;;  %p192_p8 = scmp.lt.s32.totalorder %s1585_s21, 3 }
   0xc   : > { %p193_p9 = pnand %p1229_p7, %p192_p8 }
   0xd   : > { %s1231_s7 = sshll.u32 (!%p193_p9), %s1641_s22, 2  ;;  %s1543_s23 = scalar_lea.hbm (!%p193_p9), %s2119_s5, 128 }
   0xe   : > { %196 = sbr.rel (%p193_p9) target bundleno = 576 (0x240), region = 40  ;;  %p222_p10 = scmp.lt.s32.totalorder (!%p193_p9), %s1231_s7, 7 }
  0x13   : > { %v1437_v0 = vld [vmem:[%s2115_s1 + $0x18] sm:$0xff]  ;;  %v1436_v1 = vld [vmem:[%s2115_s1 + $0x10] sm:$0xff]  ;;  %s2127_s7 = smov (!%p222_p10, %s1231_s7), 7  ;;  %v1439_v2 = vld [vmem:[%s2115_s1 + $0x28] sm:$0xff]  ;;  %vm275_vm0 = vcmask 261120   ;;  %vm932_vm1 = vcmask 523264  }
  0x14   : > { %1453 = vmatpush.bf16.msra.mxu1 %v1437_v0  ;;  %1454 = vmatpush.bf16.msra.mxu2 %v1437_v0  ;;  %v1441_v3 = vld [vmem:[%s2115_s1 + $0x38] sm:$0xff]  ;;  %v1435_v4 = vld [vmem:[%s2115_s1 + $0x8] sm:$0xff]  ;;  %s1459_s16 = smul.u32 144, %s2127_s7  ;;  %v1438_v6 = vld [vmem:[%s2115_s1 + $0x20] sm:$0xff]  ;;  %s1452_s7 = sshll.u32 %s1641_s22, 6 }
  0x15   : > { %1455 = vmatpush.bf16.msra.mxu3 %v1437_v0  ;;  %294 = vmatpush.bf16.msra.mxu0 %v1437_v0  ;;  %v1443_v5 = vld [vmem:[%s2115_s1 + $0x48] sm:$0xff]  ;;  %v1440_v10 = vld [vmem:[%s2115_s1 + $0x30] sm:$0xff]  ;;  %v1434_v19 = vld [vmem:[%s2115_s1] sm:$0xff]  ;;  %s1160_s11 = scalar_lea.hbm %s2119_s5, %s1452_s7 }
  0x16   : > { %s1690_s30 = scalar_lea.vmem %s2114_s0, %s1459_s16  ;;  %v1442_v21 = vld [vmem:[%s2115_s1 + $0x40] sm:$0xff]  ;;  %v1447_v22 = vld [vmem:[%s2115_s1 + $0x68] sm:$0xff]  ;;  %v1449_v23 = vld [vmem:[%s2115_s1 + $0x78] sm:$0xff]  ;;  %s218_s16 = sand.u32 1, %s1577_s19  }
  0x17   : > { %v1696_v7 = vld [vmem:[%s1690_s30 + $0xb0] sm:$0xff]  ;;  %v1699_v8 = vld [vmem:[%s1690_s30 + $0xc0] sm:$0xff]  ;;  %v1445_v24 = vld [vmem:[%s2115_s1 + $0x58] sm:$0xff]  ;;  %s1230_s6 = sshll.u32 %s218_s16, 6  ;;  %s1163_s12 = sshll.u32 %s1160_s11, 4  ;;  %s1164_s12 = int_to_ptr.hbm [resolvable:$true] %s1163_s12 }
  0x18   : > { %1456 = vmatpush.bf16.msra.mxu1 %v1436_v1  ;;  %1457 = vmatpush.bf16.msra.mxu2 %v1436_v1  ;;  %v1702_v9 = vld [vmem:[%s1690_s30 + $0xd0] sm:$0xff]  ;;  %v255_v11 = vpack.c.bf16 %v1699_v8, %v1696_v7  ;;  %v1710_v12 = vld [vmem:[%s1690_s30 + $0xe0] sm:$0xff]  ;;  %v1451_v25 = vld [vmem:[%s2115_s1 + $0x88] sm:$0xff]  ;;  %s2037_s8 = scalar_lea.vmem [#allocation2], %s1230_s6  ;;  %s1149_s13 = scalar_lea.sflag [#allocation3], %s218_s16 }
  0x19   : > { %1458 = vmatpush.bf16.msra.mxu3 %v1436_v1  ;;  %295 = vmatpush.bf16.msra.mxu0 %v1436_v1  ;;  %v1713_v13 = vld [vmem:[%s1690_s30 + $0xf0] sm:$0xff]  ;;  %v1716_v14 = vld [vmem:[%s1690_s30 + $0x100] sm:$0xff]  ;;  %v256_v15 = vpack.c.bf16 %v1710_v12, %v1702_v9  ;;  %s1161_s22 = sshll.u32 %s2037_s8, 4  ;;  %s1537_s14 = sshra.s32 %s1164_s12, 4  ;;  %s1162_s22 = int_to_ptr.vmem [resolvable:$true] %s1161_s22  ;;  %s1538_s14 = int_to_ptr.hbm [resolvable:$true] %s1537_s14 }
  0x1a   : > { %v257_v16 = vpack.c.bf16 %v1716_v14, %v1713_v13  ;;  %v1233_v17 = vld [vmem:[%s1690_s30 + $0x90] sm:$0xff]  ;;  %v1724_v18 = vld [vmem:[%s1690_s30 + $0xa0] sm:$0xff]  ;;  %p1544_p0 = scmp.lt.s32.totalorder %s1538_s14, %s2119_s5 }
  0x1b   : > { %1254 = vmatmul.msk.bf16.vlgmr.msra.gmra.mxu1 %vm275_vm0, %v255_v11  ;;  %v254_v20 = vpack.c.bf16 %v1724_v18, %v1233_v17  ;;  %1255 = vmatmul.msk.bf16.vlgmr.msra.gmra.mxu2 %vm275_vm0, %v256_v15  ;;  %v229_v26 = vld [vmem:[%s1690_s30] sm:$0xff]  ;;  %v1751_v27 = vld [vmem:[%s1690_s30 + $0x10] sm:$0xff] }
  0x1c   : > { %417 = vmatpush.bf16.msrb.mxu2 %v1439_v2  ;;  %347 = vmatpush.bf16.msrb.mxu1 %v1435_v4  ;;  %v370_v28 = vld [vmem:[%s1690_s30 + $0x1] sm:$0xff]  ;;  %v1755_v29 = vld [vmem:[%s1690_s30 + $0x11] sm:$0xff]  ;;  %v237_v34 = vpack.c.bf16 %v1751_v27, %v229_v26  ;;  %v772_v2 = vpack.c.bf16 %v1696_v7, %v1724_v18 }
  0x1d   : > { %496 = vmatpush.bf16.msrb.mxu3 %v1441_v3  ;;  %575 = vmatpush.bf16.msrb.mxu0 %v1443_v5  ;;  %v1285_v30 = vld [vmem:[%s1690_s30 + $0x120] sm:$0xff]  ;;  %v1286_v31 = vld [vmem:[%s1690_s30 + $0x130] sm:$0xff]  ;;  %v378_v35 = vpack.c.bf16 %v1755_v29, %v370_v28 }
  0x1e   : > { %1256 = vmatmul.msk.bf16.vlgmr.msra.gmra.mxu3 %vm275_vm0, %v257_v16  ;;  %1253 = vmatmul.msk.bf16.vlgmr.msra.gmra.mxu0 %vm275_vm0, %v254_v20  ;;  %v1309_v32 = vld [vmem:[%s1690_s30 + $0x1b0] sm:$0xff]  ;;  %v1310_v33 = vld [vmem:[%s1690_s30 + $0x1c0] sm:$0xff]  ;;  %v457_v36 = vpack.c.bf16 %v1286_v31, %v1285_v30 }
  0x1f   : > { %v536_v37 = vpack.c.bf16 %v1310_v33, %v1309_v32  ;;  %v1446_v38 = vld [vmem:[%s2115_s1 + $0x60] sm:$0xff]  ;;  %v1448_v39 = vld [vmem:[%s2115_s1 + $0x70] sm:$0xff] }
  0x20   : > { %418 = vmatpush.bf16.msrb.mxu2 %v1438_v6  ;;  %348 = vmatpush.bf16.msrb.mxu1 %v1434_v19  ;;  %v1444_v40 = vld [vmem:[%s2115_s1 + $0x50] sm:$0xff]  ;;  %v1450_v41 = vld [vmem:[%s2115_s1 + $0x80] sm:$0xff] }
  0x21   : > { %497 = vmatpush.bf16.msrb.mxu3 %v1440_v10  ;;  %576 = vmatpush.bf16.msrb.mxu0 %v1442_v21  ;;  %v231_v42 = vld [vmem:[%s1690_s30 + $0x20] sm:$0xff]  ;;  %v1781_v43 = vld [vmem:[%s1690_s30 + $0x30] sm:$0xff] }
  0x22   : > { %v372_v44 = vld [vmem:[%s1690_s30 + $0x21] sm:$0xff]  ;;  %v1785_v45 = vld [vmem:[%s1690_s30 + $0x31] sm:$0xff]  ;;  %v238_v50 = vpack.c.bf16 %v1781_v43, %v231_v42 }
  0x23   : > { %v1287_v46 = vld [vmem:[%s1690_s30 + $0x140] sm:$0xff]  ;;  %v1288_v47 = vld [vmem:[%s1690_s30 + $0x150] sm:$0xff]  ;;  %v379_v51 = vpack.c.bf16 %v1785_v45, %v372_v44 }
  0x24   : > { %732 = vmatpush.bf16.msra.mxu2 %v1447_v22  ;;  %653 = vmatpush.bf16.msra.mxu1 %v1445_v24  ;;  %v1311_v48 = vld [vmem:[%s1690_s30 + $0x1d0] sm:$0xff]  ;;  %v1312_v49 = vld [vmem:[%s1690_s30 + $0x1e0] sm:$0xff]  ;;  %v458_v52 = vpack.c.bf16 %v1288_v47, %v1287_v46  ;;  %v850_v24 = vpack.c.bf16 %v372_v44, %v1755_v29 }
  0x25   : > { %811 = vmatpush.bf16.msra.mxu3 %v1449_v23  ;;  %889 = vmatpush.bf16.msra.mxu0 %v1451_v25  ;;  %v537_v53 = vpack.c.bf16 %v1312_v49, %v1311_v48  ;;  %v233_v54 = vld [vmem:[%s1690_s30 + $0x40] sm:$0xff]  ;;  %v234_v55 = vld [vmem:[%s1690_s30 + $0x50] sm:$0xff]  ;;  %v693_v23 = vpack.c.bf16 %v231_v42, %v1751_v27  ;;  %v773_v27 = vpack.c.bf16 %v1702_v9, %v1699_v8 }
  0x26   : > { %v374_v56 = vld [vmem:[%s1690_s30 + $0x41] sm:$0xff]  ;;  %v375_v57 = vld [vmem:[%s1690_s30 + $0x51] sm:$0xff]  ;;  %v239_v62 = vpack.c.bf16 %v234_v55, %v233_v54  ;;  %v694_v30 = vpack.c.bf16 %v233_v54, %v1781_v43  ;;  %v774_v8 = vpack.c.bf16 %v1713_v13, %v1710_v12 }
  0x27   : > { %v1289_v58 = vld [vmem:[%s1690_s30 + $0x160] sm:$0xff]  ;;  %v1290_v59 = vld [vmem:[%s1690_s30 + $0x170] sm:$0xff]  ;;  %v380_v63 = vpack.c.bf16 %v375_v57, %v374_v56  ;;  %v851_v29 = vpack.c.bf16 %v374_v56, %v1785_v45 }
  0x28   : > { %733 = vmatpush.bf16.msra.mxu2 %v1446_v38  ;;  %654 = vmatpush.bf16.msra.mxu1 %v1444_v40  ;;  %v1313_v60 = vld [vmem:[%s1690_s30 + $0x1f0] sm:$0xff]  ;;  %v1314_v61 = vld [vmem:[%s1690_s30 + $0x200] sm:$0xff]  ;;  %v459_v0 = vpack.c.bf16 %v1290_v59, %v1289_v58 }
  0x29   : > { %812 = vmatpush.bf16.msra.mxu3 %v1448_v39  ;;  %890 = vmatpush.bf16.msra.mxu0 %v1450_v41  ;;  %v538_v1 = vpack.c.bf16 %v1314_v61, %v1313_v60  ;;  %v235_v3 = vld [vmem:[%s1690_s30 + $0x60] sm:$0xff]  ;;  %v236_v4 = vld [vmem:[%s1690_s30 + $0x70] sm:$0xff] }
  0x2a   : > { %v376_v5 = vld [vmem:[%s1690_s30 + $0x61] sm:$0xff]  ;;  %v377_v6 = vld [vmem:[%s1690_s30 + $0x71] sm:$0xff]  ;;  %v240_v17 = vpack.c.bf16 %v236_v4, %v235_v3 }
  0x2b   : > { %1265 = vmatmul.msk.bf16.vlgmr.msrb.gmra.mxu1 %vm275_vm0, %v237_v34  ;;  %1281 = vmatmul.msk.bf16.vlgmr.msrb.gmra.mxu2 %vm275_vm0, %v378_v35  ;;  %v1291_v10 = vld [vmem:[%s1690_s30 + $0x180] sm:$0xff]  ;;  %v1292_v11 = vld [vmem:[%s1690_s30 + $0x190] sm:$0xff]  ;;  %v381_v7 = vpack.c.bf16 %v377_v6, %v376_v5  ;;  %v695_v34 = vpack.c.bf16 %v235_v3, %v234_v55  ;;  %v852_v9 = vpack.c.bf16 %v376_v5, %v375_v57 }
  0x2c   : > { %v1315_v15 = vld [vmem:[%s1690_s30 + $0x210] sm:$0xff]  ;;  %v1316_v16 = vld [vmem:[%s1690_s30 + $0x220] sm:$0xff]  ;;  %v460_v18 = vpack.c.bf16 %v1292_v11, %v1291_v10 }
  0x2d   : > { %v539_v19 = vpack.c.bf16 %v1316_v16, %v1315_v15  ;;  %v1333_v20 = vld [vmem:[%s1690_s30 + $0x121] sm:$0xff]  ;;  %v1334_v21 = vld [vmem:[%s1690_s30 + $0x131] sm:$0xff] }
  0x2e   : > { %1305 = vmatmul.msk.bf16.vlgmr.msrb.gmra.mxu3 %vm275_vm0, %v457_v36  ;;  %1329 = vmatmul.msk.bf16.vlgmr.msrb.gmra.mxu0 %vm275_vm0, %v536_v37  ;;  %v614_v22 = vpack.c.bf16 %v1334_v21, %v1333_v20  ;;  %v1335_v25 = vld [vmem:[%s1690_s30 + $0x141] sm:$0xff]  ;;  %v1336_v26 = vld [vmem:[%s1690_s30 + $0x151] sm:$0xff] }
  0x2f   : > { %v615_v28 = vpack.c.bf16 %v1336_v26, %v1335_v25  ;;  %v1337_v31 = vld [vmem:[%s1690_s30 + $0x161] sm:$0xff]  ;;  %v1338_v32 = vld [vmem:[%s1690_s30 + $0x171] sm:$0xff] }
  0x30   : > { %v616_v33 = vpack.c.bf16 %v1338_v32, %v1337_v31  ;;  %v1339_v35 = vld [vmem:[%s1690_s30 + $0x181] sm:$0xff]  ;;  %v1340_v36 = vld [vmem:[%s1690_s30 + $0x191] sm:$0xff] }
  0x31   : > { %v1364_v37 = vld [vmem:[%s1690_s30 + $0x80] sm:$0xff]  ;;  %v1388_v38 = vld [vmem:[%s1690_s30 + $0x110] sm:$0xff]  ;;  %v617_v40 = vpack.c.bf16 %v1340_v36, %v1339_v35 }
  0x32   : > { %v1412_v39 = vld [vmem:[%s1690_s30 + $0x81] sm:$0xff]  ;;  %v696_v42 = vpack.c.bf16 %v1364_v37, %v236_v4  ;;  %v775_v43 = vpack.c.bf16 %v1388_v38, %v1716_v14  ;;  %v1904_v37 = vld [vmem:[%s2116_s2] ss:$0 sm:$0xff]  ;;  %s1539_s30 = scalar_lea.hbm %s1538_s14, 64 }
  0x33   : > { %v853_v12 = vpack.c.bf16 %v1412_v39, %v377_v6  ;;  %p1540_p11 = scmp.ne.s32.totalorder %s1538_s14, %s1539_s30  ;;  %p1545_p1 = scmp.lt.s32.totalorder %s1543_s23, %s1539_s30 }
  0x35   : > { %p1541_p12 = pnand %p1540_p11, %p1658_p5  ;;  %p1546_p2 = por %p1545_p1, %p1544_p0 }
  0x37   : > { %p1542_p13 = pneg %p1541_p12 }
  0x39   : > { %p1547_p3 = pnand %p1546_p2, %p1542_p13 }
  0x3b   : > { %1266 = vmatmul.msk.bf16.gmra.mxu1 %vm275_vm0, %v238_v50  ;;  %1282 = vmatmul.msk.bf16.gmra.mxu2 %vm275_vm0, %v379_v51 }
  0x3e   : > { %1306 = vmatmul.msk.bf16.gmra.mxu3 %vm275_vm0, %v458_v52  ;;  %1330 = vmatmul.msk.bf16.gmra.mxu0 %vm275_vm0, %v537_v53 }
  0x4b   : > { %1267 = vmatmul.msk.bf16.gmra.mxu1 %vm275_vm0, %v239_v62  ;;  %1283 = vmatmul.msk.bf16.gmra.mxu2 %vm275_vm0, %v380_v63 }
  0x4e   : > { %1307 = vmatmul.msk.bf16.gmra.mxu3 %vm275_vm0, %v459_v0  ;;  %1331 = vmatmul.msk.bf16.gmra.mxu0 %vm275_vm0, %v538_v1 }
  0x5b   : > { %1268 = vmatmul.msk.bf16.gmra.mxu1 %vm275_vm0, %v240_v17  ;;  %1284 = vmatmul.msk.bf16.gmra.mxu2 %vm275_vm0, %v381_v7 }
  0x5e   : > { %1308 = vmatmul.msk.bf16.gmra.mxu3 %vm275_vm0, %v460_v18  ;;  %1332 = vmatmul.msk.bf16.gmra.mxu0 %vm275_vm0, %v539_v19 }
  0x6b   : > { %1353 = vmatmul.msk.bf16.vlgmr.msra.gmra.mxu1 %vm275_vm0, %v614_v22  ;;  %1377 = vmatmul.msk.bf16.vlgmr.msra.gmra.mxu2 %vm275_vm0, %v693_v23 }
  0x6e   : > { %1401 = vmatmul.msk.bf16.vlgmr.msra.gmra.mxu3 %vm275_vm0, %v772_v2  ;;  %1425 = vmatmul.msk.bf16.vlgmr.msra.gmra.mxu0 %vm275_vm0, %v850_v24 }
  0x7b   : > { %1354 = vmatmul.msk.bf16.gmra.mxu1 %vm275_vm0, %v615_v28  ;;  %1378 = vmatmul.msk.bf16.gmra.mxu2 %vm275_vm0, %v694_v30 }
  0x7e   : > { %1402 = vmatmul.msk.bf16.gmra.mxu3 %vm275_vm0, %v773_v27  ;;  %1426 = vmatmul.msk.bf16.gmra.mxu0 %vm275_vm0, %v851_v29 }
  0x8b   : > { %1355 = vmatmul.msk.bf16.gmra.mxu1 %vm275_vm0, %v616_v33  ;;  %1379 = vmatmul.msk.bf16.gmra.mxu2 %vm275_vm0, %v695_v34 }
  0x8e   : > { %1403 = vmatmul.msk.bf16.gmra.mxu3 %vm275_vm0, %v774_v8  ;;  %1427 = vmatmul.msk.bf16.gmra.mxu0 %vm275_vm0, %v852_v9 }
  0x98   : > { %v302_v41 = vpop.f32.mrf.mxu1 }
  0x9b   : > { %v297_v13 = vpop.f32.mrf.mxu0  ;;  %1356 = vmatmul.msk.bf16.gmra.mxu1 %vm275_vm0, %v617_v40  ;;  %1380 = vmatmul.msk.bf16.gmra.mxu2 %vm275_vm0, %v696_v42 }
  0x9e   : > { %1404 = vmatmul.msk.bf16.gmra.mxu3 %vm275_vm0, %v775_v43  ;;  %1428 = vmatmul.msk.bf16.gmra.mxu0 %vm275_vm0, %v853_v12  ;;  %v1859_v44 = vpop.f32.mrf.mxu2 }
  0xa0   : > { %v1863_v46 = vpop.f32.mrf.mxu1 }
  0xa1   : > { %v1861_v45 = vpop.f32.mrf.mxu3 }
  0xa3   : > { %v299_v47 = vpop.f32.mrf.mxu0 }
  0xa6   : > { %v1865_v48 = vpop.f32.mrf.mxu2 }
  0xa8   : > { %v350_v49 = vpop.f32.mrf.mxu1 }
  0xa9   : > { %v1867_v14 = vpop.f32.mrf.mxu3  ;;  %v351_v19 = vadd.f32 %v350_v49, %v297_v13 }
  0xab   : > { %v578_v50 = vpop.f32.mrf.mxu0 }
  0xae   : > { %v420_v51 = vpop.f32.mrf.mxu2 }
  0xaf   : > { %v440_v21 = vadd.f32 %v420_v51, %v351_v19 }
  0xb0   : > { %v352_v53 = vpop.f32.mrf.mxu1 }
  0xb1   : > { %v499_v52 = vpop.f32.mrf.mxu3  ;;  %v353_v26 = vadd.f32 %v352_v53, %v299_v47 }
  0xb2   : > { %v519_v24 = vadd.f32 %v499_v52, %v440_v21 }
  0xb3   : > { %v580_v54 = vpop.f32.mrf.mxu0 }
  0xb4   : > { %v598_v27 = vadd.f32 %v578_v50, %v519_v24 }
  0xb6   : > { %v422_v55 = vpop.f32.mrf.mxu2 }
  0xb7   : > { %v441_v30 = vadd.f32 %v422_v55, %v353_v26 }
  0xb8   : > { %v355_v57 = vpop.f32.mrf.mxu1 }
  0xb9   : > { %v501_v56 = vpop.f32.mrf.mxu3  ;;  %v356_v9 = vadd.f32 %v355_v57, %v302_v41 }
  0xba   : > { %v520_v33 = vadd.f32 %v501_v56, %v441_v30 }
  0xbb   : > { %v583_v58 = vpop.f32.mrf.mxu0 }
  0xbc   : > { %v599_v40 = vadd.f32 %v580_v54, %v520_v33 }
  0xbe   : > { %v425_v59 = vpop.f32.mrf.mxu2 }
  0xbf   : > { %v442_v38 = vadd.f32 %v425_v59, %v356_v9 }
  0xc0   : > { %v357_v61 = vpop.f32.mrf.mxu1 }
  0xc1   : > { %v504_v60 = vpop.f32.mrf.mxu3  ;;  %v358_v51 = vadd.f32 %v357_v61, %v1863_v46 }
  0xc2   : > { %v521_v47 = vadd.f32 %v504_v60, %v442_v38 }
  0xc3   : > { %v1869_v62 = vpop.f32.mrf.mxu0 }
  0xc4   : > { %v600_v56 = vadd.f32 %v583_v58, %v521_v47 }
  0xc6   : > { %v427_v63 = vpop.f32.mrf.mxu2 }
  0xc7   : > { %v443_v55 = vadd.f32 %v427_v63, %v358_v51 }
  0xc8   : > { %v360_v1 = vpop.f32.mrf.mxu1 }
  0xc9   : > { %v506_v0 = vpop.f32.mrf.mxu3  ;;  %v361_v46 = vadd.f32 %v360_v1, %v1859_v44 }
  0xca   : > { %v522_v60 = vadd.f32 %v506_v0, %v443_v55 }
  0xcb   : > { %v1871_v2 = vpop.f32.mrf.mxu0 }
  0xcc   : > { %v601_v30 = vadd.f32 %v1869_v62, %v522_v60 }
  0xce   : > { %v1873_v3 = vpop.f32.mrf.mxu2 }
  0xcf   : > { %v444_v63 = vadd.f32 %v1873_v3, %v361_v46 }
  0xd0   : > { %v1877_v5 = vpop.f32.mrf.mxu1 }
  0xd1   : > { %v1875_v4 = vpop.f32.mrf.mxu3  ;;  %v363_v1 = vadd.f32 %v1877_v5, %v1865_v48 }
  0xd3   : > { %v1879_v6 = vpop.f32.mrf.mxu0 }
  0xd6   : > { %v1881_v10 = vpop.f32.mrf.mxu2 }
  0xd7   : > { %v445_v62 = vadd.f32 %v1881_v10, %v363_v1 }
  0xd8   : > { %v1885_v15 = vpop.f32.mrf.mxu1 }
  0xd9   : > { %v1883_v11 = vpop.f32.mrf.mxu3  ;;  %v366_v5 = vadd.f32 %v1885_v15, %v1861_v45 }
  0xdb   : > { %v1887_v16 = vpop.f32.mrf.mxu0 }
  0xde   : > { %v1889_v17 = vpop.f32.mrf.mxu2 }
  0xe0   : > { %v1893_v18 = vpop.f32.mrf.mxu1 }
  0xe1   : > { %v1891_v7 = vpop.f32.mrf.mxu3  ;;  %v368_v15 = vadd.f32 %v1893_v18, %v1867_v14 }
  0xe3   : > { %v1895_v20 = vpop.f32.mrf.mxu0 }
  0xe6   : > { %v1897_v22 = vpop.f32.mrf.mxu2 }
  0xe8   : > { %v656_v25 = vpop.f32.mrf.mxu1 }
  0xe9   : > { %v1899_v23 = vpop.f32.mrf.mxu3  ;;  %v676_v29 = vadd.f32 %v656_v25, %v598_v27 }
  0xeb   : > { %v892_v28 = vpop.f32.mrf.mxu0 }
  0xee   : > { %v735_v31 = vpop.f32.mrf.mxu2 }
  0xef   : > { %v755_v34 = vadd.f32 %v735_v31, %v676_v29 }
  0xf0   : > { %v658_v8 = vpop.f32.mrf.mxu1 }
  0xf1   : > { %v814_v32 = vpop.f32.mrf.mxu3  ;;  %v677_v42 = vadd.f32 %v658_v8, %v599_v40  ;;  %v524_v40 = vadd.f32 %v1883_v11, %v445_v62 }
  0xf2   : > { %v834_v35 = vadd.f32 %v814_v32, %v755_v34  ;;  %v523_v32 = vadd.f32 %v1875_v4, %v444_v63 }
  0xf3   : > { %v894_v36 = vpop.f32.mrf.mxu0  ;;  %v603_v47 = vadd.f32 %v1879_v6, %v524_v40  ;;  %v447_v6 = vadd.f32 %v1897_v22, %v368_v15 }
  0xf4   : > { %v912_v39 = vadd.f32 %v892_v28, %v834_v35  ;;  %v602_v9 = vadd.f32 %v1871_v2, %v523_v32  ;;  %v446_v2 = vadd.f32 %v1889_v17, %v366_v5 }
  0xf5   : > { %v526_v60 = vadd.f32 %v1899_v23, %v447_v6 }
  0xf6   : > { %v1907_v43 = vadd.f32 %v1904_v37, %v912_v39  ;;  %v737_v12 = vpop.f32.mrf.mxu2 }
  0xf7   : > { %v756_v49 = vadd.f32 %v737_v12, %v677_v42  ;;  %v605_v46 = vadd.f32 %v1895_v20, %v526_v60 }
  0xf8   : > { %v661_v41 = vpop.f32.mrf.mxu1  ;;  %v933_v50 = vsel %vm932_vm1, %v1907_v43, 0.0 }
  0xf9   : > { %v816_v13 = vpop.f32.mrf.mxu3  ;;  %934 = vadd.xlane.f32.xlu0 %v933_v50  ;;  %v678_v57 = vadd.f32 %v661_v41, %v600_v56 }
  0xfa   : > { %v835_v52 = vadd.f32 %v816_v13, %v756_v49 }
  0xfb   : > { %v897_v53 = vpop.f32.mrf.mxu0 }
  0xfc   : > { %v913_v54 = vadd.f32 %v894_v36, %v835_v52  ;;  %v525_v52 = vadd.f32 %v1891_v7, %v446_v2 }
  0xfe   : > { %v1913_v59 = vadd.f32 %v1904_v37, %v913_v54  ;;  %v740_v19 = vpop.f32.mrf.mxu2  ;;  %v604_v56 = vadd.f32 %v1887_v16, %v525_v52 }
  0xff   : > { %v757_v24 = vadd.f32 %v740_v19, %v678_v57 }
 0x100   : > { %v663_v25 = vpop.f32.mrf.mxu1  ;;  %v936_v26 = vsel %vm932_vm1, %v1913_v59, 0.0 }
 0x101   : > { %v819_v21 = vpop.f32.mrf.mxu3  ;;  %937 = vadd.xlane.f32.xlu0 %v936_v26  ;;  %v679_v27 = vadd.f32 %v663_v25, %v601_v30 }
 0x102   : > { %v836_v61 = vadd.f32 %v819_v21, %v757_v24 }
 0x103   : > { %v899_v28 = vpop.f32.mrf.mxu0 }
 0x104   : > { %v914_v58 = vadd.f32 %v897_v53, %v836_v61 }
 0x106   : > { %v1921_v29 = vadd.f32 %v1904_v37, %v914_v58  ;;  %v742_v0 = vpop.f32.mrf.mxu2 }
 0x107   : > { %v758_v33 = vadd.f32 %v742_v0, %v679_v27 }
 0x108   : > { %v666_v34 = vpop.f32.mrf.mxu1  ;;  %v939_v44 = vsel %vm932_vm1, %v1921_v29, 0.0 }
 0x109   : > { %v821_v31 = vpop.f32.mrf.mxu3  ;;  %940 = vadd.xlane.f32.xlu1 %v939_v44  ;;  %v680_v36 = vadd.f32 %v666_v34, %v602_v9 }
 0x10a   : > { %v837_v3 = vadd.f32 %v821_v31, %v758_v33  ;;  %v1587_v33 = vmov 64.0  }
 0x10b   : > { %v902_v35 = vpop.f32.mrf.mxu0  ;;  %1505 = vrcp.f32 %v1587_v33  ;;  %v2024_v33 = vld [vmem:[%s2117_s3] ss:$0 sm:$0xff] }
 0x10c   : > { %v915_v8 = vadd.f32 %v899_v28, %v837_v3 }
 0x10e   : > { %v1931_v38 = vadd.f32 %v1904_v37, %v915_v8  ;;  %v745_v4 = vpop.f32.mrf.mxu2 }
 0x10f   : > { %v759_v42 = vadd.f32 %v745_v4, %v680_v36 }
 0x110   : > { %v668_v12 = vpop.f32.mrf.mxu1  ;;  %v942_v48 = vsel %vm932_vm1, %v1931_v38, 0.0 }
 0x111   : > { %v824_v39 = vpop.f32.mrf.mxu3  ;;  %943 = vadd.xlane.f32.xlu1 %v942_v48  ;;  %v681_v49 = vadd.f32 %v668_v12, %v603_v47  ;;  %v1506_v20 = vpop.eup %1505 }
 0x112   : > { %v838_v10 = vadd.f32 %v824_v39, %v759_v42  ;;  %v958_v34 = vmul.f32 64.0, %v1506_v20  ;;  %vm962_vm2 = vweird.f32 %v1506_v20 }
 0x113   : > { %v904_v41 = vpop.f32.mrf.mxu0 }
 0x114   : > { %v916_v13 = vadd.f32 %v902_v35, %v838_v10  ;;  %v959_v44 = vsub.f32 1.0, %v958_v34 }
 0x116   : > { %v1941_v50 = vadd.f32 %v1904_v37, %v916_v13  ;;  %v747_v11 = vpop.f32.mrf.mxu2  ;;  %v960_v1 = vmul.f32 %v1506_v20, %v959_v44  ;;  %v2029_v44 = vld [vmem:[%s2118_s4] ss:$0 sm:$0xff] }
 0x117   : > { %v760_v53 = vadd.f32 %v747_v11, %v681_v49 }
 0x118   : > { %v945_v55 = vsel %vm932_vm1, %v1941_v50, 0.0  ;;  %v671_v45 = vpop.f32.mrf.mxu1  ;;  %v961_v3 = vadd.f32 %v1506_v20, %v960_v1 }
 0x119   : > { %v826_v51 = vpop.f32.mrf.mxu3  ;;  %946 = vadd.xlane.f32.xlu2 %v945_v55  ;;  %v682_v57 = vadd.f32 %v671_v45, %v604_v56 }
 0x11a   : > { %v839_v17 = vadd.f32 %v826_v51, %v760_v53  ;;  %v1961_v62 = vsel %vm962_vm2, %v1506_v20, %v961_v3 }
 0x11b   : > { %v907_v26 = vpop.f32.mrf.mxu0 }
 0x11c   : > { %v917_v54 = vadd.f32 %v904_v41, %v839_v17 }
 0x11e   : > { %v1951_v19 = vadd.f32 %v1904_v37, %v917_v54  ;;  %v750_v7 = vpop.f32.mrf.mxu2 }
 0x11f   : > { %v761_v24 = vadd.f32 %v750_v7, %v682_v57 }
 0x120   : > { %v948_v25 = vsel %vm932_vm1, %v1951_v19, 0.0  ;;  %v673_v18 = vpop.f32.mrf.mxu1 }
 0x121   : > { %v829_v21 = vpop.f32.mrf.mxu3  ;;  %949 = vadd.xlane.f32.xlu2 %v948_v25  ;;  %v683_v16 = vadd.f32 %v673_v18, %v605_v46 }
 0x122   : > { %v840_v14 = vadd.f32 %v829_v21, %v761_v24 }
 0x123   : > { %v909_v27 = vpop.f32.mrf.mxu0 }
 0x124   : > { %v918_v22 = vadd.f32 %v907_v26, %v840_v14 }
 0x126   : > { %v930_v61 = vadd.f32 %v1904_v37, %v918_v22  ;;  %v752_v28 = vpop.f32.mrf.mxu2 }
 0x127   : > { %v762_v63 = vadd.f32 %v752_v28, %v683_v16 }
 0x128   : > { %v951_v58 = vsel %vm932_vm1, %v930_v61, 0.0 }
 0x129   : > { %v831_v30 = vpop.f32.mrf.mxu3  ;;  %952 = vadd.xlane.f32.xlu0 %v951_v58 }
 0x12a   : > { %v841_v23 = vadd.f32 %v831_v30, %v762_v63 }
 0x12c   : > { %v919_v0 = vadd.f32 %v909_v27, %v841_v23 }
 0x12e   : > { %v931_v31 = vadd.f32 %v1904_v37, %v919_v0 }
 0x130   : > { %v954_v32 = vsel %vm932_vm1, %v931_v31, 0.0 }
 0x131   : > { %955 = vadd.xlane.f32.xlu1 %v954_v32 }
 0x16c   : > { %v935_v8 = vpop.xlane.xlu0 %934 }
 0x16d   : > { %v964_v9 = vmul.f32 %v1961_v62, %v935_v8 }
 0x16f   : > { %v1965_v35 = vsub.f32 %v1907_v43, %v964_v9 }
 0x171   : > { %v980_v37 = vmul.f32 %v1965_v35, %v1965_v35 }
 0x173   : > { %v988_v36 = vsel %vm932_vm1, %v980_v37, 0.0 }
 0x174   : > { %989 = vadd.xlane.f32.xlu2 %v988_v36  ;;  %v938_v4 = vpop.xlane.xlu0 %937 }
 0x175   : > { %v965_v39 = vmul.f32 %v1961_v62, %v938_v4 }
 0x177   : > { %v1972_v40 = vsub.f32 %v1913_v59, %v965_v39 }
 0x179   : > { %v981_v42 = vmul.f32 %v1972_v40, %v1972_v40 }
 0x17b   : > { %v991_v12 = vsel %vm932_vm1, %v981_v42, 0.0 }
 0x17c   : > { %v941_v48 = vpop.xlane.xlu1 %940  ;;  %992 = vadd.xlane.f32.xlu0 %v991_v12 }
 0x17d   : > { %v966_v43 = vmul.f32 %v1961_v62, %v941_v48 }
 0x17f   : > { %v1979_v5 = vsub.f32 %v1921_v29, %v966_v43 }
 0x181   : > { %v982_v10 = vmul.f32 %v1979_v5, %v1979_v5 }
 0x183   : > { %v994_v2 = vsel %vm932_vm1, %v982_v10, 0.0 }
 0x184   : > { %995 = vadd.xlane.f32.xlu1 %v994_v2  ;;  %v944_v59 = vpop.xlane.xlu1 %943 }
 0x185   : > { %v967_v13 = vmul.f32 %v1961_v62, %v944_v59 }
 0x187   : > { %v1986_v47 = vsub.f32 %v1931_v38, %v967_v13 }
 0x189   : > { %v983_v49 = vmul.f32 %v1986_v47, %v1986_v47 }
 0x18b   : > { %v997_v41 = vsel %vm932_vm1, %v983_v49, 0.0 }
 0x18c   : > { %v947_v11 = vpop.xlane.xlu2 %946  ;;  %998 = vadd.xlane.f32.xlu2 %v997_v41 }
 0x18d   : > { %v968_v29 = vmul.f32 %v1961_v62, %v947_v11 }
 0x18f   : > { %v1993_v51 = vsub.f32 %v1941_v50, %v968_v29 }
 0x191   : > { %v984_v52 = vmul.f32 %v1993_v51, %v1993_v51 }
 0x193   : > { %v1000_v53 = vsel %vm932_vm1, %v984_v52, 0.0 }
 0x194   : > { %v950_v55 = vpop.xlane.xlu2 %949  ;;  %1001 = vadd.xlane.f32.xlu0 %v1000_v53 }
 0x195   : > { %v969_v38 = vmul.f32 %v1961_v62, %v950_v55 }
 0x197   : > { %v2000_v45 = vsub.f32 %v1951_v19, %v969_v38 }
 0x199   : > { %v985_v15 = vmul.f32 %v2000_v45, %v2000_v45 }
 0x19b   : > { %v1003_v17 = vsel %vm932_vm1, %v985_v15, 0.0 }
 0x19c   : > { %1004 = vadd.xlane.f32.xlu1 %v1003_v17  ;;  %v953_v50 = vpop.xlane.xlu0 %952 }
 0x19d   : > { %v970_v6 = vmul.f32 %v1961_v62, %v953_v50 }
 0x19f   : > { %v2006_v54 = vsub.f32 %v930_v61, %v970_v6 }
 0x1a1   : > { %v986_v56 = vmul.f32 %v2006_v54, %v2006_v54 }
 0x1a3   : > { %v1006_v57 = vsel %vm932_vm1, %v986_v56, 0.0 }
 0x1a4   : > { %v956_v7 = vpop.xlane.xlu1 %955  ;;  %1007 = vadd.xlane.f32.xlu2 %v1006_v57 }
 0x1a5   : > { %v971_v19 = vmul.f32 %v1961_v62, %v956_v7 }
 0x1a7   : > { %v2012_v21 = vsub.f32 %v931_v31, %v971_v19 }
 0x1a9   : > { %v987_v60 = vmul.f32 %v2012_v21, %v2012_v21 }
 0x1ab   : > { %v1009_v24 = vsel %vm932_vm1, %v987_v60, 0.0 }
 0x1ac   : > { %1010 = vadd.xlane.f32.xlu0 %v1009_v24 }
 0x1e7   : > { %v990_v25 = vpop.xlane.xlu2 %989 }
 0x1e8   : > { %v1012_v26 = vmul.f32 %v990_v25, %v1961_v62 }
 0x1ea   : > { %v1020_v14 = vadd.f32 1e-05, %v1012_v26 }
 0x1ec   : > { %1507 = vrsqrt.f32 %v1020_v14  ;;  %vm1034_vm4 = vweird.f32 %v1020_v14 }
 0x1ef   : > { %v993_v18 = vpop.xlane.xlu0 %992 }
 0x1f0   : > { %v1013_v22 = vmul.f32 %v993_v18, %v1961_v62 }
 0x1f2   : > { %v1508_v46 = vpop.eup %1507  ;;  %v1021_v16 = vadd.f32 1e-05, %v1013_v22 }
 0x1f3   : > { %v1029_v61 = vmul.f32 %v1508_v46, %v1020_v14  ;;  %vm1035_vm3 = vweird.f32 %v1508_v46 }
 0x1f4   : > { %1509 = vrsqrt.f32 %v1021_v16  ;;  %vm1036_vm5 = vmor %vm1034_vm4, %vm1035_vm3  ;;  %vm1044_vm7 = vweird.f32 %v1021_v16 }
 0x1f5   : > { %v1030_v28 = vmul.f32 %v1508_v46, %v1029_v61 }
 0x1f7   : > { %v1031_v63 = vmul.f32 0.5, %v1030_v28  ;;  %v996_v58 = vpop.xlane.xlu1 %995 }
 0x1f8   : > { %v1014_v30 = vmul.f32 %v996_v58, %v1961_v62 }
 0x1f9   : > { %v1032_v23 = vsub.f32 1.5, %v1031_v63 }
 0x1fa   : > { %v1510_v27 = vpop.eup %1509  ;;  %v1022_v0 = vadd.f32 1e-05, %v1014_v30 }
 0x1fb   : > { %v1033_v31 = vmul.f32 %v1508_v46, %v1032_v23  ;;  %v1039_v32 = vmul.f32 %v1510_v27, %v1021_v16  ;;  %vm1045_vm6 = vweird.f32 %v1510_v27 }
 0x1fc   : > { %1511 = vrsqrt.f32 %v1022_v0  ;;  %vm1046_vm8 = vmor %vm1044_vm7, %vm1045_vm6  ;;  %vm1054_vm10 = vweird.f32 %v1022_v0 }
 0x1fd   : > { %v1037_v20 = vsel %vm1036_vm5, %v1508_v46, %v1033_v31  ;;  %v1040_v34 = vmul.f32 %v1510_v27, %v1039_v32 }
 0x1fe   : > { %v1108_v1 = vmul.f32 %v1037_v20, %v1965_v35 }
 0x1ff   : > { %v1041_v3 = vmul.f32 0.5, %v1040_v34  ;;  %v999_v8 = vpop.xlane.xlu2 %998 }
 0x200   : > { %v1120_v9 = vmul.f32 %v2024_v33, %v1108_v1  ;;  %v1015_v37 = vmul.f32 %v999_v8, %v1961_v62 }
 0x201   : > { %v1042_v36 = vsub.f32 1.5, %v1041_v3 }
 0x202   : > { %v1512_v4 = vpop.eup %1511  ;;  %v1132_v39 = vadd.f32 %v2029_v44, %v1120_v9  ;;  %v1023_v42 = vadd.f32 1e-05, %v1015_v37 }
 0x203   : > { %v1043_v12 = vmul.f32 %v1510_v27, %v1042_v36  ;;  %v1049_v48 = vmul.f32 %v1512_v4, %v1022_v0  ;;  %vm1055_vm9 = vweird.f32 %v1512_v4 }
 0x204   : > { %1140 = vst.msk [vmem:[%s2037_s8] sm:$0xff] %vm932_vm1, %v1132_v39  ;;  %1513 = vrsqrt.f32 %v1023_v42  ;;  %vm1056_vm11 = vmor %vm1054_vm10, %vm1055_vm9  ;;  %vm1064_vm13 = vweird.f32 %v1023_v42 }
 0x205   : > { %v1047_v35 = vsel %vm1046_vm8, %v1510_v27, %v1043_v12  ;;  %v1050_v43 = vmul.f32 %v1512_v4, %v1049_v48 }
 0x206   : > { %v1109_v10 = vmul.f32 %v1047_v35, %v1972_v40 }
 0x207   : > { %v1051_v2 = vmul.f32 0.5, %v1050_v43  ;;  %v1002_v59 = vpop.xlane.xlu0 %1001 }
 0x208   : > { %v1121_v13 = vmul.f32 %v2024_v33, %v1109_v10  ;;  %v1016_v49 = vmul.f32 %v1002_v59, %v1961_v62 }
 0x209   : > { %v1052_v41 = vsub.f32 1.5, %v1051_v2 }
 0x20a   : > { %v1514_v11 = vpop.eup %1513  ;;  %v1133_v29 = vadd.f32 %v2029_v44, %v1121_v13  ;;  %v1024_v52 = vadd.f32 1e-05, %v1016_v49 }
 0x20b   : > { %v1053_v53 = vmul.f32 %v1512_v4, %v1052_v41  ;;  %v1059_v55 = vmul.f32 %v1514_v11, %v1023_v42  ;;  %vm1065_vm12 = vweird.f32 %v1514_v11 }
 0x20c   : > { %1141 = vst.msk [vmem:[%s2037_s8 + $0x8] sm:$0xff] %vm932_vm1, %v1133_v29  ;;  %1515 = vrsqrt.f32 %v1024_v52  ;;  %vm1066_vm14 = vmor %vm1064_vm13, %vm1065_vm12  ;;  %vm1074_vm0 = vweird.f32 %v1024_v52 }
 0x20d   : > { %v1057_v40 = vsel %vm1056_vm11, %v1512_v4, %v1053_v53  ;;  %v1060_v38 = vmul.f32 %v1514_v11, %v1059_v55 }
 0x20e   : > { %v1110_v15 = vmul.f32 %v1057_v40, %v1979_v5 }
 0x20f   : > { %v1061_v17 = vmul.f32 0.5, %v1060_v38  ;;  %v1005_v50 = vpop.xlane.xlu1 %1004 }
 0x210   : > { %v1122_v6 = vmul.f32 %v2024_v33, %v1110_v15  ;;  %v1017_v56 = vmul.f32 %v1005_v50, %v1961_v62 }
 0x211   : > { %v1062_v57 = vsub.f32 1.5, %v1061_v17 }
 0x212   : > { %v1516_v7 = vpop.eup %1515  ;;  %v1134_v19 = vadd.f32 %v2029_v44, %v1122_v6  ;;  %v1025_v60 = vadd.f32 1e-05, %v1017_v56 }
 0x213   : > { %v1063_v24 = vmul.f32 %v1514_v11, %v1062_v57  ;;  %v1069_v25 = vmul.f32 %v1516_v7, %v1024_v52  ;;  %vm1075_vm15 = vweird.f32 %v1516_v7 }
 0x214   : > { %1142 = vst.msk [vmem:[%s2037_s8 + $0x10] sm:$0xff] %vm932_vm1, %v1134_v19  ;;  %1517 = vrsqrt.f32 %v1025_v60  ;;  %vm1076_vm2 = vmor %vm1074_vm0, %vm1075_vm15  ;;  %vm1084_vm4 = vweird.f32 %v1025_v60 }
 0x215   : > { %v1067_v5 = vsel %vm1066_vm14, %v1514_v11, %v1063_v24  ;;  %v1070_v26 = vmul.f32 %v1516_v7, %v1069_v25 }
 0x216   : > { %v1111_v14 = vmul.f32 %v1067_v5, %v1986_v47 }
 0x217   : > { %v1071_v18 = vmul.f32 0.5, %v1070_v26  ;;  %v1008_v22 = vpop.xlane.xlu2 %1007 }
 0x218   : > { %v1123_v46 = vmul.f32 %v2024_v33, %v1111_v14  ;;  %v1018_v16 = vmul.f32 %v1008_v22, %v1961_v62 }
 0x219   : > { %v1072_v61 = vsub.f32 1.5, %v1071_v18 }
 0x21a   : > { %v1518_v28 = vpop.eup %1517  ;;  %v1135_v63 = vadd.f32 %v2029_v44, %v1123_v46  ;;  %v1026_v58 = vadd.f32 1e-05, %v1018_v16 }
 0x21b   : > { %v1073_v30 = vmul.f32 %v1516_v7, %v1072_v61  ;;  %v1079_v23 = vmul.f32 %v1518_v28, %v1025_v60  ;;  %vm1085_vm3 = vweird.f32 %v1518_v28 }
 0x21c   : > { %1143 = vst.msk [vmem:[%s2037_s8 + $0x18] sm:$0xff] %vm932_vm1, %v1135_v63  ;;  %1519 = vrsqrt.f32 %v1026_v58  ;;  %vm1086_vm5 = vmor %vm1084_vm4, %vm1085_vm3  ;;  %vm1094_vm7 = vweird.f32 %v1026_v58 }
 0x21d   : > { %v1077_v47 = vsel %vm1076_vm2, %v1516_v7, %v1073_v30  ;;  %v1080_v27 = vmul.f32 %v1518_v28, %v1079_v23 }
 0x21e   : > { %v1112_v0 = vmul.f32 %v1077_v47, %v1993_v51 }
 0x21f   : > { %v1081_v31 = vmul.f32 0.5, %v1080_v27  ;;  %v1011_v32 = vpop.xlane.xlu0 %1010 }
 0x220   : > { %v1124_v20 = vmul.f32 %v2024_v33, %v1112_v0  ;;  %v1019_v34 = vmul.f32 %v1011_v32, %v1961_v62 }
 0x221   : > { %v1082_v1 = vsub.f32 1.5, %v1081_v31 }
 0x222   : > { %v1520_v3 = vpop.eup %1519  ;;  %v1136_v8 = vadd.f32 %v2029_v44, %v1124_v20  ;;  %v1027_v9 = vadd.f32 1e-05, %v1019_v34 }
 0x223   : > { %v1083_v37 = vmul.f32 %v1518_v28, %v1082_v1  ;;  %v1089_v36 = vmul.f32 %v1520_v3, %v1026_v58  ;;  %vm1095_vm6 = vweird.f32 %v1520_v3 }
 0x224   : > { %1144 = vst.msk [vmem:[%s2037_s8 + $0x20] sm:$0xff] %vm932_vm1, %v1136_v8  ;;  %1521 = vrsqrt.f32 %v1027_v9  ;;  %vm1096_vm8 = vmor %vm1094_vm7, %vm1095_vm6  ;;  %vm1104_vm10 = vweird.f32 %v1027_v9 }
 0x225   : > { %v1087_v51 = vsel %vm1086_vm5, %v1518_v28, %v1083_v37  ;;  %v1090_v4 = vmul.f32 %v1520_v3, %v1089_v36 }
 0x226   : > { %v1113_v39 = vmul.f32 %v1087_v51, %v2000_v45 }
 0x227   : > { %v1091_v42 = vmul.f32 0.5, %v1090_v4 }
 0x228   : > { %v1125_v62 = vmul.f32 %v2024_v33, %v1113_v39 }
 0x229   : > { %v1092_v12 = vsub.f32 1.5, %v1091_v42 }
 0x22a   : > { %v1522_v48 = vpop.eup %1521  ;;  %v1137_v35 = vadd.f32 %v2029_v44, %v1125_v62 }
 0x22b   : > { %v1093_v43 = vmul.f32 %v1520_v3, %v1092_v12  ;;  %v1099_v10 = vmul.f32 %v1522_v48, %v1027_v9  ;;  %vm1105_vm9 = vweird.f32 %v1522_v48 }
 0x22c   : > { %1145 = vst.msk [vmem:[%s2037_s8 + $0x28] sm:$0xff] %vm932_vm1, %v1137_v35  ;;  %vm1106_vm11 = vmor %vm1104_vm10, %vm1105_vm9 }
 0x22d   : > { %v1097_v2 = vsel %vm1096_vm8, %v1520_v3, %v1093_v43  ;;  %v1100_v59 = vmul.f32 %v1522_v48, %v1099_v10 }
 0x22e   : > { %v1114_v45 = vmul.f32 %v1097_v2, %v2006_v54 }
 0x22f   : > { %v1101_v13 = vmul.f32 0.5, %v1100_v59 }
 0x230   : > { %v1126_v49 = vmul.f32 %v2024_v33, %v1114_v45 }
 0x231   : > { %v1102_v41 = vsub.f32 1.5, %v1101_v13 }
 0x232   : > { %v1138_v11 = vadd.f32 %v2029_v44, %v1126_v49 }
 0x233   : > { %v1103_v29 = vmul.f32 %v1522_v48, %v1102_v41 }
 0x234   : > { %1146 = vst.msk [vmem:[%s2037_s8 + $0x30] sm:$0xff] %vm932_vm1, %v1138_v11 }
 0x235   : > { %v1107_v54 = vsel %vm1106_vm11, %v1522_v48, %v1103_v29 }
 0x236   : > { %v1115_v52 = vmul.f32 %v1107_v54, %v2012_v21 }
 0x238   : > { %v1127_v53 = vmul.f32 %v2024_v33, %v1115_v52 }
 0x23a   : > { %v1139_v55 = vadd.f32 %v2029_v44, %v1127_v53 }
 0x23c   : > { %1147 = vst.msk [vmem:[%s2037_s8 + $0x38] sm:$0xff] %vm932_vm1, %v1139_v55 }
 0x23d   : > { %1550 = shalt.err (!%p1547_p3)
}
 0x23e   : > { %s1588_s16 = smov 128   ;;  %s1589_s6 = smov 8  }
 0x23f   : > { %1460 = dma.vmem_to_hbm [thread:$0]  (%p1658_p5), %s1162_s22, 1024, %s1164_s12, %s1149_s13, %s1588_s16, %s1588_s16, %s1589_s6  }
 0x240 PF: > { %p1466_p4 = scmp.ge.s32.totalorder %s1585_s21, 2  ;;  %s1178_s8 = sand.u32 1, %s1573_s18  }
 0x241   : > { %s1179_s7 = scalar_lea.sflag [#allocation3], %s1178_s8 }
 0x242   : > { %p1463_p7 = pnand %p1466_p4, %p1662_p6 }
 0x244   : > { %p1464_p8 = pneg %p1463_p7 }
 0x246   : > { %1568 = dma.done.wait (%p1464_p8), %s1179_s7, 1024  }
 0x247   : > { %1570 = vsyncadd (%p1464_p8), %s1179_s7, 4294966272  ;;  %p15_p9 = scmp.ge.s32.totalorder %s1645_s24, 4   ;;  %s2122_s18 = smov %s1577_s19 }
 0x248   : > { %s2123_s19 = smov %s1581_s20  ;;  %s2124_s20 = smov %s1656_s27 }
 0x249   : > { %s2125_s21 = smov %s1645_s24  ;;  %17 = sbr.rel (!%p15_p9) target bundleno = 3 (0x3), region = 88 }
 0x24e   :  { %1185 = vsyncpa [#allocation3], 1 }
 0x24f   :  { %1187 = vsyncpa [#allocation3 + $0x1], 1 }

// kernel: _lambda_.2
= control target key start
LH: loop header
LB: loop body
LE: loop exit
PB: predicated region body
PF: predicated region fallthrough
CT: control target
= control target key end

     0   :  { %s3877_s27 = smov 0   ;;  %s6475_s0 = inlined_call_operand.vmem [shape: f32[2,256,32], index: 0, kind: input, shape index: {}]   ;;  %s6476_s1 = inlined_call_operand.vmem [shape: f32[2,18,18,32], index: 1, kind: input, shape index: {}]   ;;  %s6477_s2 = inlined_call_operand.vmem [shape: f32[2,256,32], index: 2, kind: input, shape index: {}]   ;;  %s6478_s3 = inlined_call_operand.vmem [shape: f32[9,32], index: 3, kind: input, shape index: {}]   ;;  %s6479_s4 = inlined_call_operand.vmem [shape: f32[1,32], index: 4, kind: input, shape index: {}]   ;;  %s6480_s5 = inlined_call_operand.vmem [shape: bf16[32,128], index: 5, kind: input, shape index: {}]   ;;  %s6481_s6 = inlined_call_operand.vmem [shape: bf16[32,128], index: 6, kind: input, shape index: {}]   ;;  %s6482_s7 = inlined_call_operand.vmem [shape: f32[1,128], index: 7, kind: input, shape index: {}]   ;;  %s6483_s8 = inlined_call_operand.vmem [shape: f32[2,256,64], index: 8, kind: output, shape index: {}]  }
   0x1 LB: > { %s3251_s28 = sadd.s32 4294967295, %s3827_s27   ;;  %p3255_p0 = scmp.ge.s32.totalorder %s3827_s27, 1  ;;  %s3827_s27 = sphi %s3877_s27, %s18_s27  }
   0x2   : > { %p282_p1 = scmp.lt.s32.totalorder %s3827_s27, 3 }
   0x4   : > { %p283_p2 = pnand %p3255_p0, %p282_p1 }
   0x6   : > { %286 = sbr.rel (%p283_p2) target bundleno = 843 (0x34b), region = 52 }
   0xb   : > { %v3541_v0 = vld [vmem:[%s6480_s5 + $0x8] sm:$0xff]  ;;  %p326_p3 = scmp.lt.s32.totalorder %s3251_s28, 1  ;;  %v347_v2 = vld [vmem:[%s6478_s3] sm:$0xff]  ;;  %vm1312_vm0 = vcmask 261120   ;;  %s3829_s14 = smov 64  }
   0xc   : > { %v3543_v1 = vld [vmem:[%s6481_s6 + $0x8] sm:$0xff]  ;;  %3546 = vmatpush.bf16.msra.mxu3 %v3541_v0  ;;  %v3540_v3 = vld [vmem:[%s6480_s5] sm:$0xff]  ;;  %1516 = vmatpush.bf16.msra.mxu1 %v3541_v0  ;;  %v3902_v5 = vperm.slane %v347_v2, 0  ;;  %v3904_v6 = vperm.slane %v347_v2, 1  ;;  %v3912_v7 = vperm.slane %v347_v2, 2  ;;  %v3921_v10 = vperm.slane %v347_v2, 3 }
   0xd   : > { %s6583_s28 = smov (!%p326_p3, %s3251_s28), 1  ;;  %1367 = vmatpush.bf16.msra.mxu0 %v3543_v1  ;;  %v3542_v4 = vld [vmem:[%s6481_s6] sm:$0xff]  ;;  %3544 = vmatpush.bf16.msra.mxu2 %v3543_v1  ;;  %v3923_v11 = vperm.slane %v347_v2, 4  ;;  %v3928_v16 = vperm.slane %v347_v2, 5  ;;  %v3930_v17 = vperm.slane %v347_v2, 6  ;;  %v3943_v25 = vperm.slane %v347_v2, 7 }
   0xe   : > { %s3900_s17 = sshll.u32 %s6583_s28, 8  ;;  %s3548_s18 = smul.u32 432, %s6583_s28  ;;  %v3935_v18 = vld [vmem:[%s6478_s3 + $0x8] ss:$0 sm:$0xff] }
   0xf   : > { %s3910_s21 = scalar_lea.vmem %s6475_s0, %s3900_s17  ;;  %s3830_s15 = smov 96  }
  0x10   : > { %3547 = vmatpush.bf16.msra.mxu3 %v3540_v3  ;;  %s3917_s24 = scalar_lea.vmem %s6476_s1, %s3548_s18  ;;  %v1244_v8 = vld [vmem:[%s3910_s21 + $0x80] sm:$0xff]  ;;  %v1245_v9 = vld [vmem:[%s3910_s21 + $0x88] sm:$0xff]  ;;  %1517 = vmatpush.bf16.msra.mxu1 %v3540_v3  ;;  %s5993_s19 = scalar_lea.vmem %s6477_s2, %s3900_s17 }
  0x11   : > { %1368 = vmatpush.bf16.msra.mxu0 %v3542_v4  ;;  %v1268_v12 = vpack.c.bf16 %v1245_v9, %v1244_v8  ;;  %3545 = vmatpush.bf16.msra.mxu2 %v3542_v4  ;;  %v349_v13 = vld [vmem:[%s3917_s24] sm:$0xff]  ;;  %v350_v14 = vld [vmem:[%s3917_s24 + $0x8] sm:$0xff]  ;;  %v3950_v29 = vld [vmem:[%s3917_s24 + $0x18] sm:$0xff]  ;;  %s3831_s20 = smov 32   ;;  %s6331_s23 = scalar_lea.vmem %s6483_s8, %s3900_s17 }
  0x12   : > { %v414_v15 = vld [vmem:[%s3917_s24 + $0x1] sm:$0xff]  ;;  %v382_v19 = vmul.f32 %v3902_v5, %v349_v13  ;;  %v383_v20 = vmul.f32 %v3902_v5, %v350_v14  ;;  %v415_v21 = vld [vmem:[%s3917_s24 + $0x9] sm:$0xff]  ;;  %v3956_v31 = vld [vmem:[%s3917_s24 + $0x19] sm:$0xff]  ;;  %v642_v33 = vmul.f32 %v3950_v29, %v3921_v10 }
  0x13   : > { %v447_v22 = vmul.f32 %v3904_v6, %v414_v15  ;;  %v511_v23 = vld [vmem:[%s3917_s24 + $0x2] sm:$0xff]  ;;  %v512_v24 = vld [vmem:[%s3917_s24 + $0xa] sm:$0xff]  ;;  %3495 = vmatmul.msk.bf16.vlgmr.msra.gmra.mxu3 %vm1312_vm0, %v1268_v12  ;;  %v448_v26 = vmul.f32 %v3904_v6, %v415_v21  ;;  %v739_v36 = vmul.f32 %v3956_v31, %v3923_v11  ;;  %v3968_v37 = vld [vmem:[%s3917_s24 + $0x1a] sm:$0xff] }
  0x14   : > { %v544_v27 = vmul.f32 %v3912_v7, %v511_v23  ;;  %v545_v28 = vmul.f32 %v3912_v7, %v512_v24  ;;  %v3953_v30 = vld [vmem:[%s3917_s24 + $0x20] sm:$0xff]  ;;  %v836_v41 = vmul.f32 %v3968_v37, %v3928_v16  ;;  %v3980_v43 = vld [vmem:[%s3917_s24 + $0x30] sm:$0xff]  ;;  %v3983_v44 = vld [vmem:[%s3917_s24 + $0x38] sm:$0xff] }
  0x15   : > { %v479_v32 = vadd.f32 %v447_v22, %v382_v19  ;;  %v643_v34 = vmul.f32 %v3953_v30, %v3921_v10  ;;  %v3963_v35 = vld [vmem:[%s3917_s24 + $0x21] sm:$0xff]  ;;  %v480_v39 = vadd.f32 %v448_v26, %v383_v20  ;;  %v3986_v45 = vld [vmem:[%s3917_s24 + $0x31] sm:$0xff]  ;;  %v934_v47 = vmul.f32 %v3980_v43, %v3930_v17  ;;  %v3993_v49 = vld [vmem:[%s3917_s24 + $0x39] sm:$0xff] }
  0x16   : > { %v3971_v38 = vld [vmem:[%s3917_s24 + $0x22] sm:$0xff]  ;;  %v740_v40 = vmul.f32 %v3963_v35, %v3923_v11  ;;  %v935_v48 = vmul.f32 %v3983_v44, %v3930_v17  ;;  %v1031_v50 = vmul.f32 %v3986_v45, %v3943_v25  ;;  %v3998_v51 = vld [vmem:[%s3917_s24 + $0x32] sm:$0xff]  ;;  %v4001_v52 = vld [vmem:[%s3917_s24 + $0x3a] sm:$0xff]  ;;  %v1032_v54 = vmul.f32 %v3993_v49, %v3943_v25 }
  0x17   : > { %v837_v42 = vmul.f32 %v3971_v38, %v3928_v16  ;;  %v576_v46 = vadd.f32 %v544_v27, %v479_v32  ;;  %v577_v53 = vadd.f32 %v545_v28, %v480_v39  ;;  %v4007_v55 = vmul.f32 %v3935_v18, %v3998_v51  ;;  %v365_v57 = vld [vmem:[%s3917_s24 + $0xc0] sm:$0xff]  ;;  %v366_v58 = vld [vmem:[%s3917_s24 + $0xc8] sm:$0xff]  ;;  %v4026_v12 = vld [vmem:[%s3917_s24 + $0xd8] sm:$0xff] }
  0x18   : > { %v4011_v56 = vmul.f32 %v3935_v18, %v4001_v52  ;;  %v430_v59 = vld [vmem:[%s3917_s24 + $0xc1] sm:$0xff]  ;;  %v398_v61 = vmul.f32 %v3902_v5, %v365_v57  ;;  %v399_v62 = vmul.f32 %v3902_v5, %v366_v58  ;;  %v431_v63 = vld [vmem:[%s3917_s24 + $0xc9] sm:$0xff]  ;;  %v4032_v14 = vld [vmem:[%s3917_s24 + $0xd9] sm:$0xff]  ;;  %v658_v20 = vmul.f32 %v4026_v12, %v3921_v10 }
  0x19   : > { %v674_v60 = vadd.f32 %v642_v33, %v576_v46  ;;  %v463_v0 = vmul.f32 %v3904_v6, %v430_v59  ;;  %v527_v1 = vld [vmem:[%s3917_s24 + $0xc2] sm:$0xff]  ;;  %v528_v2 = vld [vmem:[%s3917_s24 + $0xca] sm:$0xff]  ;;  %v675_v3 = vadd.f32 %v643_v34, %v577_v53  ;;  %v464_v4 = vmul.f32 %v3904_v6, %v431_v63  ;;  %v4042_v23 = vld [vmem:[%s3917_s24 + $0xda] sm:$0xff] }
  0x1a   : > { %v560_v8 = vmul.f32 %v3912_v7, %v527_v1  ;;  %v561_v9 = vmul.f32 %v3912_v7, %v528_v2  ;;  %v4029_v13 = vld [vmem:[%s3917_s24 + $0xe0] sm:$0xff]  ;;  %v755_v28 = vmul.f32 %v4032_v14, %v3923_v11  ;;  %v4052_v33 = vld [vmem:[%s3917_s24 + $0xf0] sm:$0xff]  ;;  %v4055_v34 = vld [vmem:[%s3917_s24 + $0xf8] sm:$0xff] }
  0x1b   : > { %v771_v15 = vadd.f32 %v739_v36, %v674_v60  ;;  %v495_v19 = vadd.f32 %v463_v0, %v398_v61  ;;  %v659_v21 = vmul.f32 %v4029_v13, %v3921_v10  ;;  %v4039_v22 = vld [vmem:[%s3917_s24 + $0xe1] sm:$0xff]  ;;  %v772_v26 = vadd.f32 %v740_v40, %v675_v3  ;;  %6488 = vst [vmem:[#allocation2_spill] sm:$0xff] %v4055_v34  ;;  %v4058_v36 = vld [vmem:[%s3917_s24 + $0xf1] sm:$0xff]  ;;  %v4066_v58 = vld [vmem:[%s3917_s24 + $0xf9] sm:$0xff] }
  0x1c   : > { %v4045_v24 = vld [vmem:[%s3917_s24 + $0xe2] sm:$0xff]  ;;  %v496_v27 = vadd.f32 %v464_v4, %v399_v62  ;;  %v756_v32 = vmul.f32 %v4039_v22, %v3923_v11  ;;  %6489 = vst [vmem:[#allocation3_spill] sm:$0xff] %v4058_v36  ;;  %v852_v40 = vmul.f32 %v4042_v23, %v3928_v16  ;;  %v4069_v59 = vld [vmem:[%s3917_s24 + $0xf2] sm:$0xff]  ;;  %v4072_v60 = vld [vmem:[%s3917_s24 + $0xfa] sm:$0xff]  ;;  %v950_v63 = vmul.f32 %v4052_v33, %v3930_v17 }
  0x1d   : > { %v1228_v39 = vld [vmem:[%s3910_s21] sm:$0xff]  ;;  %v868_v46 = vadd.f32 %v836_v41, %v771_v15  ;;  %v592_v53 = vadd.f32 %v560_v8, %v495_v19  ;;  %v853_v57 = vmul.f32 %v4045_v24, %v3928_v16  ;;  %v869_v61 = vadd.f32 %v837_v42, %v772_v26  ;;  %v1229_v0 = vld [vmem:[%s3910_s21 + $0x8] sm:$0xff]  ;;  %v1246_v1 = vld [vmem:[%s3910_s21 + $0x90] sm:$0xff] }
  0x1e   : > { %v593_v62 = vadd.f32 %v561_v9, %v496_v27  ;;  %v951_v41 = vmul.f32 %v4055_v34, %v3930_v17  ;;  %v1247_v2 = vld [vmem:[%s3910_s21 + $0x98] sm:$0xff]  ;;  %v1047_v8 = vmul.f32 %v4058_v36, %v3943_v25  ;;  %v1048_v15 = vmul.f32 %v4066_v58, %v3943_v25 }
  0x1f   : > { %v966_v3 = vadd.f32 %v934_v47, %v868_v46  ;;  %v690_v4 = vadd.f32 %v658_v20, %v592_v53  ;;  %v967_v19 = vadd.f32 %v935_v48, %v869_v61  ;;  %v1144_v9 = vmul.f32 %v3935_v18, %v4069_v59  ;;  %v4092_v47 = vld [vmem:[%s6479_s4] ss:$0 sm:$0xff] }
  0x20   : > { %v691_v42 = vadd.f32 %v659_v21, %v593_v62  ;;  %v1145_v26 = vmul.f32 %v3935_v18, %v4072_v60  ;;  %v1260_v46 = vpack.c.bf16 %v1229_v0, %v1228_v39  ;;  %v1269_v53 = vpack.c.bf16 %v1247_v2, %v1246_v1  ;;  %v4119_v0 = vld [vmem:[%s3917_s24 + $0x48] sm:$0xff]  ;;  %v4122_v1 = vld [vmem:[%s3917_s24 + $0x50] sm:$0xff] }
  0x21   : > { %v1063_v27 = vadd.f32 %v1031_v50, %v966_v3  ;;  %v787_v20 = vadd.f32 %v755_v28, %v690_v4  ;;  %v1064_v36 = vadd.f32 %v1032_v54, %v967_v19  ;;  %v384_v48 = vmul.f32 %v3950_v29, %v3902_v5  ;;  %v4125_v2 = vld [vmem:[%s3917_s24 + $0x49] sm:$0xff]  ;;  %v4132_v19 = vld [vmem:[%s3917_s24 + $0x51] sm:$0xff] }
  0x22   : > { %v788_v34 = vadd.f32 %v756_v32, %v691_v42  ;;  %v385_v21 = vmul.f32 %v3953_v30, %v3902_v5  ;;  %3487 = vmatmul.msk.bf16.vlgmr.msra.gmra.mxu1 %vm1312_vm0, %v1260_v46  ;;  %v449_v50 = vmul.f32 %v3956_v31, %v3904_v6  ;;  %v450_v28 = vmul.f32 %v3963_v35, %v3904_v6 }
  0x23   : > { %v1160_v61 = vadd.f32 %v4007_v55, %v1063_v27  ;;  %v884_v62 = vadd.f32 %v852_v40, %v787_v20  ;;  %v1161_v54 = vadd.f32 %v4011_v56, %v1064_v36  ;;  %3496 = vmatmul.msk.bf16.gmra.mxu3 %vm1312_vm0, %v1269_v53  ;;  %v546_v29 = vmul.f32 %v3968_v37, %v3912_v7  ;;  %v4137_v53 = vld [vmem:[%s3917_s24 + $0x4a] sm:$0xff] }
  0x24   : > { %v885_v32 = vadd.f32 %v853_v57, %v788_v34  ;;  %v547_v30 = vmul.f32 %v3971_v38, %v3912_v7  ;;  %v481_v39 = vadd.f32 %v449_v50, %v384_v48  ;;  %v482_v40 = vadd.f32 %v450_v28, %v385_v21  ;;  %v4140_v48 = vld [vmem:[%s3917_s24 + $0x52] sm:$0xff] }
  0x25   : > { %v1196_v55 = vadd.f32 %v4092_v47, %v1160_v61  ;;  %v982_v31 = vadd.f32 %v950_v63, %v884_v62  ;;  %v1197_v35 = vadd.f32 %v4092_v47, %v1161_v54  ;;  %v644_v34 = vmul.f32 %v3980_v43, %v3921_v10 }
  0x26   : > { %v983_v56 = vadd.f32 %v951_v41, %v885_v32  ;;  %v645_v36 = vmul.f32 %v3983_v44, %v3921_v10  ;;  %v578_v57 = vadd.f32 %v546_v29, %v481_v39  ;;  %v579_v38 = vadd.f32 %v547_v30, %v482_v40 }
  0x27   : > { %v1079_v37 = vadd.f32 %v1047_v8, %v982_v31  ;;  %v741_v63 = vmul.f32 %v3986_v45, %v3923_v11  ;;  %v1280_v41 = vpack.c.bf16 %v1197_v35, %v1196_v55  ;;  %v742_v4 = vmul.f32 %v3993_v49, %v3923_v11 }
  0x28   : > { %v1080_v3 = vadd.f32 %v1048_v15, %v983_v56  ;;  %v838_v8 = vmul.f32 %v3998_v51, %v3928_v16  ;;  %v676_v27 = vadd.f32 %v644_v34, %v578_v57  ;;  %v677_v20 = vadd.f32 %v645_v36, %v579_v38  ;;  %v4175_v38 = vld [vmem:[%s3917_s24 + $0x110] sm:$0xff] }
  0x29   : > { %v1176_v42 = vadd.f32 %v1144_v9, %v1079_v37  ;;  %v839_v46 = vmul.f32 %v4001_v52, %v3928_v16  ;;  %3463 = vmatmul.msk.bf16.vlgmr.msra.gmra.mxu0 %vm1312_vm0, %v1280_v41  ;;  %v936_v21 = vmul.f32 %v4119_v0, %v3930_v17  ;;  %v937_v61 = vmul.f32 %v4122_v1, %v3930_v17 }
  0x2a   : > { %v1177_v15 = vadd.f32 %v1145_v26, %v1080_v3  ;;  %v1033_v9 = vmul.f32 %v4125_v2, %v3943_v25  ;;  %v773_v50 = vadd.f32 %v741_v63, %v676_v27  ;;  %v774_v28 = vadd.f32 %v742_v4, %v677_v20  ;;  %v6491_v63 = vld [vmem:[#allocation3_spill] sm:$0xff] }
  0x2b   : > { %v1212_v62 = vadd.f32 %v4092_v47, %v1176_v42  ;;  %v1034_v54 = vmul.f32 %v4132_v19, %v3943_v25  ;;  %v1130_v26 = vmul.f32 %v3935_v18, %v4137_v53  ;;  %v1131_v29 = vmul.f32 %v3935_v18, %v4140_v48  ;;  %v4185_v4 = vld [vmem:[%s3917_s24 + $0x109] sm:$0xff] }
  0x2c   : > { %v1213_v32 = vadd.f32 %v4092_v47, %v1177_v15  ;;  %v400_v30 = vmul.f32 %v4026_v12, %v3902_v5  ;;  %v870_v55 = vadd.f32 %v838_v8, %v773_v50  ;;  %v871_v31 = vadd.f32 %v839_v46, %v774_v28  ;;  %v4190_v46 = vld [vmem:[%s3917_s24 + $0x111] sm:$0xff] }
  0x2d   : > { %v401_v39 = vmul.f32 %v4029_v13, %v3902_v5  ;;  %v465_v40 = vmul.f32 %v4032_v14, %v3904_v6  ;;  %v466_v56 = vmul.f32 %v4039_v22, %v3904_v6  ;;  %v562_v34 = vmul.f32 %v4042_v23, %v3912_v7  ;;  %v4172_v14 = vld [vmem:[%s3917_s24 + $0x108] sm:$0xff]  ;;  %v6490_v23 = vld [vmem:[#allocation2_spill] sm:$0xff]  ;;  %v1230_v28 = vld [vmem:[%s3910_s21 + $0x10] sm:$0xff] }
  0x2e   : > { %v1288_v35 = vpack.c.bf16 %v1213_v32, %v1212_v62  ;;  %v563_v36 = vmul.f32 %v4045_v24, %v3912_v7  ;;  %v968_v12 = vadd.f32 %v936_v21, %v870_v55  ;;  %v969_v37 = vadd.f32 %v937_v61, %v871_v31  ;;  %v4193_v15 = vld [vmem:[%s3917_s24 + $0x10a] sm:$0xff]  ;;  %v4196_v21 = vld [vmem:[%s3917_s24 + $0x112] sm:$0xff] }
  0x2f   : > { %v497_v57 = vadd.f32 %v465_v40, %v400_v30  ;;  %v660_v13 = vmul.f32 %v4052_v33, %v3921_v10  ;;  %v498_v22 = vadd.f32 %v466_v56, %v401_v39  ;;  %v661_v24 = vmul.f32 %v6490_v23, %v3921_v10  ;;  %v1248_v39 = vld [vmem:[%s3910_s21 + $0xa0] sm:$0xff]  ;;  %v1249_v40 = vld [vmem:[%s3910_s21 + $0xa8] sm:$0xff] }
  0x30   : > { %3471 = vmatmul.msk.bf16.vlgmr.msra.gmra.mxu2 %vm1312_vm0, %v1288_v35  ;;  %v757_v41 = vmul.f32 %v6491_v63, %v3923_v11  ;;  %v758_v3 = vmul.f32 %v4066_v58, %v3923_v11  ;;  %v1065_v8 = vadd.f32 %v1033_v9, %v968_v12  ;;  %v1066_v42 = vadd.f32 %v1034_v54, %v969_v37  ;;  %v1231_v54 = vld [vmem:[%s3910_s21 + $0x18] sm:$0xff] }
  0x31   : > { %v594_v27 = vadd.f32 %v562_v34, %v497_v57  ;;  %v854_v20 = vmul.f32 %v4069_v59, %v3928_v16  ;;  %v595_v61 = vadd.f32 %v563_v36, %v498_v22  ;;  %v855_v62 = vmul.f32 %v4072_v60, %v3928_v16 }
  0x32   : > { %v952_v9 = vmul.f32 %v4172_v14, %v3930_v17  ;;  %v953_v50 = vmul.f32 %v4175_v38, %v3930_v17  ;;  %v1162_v32 = vadd.f32 %v1130_v26, %v1065_v8  ;;  %v1163_v30 = vadd.f32 %v1131_v29, %v1066_v42 }
  0x33   : > { %v692_v55 = vadd.f32 %v660_v13, %v594_v27  ;;  %v1049_v31 = vmul.f32 %v4185_v4, %v3943_v25  ;;  %v693_v35 = vadd.f32 %v661_v24, %v595_v61  ;;  %v1050_v56 = vmul.f32 %v4190_v46, %v3943_v25 }
  0x34   : > { %v1146_v34 = vmul.f32 %v3935_v18, %v4193_v15  ;;  %v1147_v36 = vmul.f32 %v3935_v18, %v4196_v21  ;;  %v1198_v12 = vadd.f32 %v4092_v47, %v1162_v32  ;;  %v1199_v26 = vadd.f32 %v4092_v47, %v1163_v30  ;;  %v4243_v32 = vld [vmem:[%s3917_s24 + $0x61] sm:$0xff] }
  0x35   : > { %v789_v29 = vadd.f32 %v757_v41, %v692_v55  ;;  %v1261_v37 = vpack.c.bf16 %v1231_v54, %v1230_v28  ;;  %v790_v57 = vadd.f32 %v758_v3, %v693_v35  ;;  %v1270_v13 = vpack.c.bf16 %v1249_v40, %v1248_v39  ;;  %v4240_v54 = vld [vmem:[%s3917_s24 + $0x68] sm:$0xff] }
  0x36   : > { %v386_v22 = vmul.f32 %v3980_v43, %v3902_v5  ;;  %v387_v24 = vmul.f32 %v3983_v44, %v3902_v5  ;;  %v1281_v8 = vpack.c.bf16 %v1199_v26, %v1198_v12  ;;  %v451_v27 = vmul.f32 %v3986_v45, %v3904_v6  ;;  %v4253_v55 = vld [vmem:[%s3917_s24 + $0x69] sm:$0xff] }
  0x37   : > { %v886_v42 = vadd.f32 %v854_v20, %v789_v29  ;;  %3488 = vmatmul.msk.bf16.gmra.mxu1 %vm1312_vm0, %v1261_v37  ;;  %v452_v41 = vmul.f32 %v3993_v49, %v3904_v6  ;;  %v887_v3 = vadd.f32 %v855_v62, %v790_v57  ;;  %3497 = vmatmul.msk.bf16.gmra.mxu3 %vm1312_vm0, %v1270_v13  ;;  %v4237_v62 = vld [vmem:[%s3917_s24 + $0x60] sm:$0xff] }
  0x38   : > { %v548_v43 = vmul.f32 %v3998_v51, %v3912_v7  ;;  %v549_v44 = vmul.f32 %v4001_v52, %v3912_v7  ;;  %v646_v20 = vmul.f32 %v4119_v0, %v3921_v10  ;;  %v483_v28 = vadd.f32 %v451_v27, %v386_v22  ;;  %v4258_v26 = vld [vmem:[%s3917_s24 + $0x62] sm:$0xff] }
  0x39   : > { %v984_v61 = vadd.f32 %v952_v9, %v886_v42  ;;  %v484_v45 = vadd.f32 %v452_v41, %v387_v24  ;;  %v647_v49 = vmul.f32 %v4122_v1, %v3921_v10  ;;  %3464 = vmatmul.msk.bf16.gmra.mxu0 %vm1312_vm0, %v1281_v8  ;;  %v985_v51 = vadd.f32 %v953_v50, %v887_v3  ;;  %v4261_v50 = vld [vmem:[%s3917_s24 + $0x6a] sm:$0xff] }
  0x3a   : > { %v743_v52 = vmul.f32 %v4125_v2, %v3923_v11  ;;  %v744_v9 = vmul.f32 %v4132_v19, %v3923_v11  ;;  %v840_v30 = vmul.f32 %v4137_v53, %v3928_v16  ;;  %v580_v40 = vadd.f32 %v548_v43, %v483_v28 }
  0x3b   : > { %v1081_v39 = vadd.f32 %v1049_v31, %v984_v61  ;;  %v581_v35 = vadd.f32 %v549_v44, %v484_v45  ;;  %v841_v12 = vmul.f32 %v4140_v48, %v3928_v16  ;;  %v1082_v29 = vadd.f32 %v1050_v56, %v985_v51 }
  0x3c   : > { %v938_v37 = vmul.f32 %v4237_v62, %v3930_v17  ;;  %v939_v57 = vmul.f32 %v4240_v54, %v3930_v17  ;;  %v1035_v13 = vmul.f32 %v4243_v32, %v3943_v25  ;;  %v678_v22 = vadd.f32 %v646_v20, %v580_v40 }
  0x3d   : > { %v1178_v31 = vadd.f32 %v1146_v34, %v1081_v39  ;;  %v679_v24 = vadd.f32 %v647_v49, %v581_v35  ;;  %v1036_v8 = vmul.f32 %v4253_v55, %v3943_v25  ;;  %v1179_v42 = vadd.f32 %v1147_v36, %v1082_v29  ;;  %v4304_v35 = vld [vmem:[%s3917_s24 + $0x121] sm:$0xff] }
  0x3e   : > { %v1132_v27 = vmul.f32 %v3935_v18, %v4258_v26  ;;  %v1133_v56 = vmul.f32 %v3935_v18, %v4261_v50  ;;  %v402_v41 = vmul.f32 %v4052_v33, %v3902_v5  ;;  %v775_v43 = vadd.f32 %v743_v52, %v678_v22  ;;  %v4315_v22 = vld [vmem:[%s3917_s24 + $0x122] sm:$0xff] }
  0x3f   : > { %v1214_v3 = vadd.f32 %v4092_v47, %v1178_v31  ;;  %v776_v34 = vadd.f32 %v744_v9, %v679_v24  ;;  %v403_v44 = vmul.f32 %v6490_v23, %v3902_v5  ;;  %v1215_v36 = vadd.f32 %v4092_v47, %v1179_v42  ;;  %v4294_v9 = vld [vmem:[%s3917_s24 + $0x120] sm:$0xff]  ;;  %v4318_v24 = vld [vmem:[%s3917_s24 + $0x12a] sm:$0xff] }
  0x40   : > { %v467_v20 = vmul.f32 %v6491_v63, %v3904_v6  ;;  %v468_v61 = vmul.f32 %v4066_v58, %v3904_v6  ;;  %v564_v33 = vmul.f32 %v4069_v59, %v3912_v7  ;;  %v872_v28 = vadd.f32 %v840_v30, %v775_v43  ;;  %v4297_v59 = vld [vmem:[%s3917_s24 + $0x128] sm:$0xff]  ;;  %v1232_v42 = vld [vmem:[%s3910_s21 + $0x20] sm:$0xff] }
  0x41   : > { %v873_v45 = vadd.f32 %v841_v12, %v776_v34  ;;  %v565_v49 = vmul.f32 %v4072_v60, %v3912_v7  ;;  %v662_v23 = vmul.f32 %v4172_v14, %v3921_v10  ;;  %v1289_v51 = vpack.c.bf16 %v1215_v36, %v1214_v3  ;;  %v4307_v12 = vld [vmem:[%s3917_s24 + $0x129] sm:$0xff] }
  0x42   : > { %v499_v52 = vadd.f32 %v467_v20, %v402_v41  ;;  %v500_v63 = vadd.f32 %v468_v61, %v403_v44  ;;  %v663_v58 = vmul.f32 %v4175_v38, %v3921_v10  ;;  %v970_v30 = vadd.f32 %v938_v37, %v872_v28  ;;  %v1233_v44 = vld [vmem:[%s3910_s21 + $0x28] sm:$0xff]  ;;  %v1250_v36 = vld [vmem:[%s3910_s21 + $0xb0] sm:$0xff]  ;;  %v1251_v20 = vld [vmem:[%s3910_s21 + $0xb8] sm:$0xff] }
  0x43   : > { %v971_v39 = vadd.f32 %v939_v57, %v873_v45  ;;  %v759_v60 = vmul.f32 %v4185_v4, %v3923_v11  ;;  %v760_v40 = vmul.f32 %v4190_v46, %v3923_v11  ;;  %3472 = vmatmul.msk.bf16.gmra.mxu2 %vm1312_vm0, %v1289_v51  ;;  %v856_v37 = vmul.f32 %v4193_v15, %v3928_v16 }
  0x44   : > { %v596_v29 = vadd.f32 %v564_v33, %v499_v52  ;;  %v597_v31 = vadd.f32 %v565_v49, %v500_v63  ;;  %v857_v57 = vmul.f32 %v4196_v21, %v3928_v16  ;;  %v1067_v41 = vadd.f32 %v1035_v13, %v970_v30 }
  0x45   : > { %v1068_v3 = vadd.f32 %v1036_v8, %v971_v39  ;;  %v954_v43 = vmul.f32 %v4294_v9, %v3930_v17  ;;  %v955_v34 = vmul.f32 %v4297_v59, %v3930_v17  ;;  %v1051_v28 = vmul.f32 %v4304_v35, %v3943_v25 }
  0x46   : > { %v694_v61 = vadd.f32 %v662_v23, %v596_v29  ;;  %v695_v33 = vadd.f32 %v663_v58, %v597_v31  ;;  %v1052_v45 = vmul.f32 %v4307_v12, %v3943_v25  ;;  %v1164_v49 = vadd.f32 %v1132_v27, %v1067_v41 }
  0x47   : > { %v1165_v13 = vadd.f32 %v1133_v56, %v1068_v3  ;;  %v1148_v8 = vmul.f32 %v3935_v18, %v4315_v22  ;;  %v1149_v51 = vmul.f32 %v3935_v18, %v4318_v24  ;;  %v1262_v30 = vpack.c.bf16 %v1233_v44, %v1232_v42  ;;  %v4355_v3 = vld [vmem:[%s3917_s24 + $0x78] sm:$0xff]  ;;  %v4358_v44 = vld [vmem:[%s3917_s24 + $0x80] sm:$0xff] }
  0x48   : > { %v791_v52 = vadd.f32 %v759_v60, %v694_v61  ;;  %v792_v63 = vadd.f32 %v760_v40, %v695_v33  ;;  %v1271_v39 = vpack.c.bf16 %v1251_v20, %v1250_v36  ;;  %v1200_v23 = vadd.f32 %v4092_v47, %v1164_v49  ;;  %v4373_v49 = vld [vmem:[%s3917_s24 + $0x81] sm:$0xff] }
  0x49   : > { %v1201_v58 = vadd.f32 %v4092_v47, %v1165_v13  ;;  %v388_v29 = vmul.f32 %v4119_v0, %v3902_v5  ;;  %v389_v27 = vmul.f32 %v4122_v1, %v3902_v5  ;;  %3489 = vmatmul.msk.bf16.gmra.mxu1 %vm1312_vm0, %v1262_v30  ;;  %v453_v60 = vmul.f32 %v4125_v2, %v3904_v6  ;;  %v4376_v13 = vld [vmem:[%s3917_s24 + $0x7a] sm:$0xff] }
  0x4a   : > { %v888_v56 = vadd.f32 %v856_v37, %v791_v52  ;;  %v889_v31 = vadd.f32 %v857_v57, %v792_v63  ;;  %3498 = vmatmul.msk.bf16.gmra.mxu3 %vm1312_vm0, %v1271_v39  ;;  %v454_v42 = vmul.f32 %v4132_v19, %v3904_v6  ;;  %v550_v0 = vmul.f32 %v4137_v53, %v3912_v7  ;;  %v4379_v52 = vld [vmem:[%s3917_s24 + $0x82] sm:$0xff] }
  0x4b   : > { %v1282_v40 = vpack.c.bf16 %v1201_v58, %v1200_v23  ;;  %v551_v1 = vmul.f32 %v4140_v48, %v3912_v7  ;;  %v485_v41 = vadd.f32 %v453_v60, %v388_v29  ;;  %v648_v2 = vmul.f32 %v4237_v62, %v3921_v10 }
  0x4c   : > { %v986_v37 = vadd.f32 %v954_v43, %v888_v56  ;;  %v987_v57 = vadd.f32 %v955_v34, %v889_v31  ;;  %v486_v19 = vadd.f32 %v454_v42, %v389_v27  ;;  %v649_v53 = vmul.f32 %v4240_v54, %v3921_v10  ;;  %v4368_v34 = vld [vmem:[%s3917_s24 + $0x79] sm:$0xff] }
  0x4d   : > { %3465 = vmatmul.msk.bf16.gmra.mxu0 %vm1312_vm0, %v1282_v40  ;;  %v745_v48 = vmul.f32 %v4243_v32, %v3923_v11  ;;  %v746_v43 = vmul.f32 %v4253_v55, %v3923_v11  ;;  %v582_v61 = vadd.f32 %v550_v0, %v485_v41  ;;  %v842_v33 = vmul.f32 %v4258_v26, %v3928_v16 }
  0x4e   : > { %v1083_v36 = vadd.f32 %v1051_v28, %v986_v37  ;;  %v1084_v20 = vadd.f32 %v1052_v45, %v987_v57  ;;  %v583_v63 = vadd.f32 %v551_v1, %v486_v19  ;;  %v843_v30 = vmul.f32 %v4261_v50, %v3928_v16 }
  0x4f   : > { %v940_v39 = vmul.f32 %v4355_v3, %v3930_v17  ;;  %v941_v28 = vmul.f32 %v4358_v44, %v3930_v17  ;;  %v680_v58 = vadd.f32 %v648_v2, %v582_v61  ;;  %v1037_v29 = vmul.f32 %v4368_v34, %v3943_v25  ;;  %v4425_v61 = vld [vmem:[%s3917_s24 + $0x139] sm:$0xff] }
  0x50   : > { %v1180_v45 = vadd.f32 %v1148_v8, %v1083_v36  ;;  %v1181_v23 = vadd.f32 %v1149_v51, %v1084_v20  ;;  %v681_v27 = vadd.f32 %v649_v53, %v583_v63  ;;  %v1038_v56 = vmul.f32 %v4373_v49, %v3943_v25 }
  0x51   : > { %v1134_v31 = vmul.f32 %v3935_v18, %v4376_v13  ;;  %v1135_v60 = vmul.f32 %v3935_v18, %v4379_v52  ;;  %v777_v51 = vadd.f32 %v745_v48, %v680_v58  ;;  %v404_v42 = vmul.f32 %v4172_v14, %v3902_v5  ;;  %v4436_v58 = vld [vmem:[%s3917_s24 + $0x142] sm:$0xff] }
  0x52   : > { %v1216_v40 = vadd.f32 %v4092_v47, %v1180_v45  ;;  %v1217_v8 = vadd.f32 %v4092_v47, %v1181_v23  ;;  %v778_v0 = vadd.f32 %v746_v43, %v681_v27  ;;  %v405_v1 = vmul.f32 %v4175_v38, %v3902_v5  ;;  %v4412_v43 = vld [vmem:[%s3917_s24 + $0x138] sm:$0xff]  ;;  %v4430_v45 = vld [vmem:[%s3917_s24 + $0x141] sm:$0xff] }
  0x53   : > { %v469_v37 = vmul.f32 %v4185_v4, %v3904_v6  ;;  %v470_v57 = vmul.f32 %v4190_v46, %v3904_v6  ;;  %v874_v2 = vadd.f32 %v842_v33, %v777_v51  ;;  %v566_v19 = vmul.f32 %v4193_v15, %v3912_v7  ;;  %v4415_v46 = vld [vmem:[%s3917_s24 + $0x140] sm:$0xff]  ;;  %v1234_v51 = vld [vmem:[%s3910_s21 + $0x30] sm:$0xff] }
  0x54   : > { %v1290_v41 = vpack.c.bf16 %v1217_v8, %v1216_v40  ;;  %v567_v53 = vmul.f32 %v4196_v21, %v3912_v7  ;;  %v875_v14 = vadd.f32 %v843_v30, %v778_v0  ;;  %v664_v4 = vmul.f32 %v4294_v9, %v3921_v10  ;;  %v4433_v23 = vld [vmem:[%s3917_s24 + $0x13a] sm:$0xff] }
  0x55   : > { %v501_v48 = vadd.f32 %v469_v37, %v404_v42  ;;  %v502_v38 = vadd.f32 %v470_v57, %v405_v1  ;;  %v972_v36 = vadd.f32 %v940_v39, %v874_v2  ;;  %v665_v15 = vmul.f32 %v4297_v59, %v3921_v10  ;;  %v1235_v42 = vld [vmem:[%s3910_s21 + $0x38] sm:$0xff]  ;;  %v1253_v2 = vld [vmem:[%s3910_s21 + $0xc8] sm:$0xff] }
  0x56   : > { %3473 = vmatmul.msk.bf16.gmra.mxu2 %vm1312_vm0, %v1290_v41  ;;  %v761_v21 = vmul.f32 %v4304_v35, %v3923_v11  ;;  %v762_v20 = vmul.f32 %v4307_v12, %v3923_v11  ;;  %v973_v33 = vadd.f32 %v941_v28, %v875_v14  ;;  %v858_v39 = vmul.f32 %v4315_v22, %v3928_v16  ;;  %v1252_v41 = vld [vmem:[%s3910_s21 + $0xc0] sm:$0xff] }
  0x57   : > { %v598_v63 = vadd.f32 %v566_v19, %v501_v48  ;;  %v599_v30 = vadd.f32 %v567_v53, %v502_v38  ;;  %v1069_v27 = vadd.f32 %v1037_v29, %v972_v36  ;;  %v859_v40 = vmul.f32 %v4318_v24, %v3928_v16 }
  0x58   : > { %v956_v28 = vmul.f32 %v4412_v43, %v3930_v17  ;;  %v957_v8 = vmul.f32 %v4415_v46, %v3930_v17  ;;  %v1070_v0 = vadd.f32 %v1038_v56, %v973_v33  ;;  %v1053_v57 = vmul.f32 %v4425_v61, %v3943_v25 }
  0x59   : > { %v696_v1 = vadd.f32 %v664_v4, %v598_v63  ;;  %v697_v37 = vadd.f32 %v665_v15, %v599_v30  ;;  %v1166_v29 = vadd.f32 %v1134_v31, %v1069_v27  ;;  %v1054_v19 = vmul.f32 %v4430_v45, %v3943_v25 }
  0x5a   : > { %v1150_v53 = vmul.f32 %v3935_v18, %v4433_v23  ;;  %v1151_v14 = vmul.f32 %v3935_v18, %v4436_v58  ;;  %v1167_v48 = vadd.f32 %v1135_v60, %v1070_v0  ;;  %v1263_v4 = vpack.c.bf16 %v1235_v42, %v1234_v51  ;;  %v4475_v42 = vld [vmem:[%s3917_s24 + $0x90] sm:$0xff]  ;;  %v4478_v0 = vld [vmem:[%s3917_s24 + $0x98] sm:$0xff] }
  0x5b   : > { %v793_v38 = vadd.f32 %v761_v21, %v696_v1  ;;  %v794_v56 = vadd.f32 %v762_v20, %v697_v37  ;;  %v1202_v36 = vadd.f32 %v4092_v47, %v1166_v29  ;;  %v1272_v15 = vpack.c.bf16 %v1253_v2, %v1252_v41  ;;  %v4487_v37 = vld [vmem:[%s3917_s24 + $0x91] sm:$0xff]  ;;  %v4493_v29 = vld [vmem:[%s3917_s24 + $0x99] sm:$0xff] }
  0x5c   : > { %v390_v33 = vmul.f32 %v4237_v62, %v3902_v5  ;;  %v391_v31 = vmul.f32 %v4240_v54, %v3902_v5  ;;  %v1203_v63 = vadd.f32 %v4092_v47, %v1167_v48  ;;  %3490 = vmatmul.msk.bf16.gmra.mxu1 %vm1312_vm0, %v1263_v4  ;;  %v455_v60 = vmul.f32 %v4243_v32, %v3904_v6  ;;  %v4496_v48 = vld [vmem:[%s3917_s24 + $0x92] sm:$0xff] }
  0x5d   : > { %v890_v30 = vadd.f32 %v858_v39, %v793_v38  ;;  %v891_v27 = vadd.f32 %v859_v40, %v794_v56  ;;  %3499 = vmatmul.msk.bf16.gmra.mxu3 %vm1312_vm0, %v1272_v15  ;;  %v456_v62 = vmul.f32 %v4253_v55, %v3904_v6  ;;  %v552_v21 = vmul.f32 %v4258_v26, %v3912_v7  ;;  %v4499_v38 = vld [vmem:[%s3917_s24 + $0x9a] sm:$0xff] }
  0x5e   : > { %v553_v54 = vmul.f32 %v4261_v50, %v3912_v7  ;;  %v650_v20 = vmul.f32 %v4355_v3, %v3921_v10  ;;  %v1283_v39 = vpack.c.bf16 %v1203_v63, %v1202_v36  ;;  %v487_v51 = vadd.f32 %v455_v60, %v390_v33 }
  0x5f   : > { %v988_v40 = vadd.f32 %v956_v28, %v890_v30  ;;  %v989_v32 = vadd.f32 %v957_v8, %v891_v27  ;;  %v488_v55 = vadd.f32 %v456_v62, %v391_v31  ;;  %v651_v26 = vmul.f32 %v4358_v44, %v3921_v10 }
  0x60   : > { %v747_v50 = vmul.f32 %v4368_v34, %v3923_v11  ;;  %v748_v1 = vmul.f32 %v4373_v49, %v3923_v11  ;;  %3466 = vmatmul.msk.bf16.gmra.mxu0 %vm1312_vm0, %v1283_v39  ;;  %v584_v41 = vadd.f32 %v552_v21, %v487_v51  ;;  %v844_v2 = vmul.f32 %v4376_v13, %v3928_v16 }
  0x61   : > { %v1085_v28 = vadd.f32 %v1053_v57, %v988_v40  ;;  %v1086_v8 = vadd.f32 %v1054_v19, %v989_v32  ;;  %v585_v56 = vadd.f32 %v553_v54, %v488_v55  ;;  %v845_v4 = vmul.f32 %v4379_v52, %v3928_v16 }
  0x62   : > { %v942_v36 = vmul.f32 %v4475_v42, %v3930_v17  ;;  %v943_v57 = vmul.f32 %v4478_v0, %v3930_v17  ;;  %v682_v33 = vadd.f32 %v650_v20, %v584_v41  ;;  %v1039_v31 = vmul.f32 %v4487_v37, %v3943_v25  ;;  %v4545_v41 = vld [vmem:[%s3917_s24 + $0x151] sm:$0xff] }
  0x63   : > { %v1182_v19 = vadd.f32 %v1150_v53, %v1085_v28  ;;  %v1183_v15 = vadd.f32 %v1151_v14, %v1086_v8  ;;  %v683_v63 = vadd.f32 %v651_v26, %v585_v56  ;;  %v1040_v30 = vmul.f32 %v4493_v29, %v3943_v25 }
  0x64   : > { %v1136_v27 = vmul.f32 %v3935_v18, %v4496_v48  ;;  %v1137_v60 = vmul.f32 %v3935_v18, %v4499_v38  ;;  %v779_v14 = vadd.f32 %v747_v50, %v682_v33  ;;  %v406_v21 = vmul.f32 %v4294_v9, %v3902_v5  ;;  %v4556_v33 = vld [vmem:[%s3917_s24 + $0x15a] sm:$0xff] }
  0x65   : > { %v1218_v62 = vadd.f32 %v4092_v47, %v1182_v19  ;;  %v1219_v53 = vadd.f32 %v4092_v47, %v1183_v15  ;;  %v780_v54 = vadd.f32 %v748_v1, %v683_v63  ;;  %v407_v20 = vmul.f32 %v4297_v59, %v3902_v5  ;;  %v4532_v1 = vld [vmem:[%s3917_s24 + $0x150] sm:$0xff]  ;;  %v4550_v19 = vld [vmem:[%s3917_s24 + $0x159] sm:$0xff] }
  0x66   : > { %v471_v39 = vmul.f32 %v4304_v35, %v3904_v6  ;;  %v472_v40 = vmul.f32 %v4307_v12, %v3904_v6  ;;  %v876_v51 = vadd.f32 %v844_v2, %v779_v14  ;;  %v568_v55 = vmul.f32 %v4315_v22, %v3912_v7  ;;  %v4535_v12 = vld [vmem:[%s3917_s24 + $0x158] sm:$0xff]  ;;  %v1236_v14 = vld [vmem:[%s3910_s21 + $0x40] sm:$0xff] }
  0x67   : > { %v1291_v32 = vpack.c.bf16 %v1219_v53, %v1218_v62  ;;  %v569_v26 = vmul.f32 %v4318_v24, %v3912_v7  ;;  %v877_v9 = vadd.f32 %v845_v4, %v780_v54  ;;  %v666_v35 = vmul.f32 %v4412_v43, %v3921_v10  ;;  %v4553_v15 = vld [vmem:[%s3917_s24 + $0x152] sm:$0xff] }
  0x68   : > { %v503_v50 = vadd.f32 %v471_v39, %v406_v21  ;;  %v504_v59 = vadd.f32 %v472_v40, %v407_v20  ;;  %v974_v28 = vadd.f32 %v942_v36, %v876_v51  ;;  %v667_v22 = vmul.f32 %v4415_v46, %v3921_v10  ;;  %v1237_v21 = vld [vmem:[%s3910_s21 + $0x48] sm:$0xff]  ;;  %v1255_v51 = vld [vmem:[%s3910_s21 + $0xd8] sm:$0xff] }
  0x69   : > { %3474 = vmatmul.msk.bf16.gmra.mxu2 %vm1312_vm0, %v1291_v32  ;;  %v763_v24 = vmul.f32 %v4425_v61, %v3923_v11  ;;  %v764_v8 = vmul.f32 %v4430_v45, %v3923_v11  ;;  %v975_v2 = vadd.f32 %v943_v57, %v877_v9  ;;  %v860_v36 = vmul.f32 %v4433_v23, %v3928_v16  ;;  %v1254_v32 = vld [vmem:[%s3910_s21 + $0xd0] sm:$0xff] }
  0x6a   : > { %v600_v56 = vadd.f32 %v568_v55, %v503_v50  ;;  %v601_v4 = vadd.f32 %v569_v26, %v504_v59  ;;  %v1071_v63 = vadd.f32 %v1039_v31, %v974_v28  ;;  %v861_v62 = vmul.f32 %v4436_v58, %v3928_v16 }
  0x6b   : > { %v958_v57 = vmul.f32 %v4532_v1, %v3930_v17  ;;  %v959_v53 = vmul.f32 %v4535_v12, %v3930_v17  ;;  %v1072_v54 = vadd.f32 %v1040_v30, %v975_v2  ;;  %v1055_v40 = vmul.f32 %v4545_v41, %v3943_v25 }
  0x6c   : > { %v698_v20 = vadd.f32 %v666_v35, %v600_v56  ;;  %v699_v39 = vadd.f32 %v667_v22, %v601_v4  ;;  %v1168_v31 = vadd.f32 %v1136_v27, %v1071_v63  ;;  %v1056_v55 = vmul.f32 %v4550_v19, %v3943_v25 }
  0x6d   : > { %v1152_v26 = vmul.f32 %v3935_v18, %v4553_v15  ;;  %v1153_v9 = vmul.f32 %v3935_v18, %v4556_v33  ;;  %v1169_v50 = vadd.f32 %v1137_v60, %v1072_v54  ;;  %v1264_v35 = vpack.c.bf16 %v1237_v21, %v1236_v14  ;;  %v4595_v14 = vld [vmem:[%s3917_s24 + $0xa8] sm:$0xff]  ;;  %v4598_v21 = vld [vmem:[%s3917_s24 + $0xb0] sm:$0xff] }
  0x6e   : > { %v795_v59 = vadd.f32 %v763_v24, %v698_v20  ;;  %v796_v30 = vadd.f32 %v764_v8, %v699_v39  ;;  %v1204_v28 = vadd.f32 %v4092_v47, %v1168_v31  ;;  %v1273_v22 = vpack.c.bf16 %v1255_v51, %v1254_v32  ;;  %v4607_v20 = vld [vmem:[%s3917_s24 + $0xa9] sm:$0xff]  ;;  %v4613_v51 = vld [vmem:[%s3917_s24 + $0xb1] sm:$0xff] }
  0x6f   : > { %v392_v2 = vmul.f32 %v4355_v3, %v3902_v5  ;;  %v393_v27 = vmul.f32 %v4358_v44, %v3902_v5  ;;  %v1205_v56 = vadd.f32 %v4092_v47, %v1169_v50  ;;  %3491 = vmatmul.msk.bf16.gmra.mxu1 %vm1312_vm0, %v1264_v35  ;;  %v457_v18 = vmul.f32 %v4368_v34, %v3904_v6  ;;  %v4616_v31 = vld [vmem:[%s3917_s24 + $0xaa] sm:$0xff]  ;;  %v4619_v50 = vld [vmem:[%s3917_s24 + $0xb2] sm:$0xff] }
  0x70   : > { %v892_v4 = vadd.f32 %v860_v36, %v795_v59  ;;  %v893_v63 = vadd.f32 %v861_v62, %v796_v30  ;;  %3500 = vmatmul.msk.bf16.gmra.mxu3 %vm1312_vm0, %v1273_v22  ;;  %v458_v3 = vmul.f32 %v4373_v49, %v3904_v6  ;;  %v554_v60 = vmul.f32 %v4376_v13, %v3912_v7 }
  0x71   : > { %v555_v44 = vmul.f32 %v4379_v52, %v3912_v7  ;;  %v652_v24 = vmul.f32 %v4475_v42, %v3921_v10  ;;  %v1284_v8 = vpack.c.bf16 %v1205_v56, %v1204_v28  ;;  %v489_v62 = vadd.f32 %v457_v18, %v392_v2 }
  0x72   : > { %v990_v36 = vadd.f32 %v958_v57, %v892_v4  ;;  %v991_v34 = vadd.f32 %v959_v53, %v893_v63  ;;  %v490_v49 = vadd.f32 %v458_v3, %v393_v27  ;;  %v653_v13 = vmul.f32 %v4478_v0, %v3921_v10  ;;  %v4634_v4 = vld [vmem:[%s6478_s3 + $0x8] ss:$0 sm:$0xff] }
  0x73   : > { %v749_v52 = vmul.f32 %v4487_v37, %v3923_v11  ;;  %v750_v54 = vmul.f32 %v4493_v29, %v3923_v11  ;;  %3467 = vmatmul.msk.bf16.gmra.mxu0 %vm1312_vm0, %v1284_v8  ;;  %v586_v39 = vadd.f32 %v554_v60, %v489_v62  ;;  %v846_v32 = vmul.f32 %v4496_v48, %v3928_v16 }
  0x74   : > { %v1087_v57 = vadd.f32 %v1055_v40, %v990_v36  ;;  %v1088_v53 = vadd.f32 %v1056_v55, %v991_v34  ;;  %v587_v59 = vadd.f32 %v555_v44, %v490_v49  ;;  %v847_v30 = vmul.f32 %v4499_v38, %v3928_v16 }
  0x75   : > { %v944_v35 = vmul.f32 %v4595_v14, %v3930_v17  ;;  %v945_v40 = vmul.f32 %v4598_v21, %v3930_v17  ;;  %v684_v22 = vadd.f32 %v652_v24, %v586_v39  ;;  %v1041_v2 = vmul.f32 %v4607_v20, %v3943_v25  ;;  %v4670_v39 = vld [vmem:[%s3917_s24 + $0x169] sm:$0xff] }
  0x76   : > { %v1184_v55 = vadd.f32 %v1152_v26, %v1087_v57  ;;  %v1185_v28 = vadd.f32 %v1153_v9, %v1088_v53  ;;  %v685_v27 = vadd.f32 %v653_v13, %v587_v59  ;;  %v1042_v56 = vmul.f32 %v4613_v51, %v3943_v25 }
  0x77   : > { %v1138_v63 = vmul.f32 %v4634_v4, %v4616_v31  ;;  %v1139_v26 = vmul.f32 %v4634_v4, %v4619_v50  ;;  %v781_v3 = vadd.f32 %v749_v52, %v684_v22  ;;  %v408_v60 = vmul.f32 %v4412_v43, %v3902_v5  ;;  %v4681_v22 = vld [vmem:[%s3917_s24 + $0x172] sm:$0xff] }
  0x78   : > { %v1220_v9 = vadd.f32 %v4092_v47, %v1184_v55  ;;  %v1221_v18 = vadd.f32 %v4092_v47, %v1185_v28  ;;  %v782_v44 = vadd.f32 %v750_v54, %v685_v27  ;;  %v409_v24 = vmul.f32 %v4415_v46, %v3902_v5  ;;  %v4657_v54 = vld [vmem:[%s3917_s24 + $0x168] sm:$0xff]  ;;  %v4675_v55 = vld [vmem:[%s3917_s24 + $0x171] sm:$0xff] }
  0x79   : > { %v473_v8 = vmul.f32 %v4425_v61, %v3904_v6  ;;  %v474_v36 = vmul.f32 %v4430_v45, %v3904_v6  ;;  %v878_v62 = vadd.f32 %v846_v32, %v781_v3  ;;  %v570_v49 = vmul.f32 %v4433_v23, %v3912_v7  ;;  %v4660_v45 = vld [vmem:[%s3917_s24 + $0x170] sm:$0xff] }
  0x7a   : > { %v1292_v34 = vpack.c.bf16 %v1221_v18, %v1220_v9  ;;  %v571_v13 = vmul.f32 %v4436_v58, %v3912_v7  ;;  %v879_v43 = vadd.f32 %v847_v30, %v782_v44  ;;  %v668_v61 = vmul.f32 %v4532_v1, %v3921_v10  ;;  %v4678_v28 = vld [vmem:[%s3917_s24 + $0x16a] sm:$0xff] }
  0x7b   : > { %v505_v52 = vadd.f32 %v473_v8, %v408_v60  ;;  %v506_v46 = vadd.f32 %v474_v36, %v409_v24  ;;  %v976_v57 = vadd.f32 %v944_v35, %v878_v62  ;;  %v669_v23 = vmul.f32 %v4535_v12, %v3921_v10  ;;  %v1238_v3 = vld [vmem:[%s3910_s21 + $0x50] sm:$0xff]  ;;  %v1239_v60 = vld [vmem:[%s3910_s21 + $0x58] sm:$0xff]  ;;  %v1257_v62 = vld [vmem:[%s3910_s21 + $0xe8] sm:$0xff] }
  0x7c   : > { %3475 = vmatmul.msk.bf16.gmra.mxu2 %vm1312_vm0, %v1292_v34  ;;  %v765_v58 = vmul.f32 %v4545_v41, %v3923_v11  ;;  %v766_v53 = vmul.f32 %v4550_v19, %v3923_v11  ;;  %v977_v32 = vadd.f32 %v945_v40, %v879_v43  ;;  %v862_v35 = vmul.f32 %v4553_v15, %v3928_v16  ;;  %v1256_v34 = vld [vmem:[%s3910_s21 + $0xe0] sm:$0xff] }
  0x7d   : > { %v602_v59 = vadd.f32 %v570_v49, %v505_v52  ;;  %v603_v30 = vadd.f32 %v571_v13, %v506_v46  ;;  %v1073_v27 = vadd.f32 %v1041_v2, %v976_v57  ;;  %v863_v9 = vmul.f32 %v4556_v33, %v3928_v16 }
  0x7e   : > { %v960_v40 = vmul.f32 %v4657_v54, %v3930_v17  ;;  %v961_v18 = vmul.f32 %v4660_v45, %v3930_v17  ;;  %v1074_v44 = vadd.f32 %v1042_v56, %v977_v32  ;;  %v1057_v36 = vmul.f32 %v4670_v39, %v3943_v25 }
  0x7f   : > { %v700_v24 = vadd.f32 %v668_v61, %v602_v59  ;;  %v701_v8 = vadd.f32 %v669_v23, %v603_v30  ;;  %v1170_v2 = vadd.f32 %v1138_v63, %v1073_v27  ;;  %v1058_v49 = vmul.f32 %v4675_v55, %v3943_v25 }
  0x80   : > { %v1154_v13 = vmul.f32 %v4634_v4, %v4678_v28  ;;  %v1155_v43 = vmul.f32 %v4634_v4, %v4681_v22  ;;  %v1171_v52 = vadd.f32 %v1139_v26, %v1074_v44  ;;  %v1265_v61 = vpack.c.bf16 %v1239_v60, %v1238_v3  ;;  %v4720_v3 = vld [vmem:[%s3917_s24 + $0xc0] sm:$0xff]  ;;  %v4723_v60 = vld [vmem:[%s3917_s24 + $0xc8] sm:$0xff] }
  0x81   : > { %v797_v46 = vadd.f32 %v765_v58, %v700_v24  ;;  %v798_v56 = vadd.f32 %v766_v53, %v701_v8  ;;  %v1206_v57 = vadd.f32 %v4092_v47, %v1170_v2  ;;  %v1274_v23 = vpack.c.bf16 %v1257_v62, %v1256_v34  ;;  %v4732_v24 = vld [vmem:[%s3917_s24 + $0xc1] sm:$0xff]  ;;  %v4738_v62 = vld [vmem:[%s3917_s24 + $0xc9] sm:$0xff] }
  0x82   : > { %v394_v32 = vmul.f32 %v4475_v42, %v3902_v5  ;;  %v395_v63 = vmul.f32 %v4478_v0, %v3902_v5  ;;  %v1207_v59 = vadd.f32 %v4092_v47, %v1171_v52  ;;  %3492 = vmatmul.msk.bf16.gmra.mxu1 %vm1312_vm0, %v1265_v61  ;;  %v459_v26 = vmul.f32 %v4487_v37, %v3904_v6  ;;  %v4741_v2 = vld [vmem:[%s3917_s24 + $0xc2] sm:$0xff]  ;;  %v4744_v52 = vld [vmem:[%s3917_s24 + $0xca] sm:$0xff] }
  0x83   : > { %v894_v30 = vadd.f32 %v862_v35, %v797_v46  ;;  %v895_v27 = vadd.f32 %v863_v9, %v798_v56  ;;  %3501 = vmatmul.msk.bf16.gmra.mxu3 %vm1312_vm0, %v1274_v23  ;;  %v460_v42 = vmul.f32 %v4493_v29, %v3904_v6  ;;  %v556_v58 = vmul.f32 %v4496_v48, %v3912_v7 }
  0x84   : > { %v557_v0 = vmul.f32 %v4499_v38, %v3912_v7  ;;  %v654_v47 = vmul.f32 %v4595_v14, %v3921_v10  ;;  %v1285_v53 = vpack.c.bf16 %v1207_v59, %v1206_v57  ;;  %v491_v9 = vadd.f32 %v459_v26, %v394_v32  ;;  %v4763_v26 = vld [vmem:[%s6479_s4] ss:$0 sm:$0xff] }
  0x85   : > { %v992_v35 = vadd.f32 %v960_v40, %v894_v30  ;;  %v993_v37 = vadd.f32 %v961_v18, %v895_v27  ;;  %v492_v29 = vadd.f32 %v460_v42, %v395_v63  ;;  %v655_v48 = vmul.f32 %v4598_v21, %v3921_v10 }
  0x86   : > { %v751_v38 = vmul.f32 %v4607_v20, %v3923_v11  ;;  %v752_v44 = vmul.f32 %v4613_v51, %v3923_v11  ;;  %3468 = vmatmul.msk.bf16.gmra.mxu0 %vm1312_vm0, %v1285_v53  ;;  %v588_v8 = vadd.f32 %v556_v58, %v491_v9  ;;  %v848_v34 = vmul.f32 %v4616_v31, %v3928_v16 }
  0x87   : > { %v1089_v40 = vadd.f32 %v1057_v36, %v992_v35  ;;  %v1090_v18 = vadd.f32 %v1058_v49, %v993_v37  ;;  %v589_v46 = vadd.f32 %v557_v0, %v492_v29  ;;  %v849_v56 = vmul.f32 %v4619_v50, %v3928_v16 }
  0x88   : > { %v946_v61 = vmul.f32 %v4720_v3, %v3930_v17  ;;  %v947_v36 = vmul.f32 %v4723_v60, %v3930_v17  ;;  %v686_v23 = vadd.f32 %v654_v47, %v588_v8  ;;  %v1043_v32 = vmul.f32 %v4732_v24, %v3943_v25  ;;  %v4795_v8 = vld [vmem:[%s3917_s24 + $0x181] sm:$0xff] }
  0x89   : > { %v1186_v49 = vadd.f32 %v1154_v13, %v1089_v40  ;;  %v1187_v57 = vadd.f32 %v1155_v43, %v1090_v18  ;;  %v687_v63 = vadd.f32 %v655_v48, %v589_v46  ;;  %v1044_v59 = vmul.f32 %v4738_v62, %v3943_v25 }
  0x8a   : > { %v1140_v30 = vmul.f32 %v4634_v4, %v4741_v2  ;;  %v1141_v27 = vmul.f32 %v4634_v4, %v4744_v52  ;;  %v783_v42 = vadd.f32 %v751_v38, %v686_v23  ;;  %v410_v58 = vmul.f32 %v4532_v1, %v3902_v5  ;;  %v4806_v23 = vld [vmem:[%s3917_s24 + $0x18a] sm:$0xff] }
  0x8b   : > { %v1222_v13 = vadd.f32 %v4763_v26, %v1186_v49  ;;  %v1223_v43 = vadd.f32 %v4763_v26, %v1187_v57  ;;  %v784_v0 = vadd.f32 %v752_v44, %v687_v63  ;;  %v411_v47 = vmul.f32 %v4535_v12, %v3902_v5  ;;  %v4782_v44 = vld [vmem:[%s3917_s24 + $0x180] sm:$0xff]  ;;  %v4800_v49 = vld [vmem:[%s3917_s24 + $0x189] sm:$0xff] }
  0x8c   : > { %v475_v53 = vmul.f32 %v4545_v41, %v3904_v6  ;;  %v476_v35 = vmul.f32 %v4550_v19, %v3904_v6  ;;  %v880_v9 = vadd.f32 %v848_v34, %v783_v42  ;;  %v572_v29 = vmul.f32 %v4553_v15, %v3912_v7  ;;  %v4785_v19 = vld [vmem:[%s3917_s24 + $0x188] sm:$0xff]  ;;  %v1240_v42 = vld [vmem:[%s3910_s21 + $0x60] sm:$0xff] }
  0x8d   : > { %v1293_v37 = vpack.c.bf16 %v1223_v43, %v1222_v13  ;;  %v573_v48 = vmul.f32 %v4556_v33, %v3912_v7  ;;  %v881_v1 = vadd.f32 %v849_v56, %v784_v0  ;;  %v670_v41 = vmul.f32 %v4657_v54, %v3921_v10  ;;  %v4803_v57 = vld [vmem:[%s3917_s24 + $0x182] sm:$0xff] }
  0x8e   : > { %v507_v38 = vadd.f32 %v475_v53, %v410_v58  ;;  %v508_v12 = vadd.f32 %v476_v35, %v411_v47  ;;  %v978_v40 = vadd.f32 %v946_v61, %v880_v9  ;;  %v671_v15 = vmul.f32 %v4660_v45, %v3921_v10  ;;  %v1241_v58 = vld [vmem:[%s3910_s21 + $0x68] sm:$0xff]  ;;  %v1259_v9 = vld [vmem:[%s3910_s21 + $0xf8] sm:$0xff] }
  0x8f   : > { %3476 = vmatmul.msk.bf16.gmra.mxu2 %vm1312_vm0, %v1293_v37  ;;  %v767_v33 = vmul.f32 %v4670_v39, %v3923_v11  ;;  %v768_v18 = vmul.f32 %v4675_v55, %v3923_v11  ;;  %v979_v34 = vadd.f32 %v947_v36, %v881_v1  ;;  %v864_v61 = vmul.f32 %v4678_v28, %v3928_v16  ;;  %v1258_v37 = vld [vmem:[%s3910_s21 + $0xf0] sm:$0xff] }
  0x90   : > { %v604_v46 = vadd.f32 %v572_v29, %v507_v38  ;;  %v605_v56 = vadd.f32 %v573_v48, %v508_v12  ;;  %v1075_v63 = vadd.f32 %v1043_v32, %v978_v40  ;;  %v865_v13 = vmul.f32 %v4681_v22, %v3928_v16 }
  0x91   : > { %v962_v36 = vmul.f32 %v4782_v44, %v3930_v17  ;;  %v963_v43 = vmul.f32 %v4785_v19, %v3930_v17  ;;  %v1076_v0 = vadd.f32 %v1044_v59, %v979_v34  ;;  %v1059_v35 = vmul.f32 %v4795_v8, %v3943_v25 }
  0x92   : > { %v702_v47 = vadd.f32 %v670_v41, %v604_v46  ;;  %v703_v53 = vadd.f32 %v671_v15, %v605_v56  ;;  %v1172_v32 = vadd.f32 %v1140_v30, %v1075_v63  ;;  %v1060_v29 = vmul.f32 %v4800_v49, %v3943_v25 }
  0x93   : > { %v1156_v48 = vmul.f32 %v4634_v4, %v4803_v57  ;;  %v1157_v1 = vmul.f32 %v4634_v4, %v4806_v23  ;;  %v1173_v38 = vadd.f32 %v1141_v27, %v1076_v0  ;;  %v1266_v41 = vpack.c.bf16 %v1241_v58, %v1240_v42  ;;  %v3373_v58 = vld [vmem:[%s3917_s24 + $0xd8] sm:$0xff] }
  0x94   : > { %v799_v12 = vadd.f32 %v767_v33, %v702_v47  ;;  %v800_v59 = vadd.f32 %v768_v18, %v703_v53  ;;  %v1208_v40 = vadd.f32 %v4763_v26, %v1172_v32  ;;  %v1275_v15 = vpack.c.bf16 %v1259_v9, %v1258_v37  ;;  %v3374_v47 = vld [vmem:[%s3917_s24 + $0xe0] sm:$0xff] }
  0x95   : > { %v396_v34 = vmul.f32 %v4595_v14, %v3902_v5  ;;  %v397_v30 = vmul.f32 %v4598_v21, %v3902_v5  ;;  %v1209_v46 = vadd.f32 %v4763_v26, %v1173_v38  ;;  %3493 = vmatmul.msk.bf16.gmra.mxu1 %vm1312_vm0, %v1266_v41  ;;  %v461_v27 = vmul.f32 %v4607_v20, %v3904_v6  ;;  %v3437_v9 = vld [vmem:[%s3917_s24 + $0xda] sm:$0xff] }
  0x96   : > { %v896_v56 = vadd.f32 %v864_v61, %v799_v12  ;;  %v897_v63 = vadd.f32 %v865_v13, %v800_v59  ;;  %3502 = vmatmul.msk.bf16.gmra.mxu3 %vm1312_vm0, %v1275_v15  ;;  %v462_v33 = vmul.f32 %v4613_v51, %v3904_v6  ;;  %v558_v14 = vmul.f32 %v4616_v31, %v3912_v7 }
  0x97   : > { %v559_v21 = vmul.f32 %v4619_v50, %v3912_v7  ;;  %v656_v18 = vmul.f32 %v4720_v3, %v3921_v10  ;;  %v1286_v61 = vpack.c.bf16 %v1209_v46, %v1208_v40  ;;  %v493_v42 = vadd.f32 %v461_v27, %v396_v34 }
  0x98   : > { %v994_v13 = vadd.f32 %v962_v36, %v896_v56  ;;  %v995_v20 = vadd.f32 %v963_v43, %v897_v63  ;;  %v494_v0 = vadd.f32 %v462_v33, %v397_v30  ;;  %v657_v51 = vmul.f32 %v4723_v60, %v3921_v10  ;;  %v3405_v36 = vld [vmem:[%s3917_s24 + $0xd9] sm:$0xff]  ;;  %v3406_v43 = vld [vmem:[%s3917_s24 + $0xe1] sm:$0xff] }
  0x99   : > { %v753_v31 = vmul.f32 %v4732_v24, %v3923_v11  ;;  %3469 = vmatmul.msk.bf16.gmra.mxu0 %vm1312_vm0, %v1286_v61  ;;  %v590_v3 = vadd.f32 %v558_v14, %v493_v42  ;;  %v754_v37 = vmul.f32 %v4738_v62, %v3923_v11  ;;  %v850_v38 = vmul.f32 %v4741_v2, %v3928_v16  ;;  %v3390_v42 = vld [vmem:[%s3917_s24 + $0x1a0] sm:$0xff] }
  0x9a   : > { %v1091_v50 = vadd.f32 %v1059_v35, %v994_v13  ;;  %v1092_v53 = vadd.f32 %v1060_v29, %v995_v20  ;;  %v591_v32 = vadd.f32 %v559_v21, %v494_v0  ;;  %v851_v60 = vmul.f32 %v4744_v52, %v3928_v16 }
  0x9b   : > { %v948_v24 = vmul.f32 %v3373_v58, %v3930_v17  ;;  %v688_v29 = vadd.f32 %v656_v18, %v590_v3  ;;  %v949_v59 = vmul.f32 %v3374_v47, %v3930_v17  ;;  %v1045_v62 = vmul.f32 %v3405_v36, %v3943_v25  ;;  %v3422_v3 = vld [vmem:[%s3917_s24 + $0x1a1] sm:$0xff] }
  0x9c   : > { %v1188_v12 = vadd.f32 %v1156_v48, %v1091_v50  ;;  %v1189_v35 = vadd.f32 %v1157_v1, %v1092_v53  ;;  %v689_v41 = vadd.f32 %v657_v51, %v591_v32  ;;  %v1046_v40 = vmul.f32 %v3406_v43, %v3943_v25  ;;  %v3438_v1 = vld [vmem:[%s3917_s24 + $0xe2] sm:$0xff]  ;;  %v1242_v51 = vld [vmem:[%s3910_s21 + $0x70] sm:$0xff]  ;;  %v3421_v50 = vld [vmem:[%s3917_s24 + $0x199] sm:$0xff] }
  0x9d   : > { %v1142_v15 = vmul.f32 %v4634_v4, %v3437_v9  ;;  %v785_v30 = vadd.f32 %v753_v31, %v688_v29  ;;  %v412_v52 = vmul.f32 %v4657_v54, %v3902_v5  ;;  %v413_v46 = vmul.f32 %v4660_v45, %v3902_v5  ;;  %v3453_v9 = vld [vmem:[%s3917_s24 + $0x19a] sm:$0xff] }
  0x9e   : > { %v1224_v2 = vadd.f32 %v4763_v26, %v1188_v12  ;;  %v1225_v34 = vadd.f32 %v4763_v26, %v1189_v35  ;;  %v786_v48 = vadd.f32 %v754_v37, %v689_v41  ;;  %v477_v56 = vmul.f32 %v4670_v39, %v3904_v6  ;;  %v1559_v41 = vpop.f32.mrf.mxu3 }
  0x9f   : > { %v478_v63 = vmul.f32 %v4675_v55, %v3904_v6  ;;  %v882_v33 = vadd.f32 %v850_v38, %v785_v30  ;;  %v574_v14 = vmul.f32 %v4678_v28, %v3912_v7  ;;  %v575_v54 = vmul.f32 %v4681_v22, %v3912_v7  ;;  %v1519_v21 = vpop.f32.mrf.mxu1 }
  0xa0   : > { %v1294_v27 = vpack.c.bf16 %v1225_v34, %v1224_v2  ;;  %v883_v18 = vadd.f32 %v851_v60, %v786_v48  ;;  %v509_v61 = vadd.f32 %v477_v56, %v412_v52  ;;  %v672_v45 = vmul.f32 %v4782_v44, %v3921_v10  ;;  %v3389_v44 = vld [vmem:[%s3917_s24 + $0x198] sm:$0xff]  ;;  %v3454_v60 = vld [vmem:[%s3917_s24 + $0x1a2] sm:$0xff] }
  0xa1   : > { %v510_v5 = vadd.f32 %v478_v63, %v413_v46  ;;  %v980_v6 = vadd.f32 %v948_v24, %v882_v33  ;;  %v1143_v39 = vmul.f32 %v4634_v4, %v3438_v1  ;;  %v673_v55 = vmul.f32 %v4785_v19, %v3921_v10  ;;  %v1243_v10 = vld [vmem:[%s3910_s21 + $0x78] sm:$0xff] }
  0xa2   : > { %3477 = vmatmul.msk.bf16.gmra.mxu2 %vm1312_vm0, %v1294_v27  ;;  %v769_v7 = vmul.f32 %v4795_v8, %v3923_v11  ;;  %v981_v28 = vadd.f32 %v949_v59, %v883_v18  ;;  %v606_v22 = vadd.f32 %v574_v14, %v509_v61  ;;  %v770_v20 = vmul.f32 %v4800_v49, %v3923_v11 }
  0xa3   : > { %v607_v13 = vadd.f32 %v575_v54, %v510_v5  ;;  %v1077_v58 = vadd.f32 %v1045_v62, %v980_v6  ;;  %v866_v0 = vmul.f32 %v4803_v57, %v3928_v16  ;;  %v867_v8 = vmul.f32 %v4806_v23, %v3928_v16  ;;  %v4905_v57 = vld [vmem:[%s6482_s7] ss:$0 sm:$0xff] }
  0xa4   : > { %v1078_v19 = vadd.f32 %v1046_v40, %v981_v28  ;;  %v704_v31 = vadd.f32 %v672_v45, %v606_v22  ;;  %v964_v11 = vmul.f32 %v3389_v44, %v3930_v17  ;;  %v965_v49 = vmul.f32 %v3390_v42, %v3930_v17 }
  0xa5   : > { %v705_v47 = vadd.f32 %v673_v55, %v607_v13  ;;  %v1174_v53 = vadd.f32 %v1142_v15, %v1077_v58  ;;  %v1267_v32 = vpack.c.bf16 %v1243_v10, %v1242_v51  ;;  %v1061_v23 = vmul.f32 %v3421_v50, %v3943_v25 }
  0xa6   : > { %v1175_v37 = vadd.f32 %v1143_v39, %v1078_v19  ;;  %v801_v36 = vadd.f32 %v769_v7, %v704_v31  ;;  %v1370_v38 = vpop.f32.mrf.mxu0  ;;  %v1062_v29 = vmul.f32 %v3422_v3, %v3943_v25  ;;  %v1158_v59 = vmul.f32 %v4634_v4, %v3453_v9  ;;  %v1561_v18 = vpop.f32.mrf.mxu3 }
  0xa7   : > { %v802_v43 = vadd.f32 %v770_v20, %v705_v47  ;;  %v1210_v16 = vadd.f32 %v4763_v26, %v1174_v53  ;;  %v1520_v24 = vadd.f32 %v1519_v21, %v1370_v38  ;;  %3494 = vmatmul.msk.bf16.gmra.mxu1 %vm1312_vm0, %v1267_v32  ;;  %v1521_v40 = vpop.f32.mrf.mxu1  ;;  %v1159_v30 = vmul.f32 %v4634_v4, %v3454_v60 }
  0xa8   : > { %v1211_v17 = vadd.f32 %v4763_v26, %v1175_v37  ;;  %v898_v12 = vadd.f32 %v866_v0, %v801_v36 }
  0xa9   : > { %v899_v35 = vadd.f32 %v867_v8, %v802_v43  ;;  %v4916_v62 = vadd.f32 %v4905_v57, %v1520_v24 }
  0xaa   : > { %v1287_v15 = vpack.c.bf16 %v1211_v17, %v1210_v16  ;;  %v996_v2 = vadd.f32 %v964_v11, %v898_v12 }
  0xab   : > { %v997_v34 = vadd.f32 %v965_v49, %v899_v35  ;;  %3563 = vtanh.f32 %v4916_v62 }
  0xac   : > { %3470 = vmatmul.msk.bf16.gmra.mxu0 %vm1312_vm0, %v1287_v15  ;;  %v1093_v52 = vadd.f32 %v1061_v23, %v996_v2 }
  0xad   : > { %v1094_v25 = vadd.f32 %v1062_v29, %v997_v34 }
  0xae   : > { %v1190_v48 = vadd.f32 %v1158_v59, %v1093_v52  ;;  %v1372_v46 = vpop.f32.mrf.mxu0  ;;  %v1564_v20 = vpop.f32.mrf.mxu3 }
  0xaf   : > { %v1191_v1 = vadd.f32 %v1159_v30, %v1094_v25  ;;  %v1522_v56 = vadd.f32 %v1521_v40, %v1372_v46 }
  0xb0   : > { %v1226_v63 = vadd.f32 %v4763_v26, %v1190_v48 }
  0xb1   : > { %v1227_v27 = vadd.f32 %v4763_v26, %v1191_v1  ;;  %v3564_v33 = vpop.eup %3563  ;;  %v4924_v14 = vadd.f32 %v4905_v57, %v1522_v56 }
  0xb2   : > { %2371 = vrot.lane.b32.xlu0 %v3564_v33, %s3829_s14 }
  0xb3   : > { %v1295_v54 = vpack.c.bf16 %v1227_v27, %v1226_v63  ;;  %v1410_v4 = vpop.f32.mrf.mxu2  ;;  %3565 = vtanh.f32 %v4924_v14 }
  0xb4   : > { %v1560_v21 = vadd.f32 %v1559_v41, %v1410_v4  ;;  %v1524_v61 = vpop.f32.mrf.mxu1 }
  0xb5   : > { %3478 = vmatmul.msk.bf16.gmra.mxu2 %vm1312_vm0, %v1295_v54 }
  0xb6   : > { %v4930_v5 = vadd.f32 %v4905_v57, %v1560_v21  ;;  %v1375_v26 = vpop.f32.mrf.mxu0  ;;  %v1566_v31 = vpop.f32.mrf.mxu3 }
  0xb7   : > { %v1525_v45 = vadd.f32 %v1524_v61, %v1375_v26 }
  0xb8   : > { %3567 = vtanh.f32 %v4930_v5 }
  0xb9   : > { %v3566_v6 = vpop.eup %3565  ;;  %v4934_v39 = vadd.f32 %v4905_v57, %v1525_v45 }
  0xba   : > { %2373 = vrot.lane.b32.xlu0 %v3566_v6, %s3829_s14 }
  0xbb   : > { %v1412_v55 = vpop.f32.mrf.mxu2  ;;  %3569 = vtanh.f32 %v4934_v39 }
  0xbc   : > { %v1562_v7 = vadd.f32 %v1561_v18, %v1412_v55  ;;  %v1526_v28 = vpop.f32.mrf.mxu1 }
  0xbe   : > { %v3568_v22 = vpop.eup %3567  ;;  %v4938_v13 = vadd.f32 %v4905_v57, %v1562_v7  ;;  %v1377_v44 = vpop.f32.mrf.mxu0 }
  0xbf   : > { %2403 = vrot.lane.b32.xlu1 %v3568_v22, %s3829_s14  ;;  %v1527_v42 = vadd.f32 %v1526_v28, %v1377_v44  ;;  %v1569_v9 = vpop.f32.mrf.mxu3 }
  0xc0   : > { %3571 = vtanh.f32 %v4938_v13 }
  0xc1   : > { %v4944_v58 = vadd.f32 %v4905_v57, %v1527_v42  ;;  %v3570_v0 = vpop.eup %3569 }
  0xc3   : > { %3573 = vtanh.f32 %v4944_v58 }
  0xc6   : > { %v3572_v51 = vpop.eup %3571  ;;  %v1415_v10 = vpop.f32.mrf.mxu2 }
  0xc7   : > { %2405 = vrot.lane.b32.xlu2 %v3572_v51, %s3829_s14  ;;  %2375 = vrot.lane.b32.xlu1 %v3570_v0, %s3829_s14  ;;  %v1565_v19 = vadd.f32 %v1564_v20, %v1415_v10  ;;  %v1529_v47 = vpop.f32.mrf.mxu1  ;;  %v1571_v12 = vpop.f32.mrf.mxu3 }
  0xc9   : > { %v4950_v8 = vadd.f32 %v4905_v57, %v1565_v19  ;;  %v3574_v11 = vpop.eup %3573 }
  0xca   : > { %v1380_v50 = vpop.f32.mrf.mxu0 }
  0xcb   : > { %v1530_v53 = vadd.f32 %v1529_v47, %v1380_v50  ;;  %3575 = vtanh.f32 %v4950_v8  ;;  %v3503_v47 = vmul.f32 -1.442695, %v4916_v62 }
  0xcd   : > { %v4954_v49 = vadd.f32 %v4905_v57, %v1530_v53 }
  0xce   : > { %v1417_v3 = vpop.f32.mrf.mxu2 }
  0xcf   : > { %2377 = vrot.lane.b32.xlu1 %v3574_v11, %s3829_s14  ;;  %v1567_v37 = vadd.f32 %v1566_v31, %v1417_v3  ;;  %3577 = vtanh.f32 %v4954_v49  ;;  %v1531_v32 = vpop.f32.mrf.mxu1  ;;  %v1574_v30 = vpop.f32.mrf.mxu3 }
  0xd1   : > { %v3576_v36 = vpop.eup %3575  ;;  %v4959_v43 = vadd.f32 %v4905_v57, %v1567_v37 }
  0xd2   : > { %2407 = vrot.lane.b32.xlu0 %v3576_v36, %s3829_s14  ;;  %v1382_v38 = vpop.f32.mrf.mxu0 }
  0xd3   : > { %3579 = vtanh.f32 %v4959_v43  ;;  %v1532_v29 = vadd.f32 %v1531_v32, %v1382_v38  ;;  %v3504_v38 = vmul.f32 -1.442695, %v4924_v14 }
  0xd5   : > { %v3578_v16 = vpop.eup %3577  ;;  %v4970_v15 = vadd.f32 %v4905_v57, %v1532_v29 }
  0xd6   : > { %2379 = vrot.lane.b32.xlu2 %v3578_v16, %s3829_s14 }
  0xd7   : > { %v1576_v54 = vpop.f32.mrf.mxu3 }
  0xd9   : > { %v1420_v23 = vpop.f32.mrf.mxu2  ;;  %v3580_v60 = vpop.eup %3579 }
  0xda   : > { %v1570_v24 = vadd.f32 %v1569_v9, %v1420_v23  ;;  %2409 = vrot.lane.b32.xlu1 %v3580_v60, %s3829_s14  ;;  %v1534_v35 = vpop.f32.mrf.mxu1  ;;  %v3519_v23 = vmul.f32 -1.442695, %v4930_v5 }
  0xdc   : > { %v4966_v17 = vadd.f32 %v4905_v57, %v1570_v24 }
  0xdd   : > { %v1385_v59 = vpop.f32.mrf.mxu0 }
  0xde   : > { %3581 = vtanh.f32 %v4966_v17  ;;  %v1535_v52 = vadd.f32 %v1534_v35, %v1385_v59  ;;  %v3505_v35 = vmul.f32 -1.442695, %v4934_v39 }
  0xdf   : > { %3583 = vtanh.f32 %v4970_v15 }
  0xe0   : > { %v4979_v1 = vadd.f32 %v4905_v57, %v1535_v52  ;;  %v1579_v22 = vpop.f32.mrf.mxu3 }
  0xe1   : > { %v1422_v41 = vpop.f32.mrf.mxu2 }
  0xe2   : > { %v1572_v40 = vadd.f32 %v1571_v12, %v1422_v41  ;;  %v1536_v25 = vpop.f32.mrf.mxu1 }
  0xe4   : > { %v3582_v2 = vpop.eup %3581  ;;  %v4973_v34 = vadd.f32 %v4905_v57, %v1572_v40 }
  0xe5   : > { %2411 = vrot.lane.b32.xlu2 %v3582_v2, %s3829_s14  ;;  %v1387_v48 = vpop.f32.mrf.mxu0  ;;  %v3584_v46 = vpop.eup %3583 }
  0xe6   : > { %3585 = vtanh.f32 %v4973_v34  ;;  %v1537_v21 = vadd.f32 %v1536_v25, %v1387_v48 }
  0xe7   : > { %3587 = vtanh.f32 %v4979_v1 }
  0xe8   : > { %v4990_v6 = vadd.f32 %v4905_v57, %v1537_v21  ;;  %v1581_v50 = vpop.f32.mrf.mxu3 }
  0xec   : > { %v3586_v56 = vpop.eup %3585  ;;  %v1425_v63 = vpop.f32.mrf.mxu2 }
  0xed   : > { %v1575_v27 = vadd.f32 %v1574_v30, %v1425_v63  ;;  %2413 = vrot.lane.b32.xlu0 %v3586_v56, %s3829_s14  ;;  %2381 = vrot.lane.b32.xlu2 %v3584_v46, %s3829_s14  ;;  %v3588_v4 = vpop.eup %3587  ;;  %v1539_v18 = vpop.f32.mrf.mxu1  ;;  %v3520_v30 = vmul.f32 -1.442695, %v4938_v13 }
  0xef   : > { %v4985_v33 = vadd.f32 %v4905_v57, %v1575_v27 }
  0xf0   : > { %v1390_v61 = vpop.f32.mrf.mxu0 }
  0xf1   : > { %3589 = vtanh.f32 %v4985_v33  ;;  %v1540_v28 = vadd.f32 %v1539_v18, %v1390_v61 }
  0xf2   : > { %3591 = vtanh.f32 %v4990_v6 }
  0xf3   : > { %v4999_v44 = vadd.f32 %v4905_v57, %v1540_v28  ;;  %v1584_v12 = vpop.f32.mrf.mxu3 }
  0xf4   : > { %v1427_v26 = vpop.f32.mrf.mxu2 }
  0xf5   : > { %v1577_v45 = vadd.f32 %v1576_v54, %v1427_v26  ;;  %2383 = vrot.lane.b32.xlu0 %v3588_v4, %s3829_s14  ;;  %v1541_v20 = vpop.f32.mrf.mxu1  ;;  %v3506_v54 = vmul.f32 -1.442695, %v4944_v58 }
  0xf7   : > { %v4993_v55 = vadd.f32 %v4905_v57, %v1577_v45  ;;  %v3590_v7 = vpop.eup %3589 }
  0xf8   : > { %2415 = vrot.lane.b32.xlu1 %v3590_v7, %s3829_s14  ;;  %v1392_v42 = vpop.f32.mrf.mxu0  ;;  %v3592_v0 = vpop.eup %3591 }
  0xf9   : > { %3593 = vtanh.f32 %v4993_v55  ;;  %v1542_v11 = vadd.f32 %v1541_v20, %v1392_v42  ;;  %v3521_v42 = vmul.f32 -1.442695, %v4950_v8 }
  0xfa   : > { %3595 = vtanh.f32 %v4999_v44 }
  0xfb   : > { %v5011_v32 = vadd.f32 %v4905_v57, %v1542_v11  ;;  %v1586_v13 = vpop.f32.mrf.mxu3 }
  0xff   : > { %v3594_v51 = vpop.eup %3593  ;;  %v1430_v10 = vpop.f32.mrf.mxu2 }
 0x100   : > { %v1580_v19 = vadd.f32 %v1579_v22, %v1430_v10  ;;  %2417 = vrot.lane.b32.xlu2 %v3594_v51, %s3829_s14  ;;  %2385 = vrot.lane.b32.xlu1 %v3592_v0, %s3829_s14  ;;  %v3596_v53 = vpop.eup %3595  ;;  %v1544_v3 = vpop.f32.mrf.mxu1  ;;  %v3507_v51 = vmul.f32 -1.442695, %v4954_v49 }
 0x102   : > { %v5005_v31 = vadd.f32 %v4905_v57, %v1580_v19 }
 0x103   : > { %v1395_v36 = vpop.f32.mrf.mxu0 }
 0x104   : > { %3597 = vtanh.f32 %v5005_v31  ;;  %v1545_v60 = vadd.f32 %v1544_v3, %v1395_v36 }
 0x105   : > { %3599 = vpow2.f32 %v3503_v47 }
 0x106   : > { %3601 = vtanh.f32 %v5011_v32  ;;  %v5023_v14 = vadd.f32 %v4905_v57, %v1545_v60  ;;  %v1589_v8 = vpop.f32.mrf.mxu3 }
 0x107   : > { %v1432_v37 = vpop.f32.mrf.mxu2 }
 0x108   : > { %v1582_v9 = vadd.f32 %v1581_v50, %v1432_v37  ;;  %2387 = vrot.lane.b32.xlu2 %v3596_v53, %s3829_s14  ;;  %v1546_v29 = vpop.f32.mrf.mxu1 }
 0x10a   : > { %v5015_v16 = vadd.f32 %v4905_v57, %v1582_v9  ;;  %v3598_v62 = vpop.eup %3597 }
 0x10b   : > { %2419 = vrot.lane.b32.xlu0 %v3598_v62, %s3829_s14  ;;  %v3600_v24 = vpop.eup %3599  ;;  %v1397_v5 = vpop.f32.mrf.mxu0 }
 0x10c   : > { %3603 = vtanh.f32 %v5015_v16  ;;  %v3602_v59 = vpop.eup %3601  ;;  %v5025_v41 = vadd.f32 1.0, %v3600_v24  ;;  %v1547_v27 = vadd.f32 %v1546_v29, %v1397_v5 }
 0x10d   : > { %3605 = vpow2.f32 %v3504_v38 }
 0x10e   : > { %3607 = vpow2.f32 %v3519_v23  ;;  %v5047_v7 = vadd.f32 %v4905_v57, %v1547_v27  ;;  %v1774_v62 = vand.u32 2147483648, %v5025_v41  ;;  %vm1768_vm1 = vweird.f32 %v5025_v41 }
 0x10f   : > { %3609 = vtanh.f32 %v5023_v14 }
 0x110   : > { %3611 = vpow2.f32 %v3505_v35 }
 0x111   : > { %3613 = vrcp.f32 %v5025_v41 }
 0x112   : > { %v3604_v40 = vpop.eup %3603  ;;  %v1435_v2 = vpop.f32.mrf.mxu2  ;;  %3615 = vpow2.f32 %v3520_v30  ;;  %v3522_v30 = vmul.f32 -1.442695, %v4959_v43 }
 0x113   : > { %v1585_v52 = vadd.f32 %v1584_v12, %v1435_v2  ;;  %2421 = vrot.lane.b32.xlu1 %v3604_v40, %s3829_s14  ;;  %v3606_v25 = vpop.eup %3605  ;;  %2389 = vrot.lane.b32.xlu0 %v3602_v59, %s3829_s14  ;;  %v1549_v18 = vpop.f32.mrf.mxu1  ;;  %v1772_v59 = vand.u32 2147483647, %v5025_v41 }
 0x114   : > { %v3608_v39 = vpop.eup %3607  ;;  %v5035_v46 = vadd.f32 1.0, %v3606_v25 }
 0x115   : > { %v5033_v48 = vadd.f32 %v4905_v57, %v1585_v52  ;;  %v3610_v56 = vpop.eup %3609  ;;  %v5037_v63 = vadd.f32 1.0, %v3608_v39  ;;  %v1775_v52 = vor.u32 1.1754944e-38, %v1774_v62  ;;  %vm5100_vm3 = vcmp.eq.f32.partialorder %v1772_v59, 8.507059e+37 }
 0x116   : > { %v3612_v4 = vpop.eup %3611  ;;  %v1400_v45 = vpop.f32.mrf.mxu0  ;;  %vm1783_vm4 = vweird.f32 %v5035_v46  ;;  %v3523_v62 = vmul.f32 -1.442695, %v4966_v17 }
 0x117   : > { %3617 = vtanh.f32 %v5033_v48  ;;  %v5041_v61 = vpop.eup %3613  ;;  %v5049_v22 = vadd.f32 1.0, %v3612_v4  ;;  %v1550_v10 = vadd.f32 %v1549_v18, %v1400_v45  ;;  %v1591_v45 = vpop.f32.mrf.mxu3  ;;  %vm2008_vm6 = vweird.f32 %v5037_v63 }
 0x118   : > { %3619 = vrcp.f32 %v5035_v46  ;;  %v3616_v28 = vpop.eup %3615  ;;  %v1764_v0 = vmul.f32 %v5041_v61, %v5025_v41  ;;  %vm1769_vm2 = vweird.f32 %v5041_v61  ;;  %v2014_v41 = vand.u32 2147483648, %v5037_v63 }
 0x119   : > { %3621 = vrcp.f32 %v5037_v63  ;;  %v5061_v19 = vadd.f32 1.0, %v3616_v28  ;;  %v5069_v49 = vadd.f32 %v4905_v57, %v1550_v10  ;;  %v1789_v28 = vand.u32 2147483648, %v5035_v46  ;;  %vm5117_vm5 = vmor %vm1768_vm1, %vm1769_vm2 }
 0x11a   : > { %v1437_v21 = vpop.f32.mrf.mxu2  ;;  %3623 = vpow2.f32 %v3506_v54  ;;  %v1765_v53 = vsub.f32 1.0, %v1764_v0  ;;  %vm1798_vm14 = vweird.f32 %v5049_v22 }
 0x11b   : > { %v1587_v26 = vadd.f32 %v1586_v13, %v1437_v21  ;;  %2391 = vrot.lane.b32.xlu1 %v3610_v56, %s3829_s14  ;;  %3625 = vtanh.f32 %v5047_v7  ;;  %v1551_v37 = vpop.f32.mrf.mxu1  ;;  %v3508_v56 = vmul.f32 -1.442695, %v4970_v15  ;;  %v1787_v15 = vand.u32 2147483647, %v5035_v46 }
 0x11c   : > { %v1766_v12 = vmul.f32 %v5041_v61, %v1765_v53  ;;  %vm2023_vm11 = vweird.f32 %v5061_v19  ;;  %v2029_v43 = vand.u32 2147483648, %v5061_v19 }
 0x11d   : > { %v5052_v58 = vadd.f32 %v4905_v57, %v1587_v26  ;;  %v3618_v20 = vpop.eup %3617  ;;  %vm5149_vm9 = vcmp.eq.f32.partialorder %v1787_v15, 8.507059e+37 }
 0x11e   : > { %2423 = vrot.lane.b32.xlu2 %v3618_v20, %s3829_s14  ;;  %v5063_v47 = vpop.eup %3619  ;;  %v1402_v38 = vpop.f32.mrf.mxu0  ;;  %v1767_v13 = vadd.f32 %v5041_v61, %v1766_v12 }
 0x11f   : > { %3627 = vtanh.f32 %v5052_v58  ;;  %v5066_v50 = vpop.eup %3621  ;;  %v1779_v23 = vmul.f32 %v5063_v47, %v5035_v46  ;;  %v1552_v21 = vadd.f32 %v1551_v37, %v1402_v38  ;;  %vm1784_vm7 = vweird.f32 %v5063_v47 }
 0x120   : > { %3629 = vrcp.f32 %v5049_v22  ;;  %v3624_v11 = vpop.eup %3623  ;;  %v2004_v35 = vmul.f32 %v5066_v50, %v5037_v63  ;;  %v1771_v53 = vsel %vm5117_vm5, %v5041_v61, %v1767_v13  ;;  %vm2009_vm10 = vweird.f32 %v5066_v50  ;;  %vm5168_vm12 = vmor %vm1783_vm4, %vm1784_vm7 }
 0x121   : > { %3631 = vpow2.f32 %v3521_v42  ;;  %v3626_v3 = vpop.eup %3625  ;;  %v5076_v60 = vadd.f32 1.0, %v3624_v11  ;;  %v1780_v25 = vsub.f32 1.0, %v1779_v23  ;;  %v5131_v11 = vadd.f32 %v4905_v57, %v1552_v21  ;;  %vm5191_vm13 = vmor %vm2008_vm6, %vm2009_vm10 }
 0x122   : > { %3633 = vpow2.f32 %v3507_v51  ;;  %v2005_v27 = vsub.f32 1.0, %v2004_v35  ;;  %v2012_v51 = vand.u32 2147483647, %v5037_v63  ;;  %v3509_v46 = vmul.f32 -1.442695, %v4979_v1 }
 0x123   : > { %3635 = vrcp.f32 %v5061_v19  ;;  %v1781_v10 = vmul.f32 %v5063_v47, %v1780_v25  ;;  %v2027_v25 = vand.u32 2147483647, %v5061_v19  ;;  %vm1813_vm6 = vweird.f32 %v5076_v60 }
 0x124   : > { %3637 = vtanh.f32 %v5069_v49  ;;  %v1554_v37 = vpop.f32.mrf.mxu1  ;;  %vm5144_vm8 = vcmp.eq.f32.partialorder %v2012_v51, 8.507059e+37 }
 0x125   : > { %v3628_v36 = vpop.eup %3627  ;;  %v1440_v9 = vpop.f32.mrf.mxu2  ;;  %3639 = vrcp.f32 %v5076_v60  ;;  %v1782_v59 = vadd.f32 %v5063_v47, %v1781_v10  ;;  %vm5199_vm1 = vcmp.eq.f32.partialorder %v2027_v25, 8.507059e+37 }
 0x126   : > { %v1590_v24 = vadd.f32 %v1589_v8, %v1440_v9  ;;  %2425 = vrot.lane.b32.xlu0 %v3628_v36, %s3829_s14  ;;  %v5082_v29 = vpop.eup %3629  ;;  %2393 = vrot.lane.b32.xlu2 %v3626_v3, %s3829_s14  ;;  %v2006_v36 = vmul.f32 %v5066_v50, %v2005_v27 }
 0x127   : > { %v3632_v5 = vpop.eup %3631  ;;  %v1794_v18 = vmul.f32 %v5082_v29, %v5049_v22  ;;  %vm1799_vm15 = vweird.f32 %v5082_v29 }
 0x128   : > { %v5087_v40 = vadd.f32 %v4905_v57, %v1590_v24  ;;  %v3634_v2 = vpop.eup %3633  ;;  %v5097_v4 = vadd.f32 1.0, %v3632_v5  ;;  %v3524_v24 = vmul.f32 -1.442695, %v4973_v34  ;;  %v1790_v34 = vor.u32 1.1754944e-38, %v1789_v28 }
 0x129   : > { %v5092_v39 = vpop.eup %3635  ;;  %v5106_v26 = vadd.f32 1.0, %v3634_v2  ;;  %v1405_v3 = vpop.f32.mrf.mxu0  ;;  %v1795_v9 = vsub.f32 1.0, %v1794_v18  ;;  %v2015_v2 = vor.u32 1.1754944e-38, %v2014_v41 }
 0x12a   : > { %v3638_v54 = vpop.eup %3637  ;;  %3641 = vtanh.f32 %v5087_v40  ;;  %v2019_v42 = vmul.f32 %v5092_v39, %v5061_v19  ;;  %v1555_v17 = vadd.f32 %v1554_v37, %v1405_v3  ;;  %v5211_v37 = vpop.permute.xlu0 %2371  ;;  %vm2024_vm2 = vweird.f32 %v5092_v39 }
 0x12b   : > { %3643 = vpow2.f32 %v3522_v30  ;;  %v5134_v38 = vpop.eup %3639  ;;  %v1796_v13 = vmul.f32 %v5082_v29, %v1795_v9  ;;  %vm5250_vm4 = vmor %vm2023_vm11, %vm2024_vm2  ;;  %vm2038_vm7 = vweird.f32 %v5097_v4  ;;  %v2042_v0 = vand.u32 2147483647, %v5097_v4 }
 0x12c   : > { %3645 = vpow2.f32 %v3508_v56  ;;  %v2020_v12 = vsub.f32 1.0, %v2019_v42  ;;  %v2007_v56 = vadd.f32 %v5066_v50, %v2006_v36  ;;  %v1809_v18 = vmul.f32 %v5134_v38, %v5076_v60 }
 0x12d   : > { %v1442_v20 = vpop.f32.mrf.mxu2  ;;  %3647 = vrcp.f32 %v5097_v4  ;;  %v5185_v42 = vadd.f32 %v4905_v57, %v1555_v17  ;;  %v1797_v63 = vadd.f32 %v5082_v29, %v1796_v13  ;;  %v1804_v36 = vand.u32 2147483648, %v5049_v22 }
 0x12e   : > { %v1592_v8 = vadd.f32 %v1591_v45, %v1442_v20  ;;  %2395 = vrot.lane.b32.xlu0 %v3638_v54, %s3829_s14  ;;  %3649 = vrcp.f32 %v5106_v26  ;;  %v5162_v54 = vsel %vm5100_vm3, %v1775_v52, %v1771_v53  ;;  %v2021_v15 = vmul.f32 %v5092_v39, %v2020_v12  ;;  %v1594_v20 = vpop.f32.mrf.mxu3  ;;  %vm5232_vm3 = vmor %vm1798_vm14, %vm1799_vm15 }
 0x12f   : > { %3651 = vtanh.f32 %v5131_v11  ;;  %v1786_v52 = vsel %vm5168_vm12, %v5063_v47, %v1782_v59  ;;  %v2011_v10 = vsel %vm5191_vm13, %v5066_v50, %v2007_v56  ;;  %v1810_v9 = vsub.f32 1.0, %v1809_v18 }
 0x130   : > { %v5139_v61 = vadd.f32 %v4905_v57, %v1592_v8  ;;  %v3642_v23 = vpop.eup %3641  ;;  %v1802_v8 = vand.u32 2147483647, %v5049_v22  ;;  %v2030_v12 = vor.u32 1.1754944e-38, %v2029_v43  ;;  %v5222_v59 = vsel %vm5144_vm8, %v2015_v2, %v2011_v10  ;;  %v1556_v2 = vpop.f32.mrf.mxu1 }
 0x131   : > { %2427 = vrot.lane.b32.xlu1 %v3642_v23, %s3829_s14  ;;  %v3644_v30 = vpop.eup %3643  ;;  %v5226_v17 = vsel %vm5149_vm9, %v1790_v34, %v1786_v52  ;;  %v1407_v35 = vpop.f32.mrf.mxu0  ;;  %v1801_v34 = vsel %vm5232_vm3, %v5082_v29, %v1797_v63  ;;  %v1805_v13 = vor.u32 1.1754944e-38, %v1804_v36  ;;  %vm1814_vm8 = vweird.f32 %v5134_v38 }
 0x132   : > { %3653 = vtanh.f32 %v5139_v61  ;;  %v3646_v27 = vpop.eup %3645  ;;  %v5208_v41 = vadd.f32 1.0, %v3644_v30  ;;  %vm1803_vm5 = vcmp.eq.f32.partialorder %v1802_v8, 8.507059e+37  ;;  %v1557_v19 = vadd.f32 %v1556_v2, %v1407_v35  ;;  %vm5324_vm13 = vmor %vm1813_vm6, %vm1814_vm8 }
 0x133   : > { %3655 = vpow2.f32 %v3523_v62  ;;  %v5174_v45 = vpop.eup %3647  ;;  %v5197_v51 = vadd.f32 1.0, %v3646_v27  ;;  %v2022_v62 = vadd.f32 %v5092_v39, %v2021_v15  ;;  %v1811_v27 = vmul.f32 %v5134_v38, %v1810_v9 }
 0x134   : > { %3657 = vpow2.f32 %v3524_v24  ;;  %v5181_v28 = vpop.eup %3649  ;;  %v2034_v23 = vmul.f32 %v5174_v45, %v5097_v4  ;;  %v5264_v52 = vsel %vm1803_vm5, %v1805_v13, %v1801_v34  ;;  %vm2039_vm9 = vweird.f32 %v5174_v45 }
 0x135   : > { %v3652_v47 = vpop.eup %3651  ;;  %3659 = vtanh.f32 %v5185_v42  ;;  %v1824_v5 = vmul.f32 %v5181_v28, %v5106_v26  ;;  %v2026_v29 = vsel %vm5250_vm4, %v5092_v39, %v2022_v62  ;;  %v2044_v39 = vand.u32 2147483648, %v5097_v4  ;;  %vm5340_vm14 = vmor %vm2038_vm7, %vm2039_vm9 }
 0x136   : > { %3661 = vpow2.f32 %v3509_v46  ;;  %v2035_v18 = vsub.f32 1.0, %v2034_v23  ;;  %v3525_v46 = vmul.f32 -1.442695, %v4985_v33  ;;  %v5272_v10 = vsel %vm5199_vm1, %v2030_v12, %v2026_v29  ;;  %v1596_v63 = vpop.f32.mrf.mxu3  ;;  %v5292_v23 = vpop.permute.xlu1 %2403 }
 0x137   : > { %3663 = vrcp.f32 %v5197_v51  ;;  %v3510_v62 = vmul.f32 -1.442695, %v4990_v6  ;;  %vm1828_vm10 = vweird.f32 %v5106_v26  ;;  %vm5303_vm11 = vcmp.eq.f32.partialorder %v2042_v0, 8.507059e+37 }
 0x138   : > { %v3654_v53 = vpop.eup %3653  ;;  %v1445_v3 = vpop.f32.mrf.mxu2  ;;  %3665 = vrcp.f32 %v5208_v41  ;;  %v2036_v1 = vmul.f32 %v5174_v45, %v2035_v18  ;;  %v3526_v2 = vmul.f32 -1.442695, %v4993_v55  ;;  %vm1829_vm12 = vweird.f32 %v5181_v28 }
 0x139   : > { %v1595_v50 = vadd.f32 %v1594_v20, %v1445_v3  ;;  %2429 = vrot.lane.b32.xlu2 %v3654_v53, %s3829_s14  ;;  %v3656_v24 = vpop.eup %3655  ;;  %2397 = vrot.lane.b32.xlu1 %v3652_v47, %s3829_s14  ;;  %v1825_v20 = vsub.f32 1.0, %v1824_v5  ;;  %v5275_v53 = vadd.f32 %v5134_v38, %v1811_v27  ;;  %v1817_v3 = vand.u32 2147483647, %v5076_v60  ;;  %v5331_v18 = vpop.permute.xlu2 %2405  ;;  %vm5351_vm15 = vmor %vm1828_vm10, %vm1829_vm12 }
 0x13a   : > { %v3658_v25 = vpop.eup %3657  ;;  %v5255_v21 = vadd.f32 1.0, %v3656_v24  ;;  %v5295_v24 = vpop.permute.xlu0 %2373  ;;  %v3511_v34 = vmul.f32 -1.442695, %v4999_v44  ;;  %v1832_v55 = vand.u32 2147483647, %v5106_v26  ;;  %v1834_v13 = vand.u32 2147483648, %v5106_v26 }
 0x13b   : > { %v5238_v56 = vadd.f32 %v4905_v57, %v1595_v50  ;;  %v3660_v15 = vpop.eup %3659  ;;  %v5261_v43 = vadd.f32 1.0, %v3658_v25  ;;  %v5290_v50 = vadd.f32 %v4905_v57, %v1557_v19  ;;  %v1826_v25 = vmul.f32 %v5181_v28, %v1825_v20 }
 0x13c   : > { %v3662_v47 = vpop.eup %3661  ;;  %v2045_v27 = vor.u32 1.1754944e-38, %v2044_v39  ;;  %v1819_v20 = vand.u32 2147483648, %v5076_v60  ;;  %v1849_v4 = vand.u32 2147483648, %v5197_v51  ;;  %vm5364_vm1 = vcmp.eq.f32.partialorder %v1817_v3, 8.507059e+37 }
 0x13d   : > { %3667 = vtanh.f32 %v5238_v56  ;;  %v5279_v33 = vpop.eup %3663  ;;  %v5297_v12 = vadd.f32 1.0, %v3662_v47  ;;  %v1827_v19 = vadd.f32 %v5181_v28, %v1826_v25  ;;  %v1816_v47 = vsel %vm5324_vm13, %v5134_v38, %v5275_v53 }
 0x13e   : > { %3669 = vrcp.f32 %v5255_v21  ;;  %v5285_v9 = vpop.eup %3665  ;;  %v1839_v5 = vmul.f32 %v5279_v33, %v5197_v51  ;;  %vm5368_vm2 = vcmp.eq.f32.partialorder %v1832_v55, 8.507059e+37  ;;  %v1835_v38 = vor.u32 1.1754944e-38, %v1834_v13 }
 0x13f   : > { %3671 = vrcp.f32 %v5261_v43  ;;  %v2049_v22 = vmul.f32 %v5285_v9, %v5208_v41  ;;  %v1831_v3 = vsel %vm5351_vm15, %v5181_v28, %v1827_v19  ;;  %vm1843_vm3 = vweird.f32 %v5197_v51 }
 0x140   : > { %v1447_v8 = vpop.f32.mrf.mxu2  ;;  %3673 = vpow2.f32 %v3525_v46  ;;  %v1840_v39 = vsub.f32 1.0, %v1839_v5  ;;  %v1820_v5 = vor.u32 1.1754944e-38, %v1819_v20  ;;  %v1850_v55 = vor.u32 1.1754944e-38, %v1849_v4 }
 0x141   : > { %v1597_v36 = vadd.f32 %v1596_v63, %v1447_v8  ;;  %2399 = vrot.lane.b32.xlu2 %v3660_v15, %s3829_s14  ;;  %3675 = vtanh.f32 %v5290_v50  ;;  %v2467_v15 = vmul.f32 %v5211_v37, %v5162_v54  ;;  %v2050_v8 = vsub.f32 1.0, %v2049_v22 }
 0x142   : > { %v1841_v22 = vmul.f32 %v5279_v33, %v1840_v39  ;;  %v5398_v19 = vsel %vm5364_vm1, %v1820_v5, %v1816_v47  ;;  %v3527_v46 = vmul.f32 -1.442695, %v5005_v31  ;;  %v5404_v20 = vsel %vm5368_vm2, %v1835_v38, %v1831_v3 }
 0x143   : > { %v5300_v30 = vadd.f32 %v4905_v57, %v1597_v36  ;;  %v3668_v6 = vpop.eup %3667  ;;  %v2037_v57 = vadd.f32 %v5174_v45, %v2036_v1  ;;  %v2051_v35 = vmul.f32 %v5285_v9, %v2050_v8  ;;  %v2072_v39 = vand.u32 2147483647, %v5255_v21 }
 0x144   : > { %2431 = vrot.lane.b32.xlu0 %v3668_v6, %s3829_s14  ;;  %v5328_v29 = vpop.eup %3669  ;;  %v2408_v25 = vpop.permute.xlu0 %2407  ;;  %v1847_v6 = vand.u32 2147483647, %v5197_v51  ;;  %vm1844_vm5 = vweird.f32 %v5279_v33  ;;  %vm2054_vm6 = vweird.f32 %v5285_v9  ;;  %v2057_v31 = vand.u32 2147483647, %v5208_v41 }
 0x145   : > { %3677 = vtanh.f32 %v5300_v30  ;;  %v5345_v0 = vpop.eup %3671  ;;  %v2041_v26 = vsel %vm5340_vm14, %v5174_v45, %v2037_v57  ;;  %v2064_v53 = vmul.f32 %v5328_v29, %v5255_v21  ;;  %vm2068_vm7 = vweird.f32 %v5255_v21  ;;  %vm5442_vm9 = vmor %vm1843_vm3, %vm1844_vm5 }
 0x146   : > { %3679 = vpow2.f32 %v3510_v62  ;;  %v3674_v60 = vpop.eup %3673  ;;  %v5374_v62 = vpop.permute.xlu1 %2375  ;;  %v5385_v57 = vsel %vm5303_vm11, %v2045_v27, %v2041_v26  ;;  %v2079_v13 = vmul.f32 %v5345_v0, %v5261_v43  ;;  %vm5407_vm4 = vcmp.eq.f32.partialorder %v1847_v6, 8.507059e+37 }
 0x147   : > { %3681 = vrcp.f32 %v5297_v12  ;;  %v3676_v36 = vpop.eup %3675  ;;  %v5392_v28 = vadd.f32 1.0, %v3674_v60  ;;  %v2065_v37 = vsub.f32 1.0, %v2064_v53  ;;  %v5411_v26 = vpop.permute.xlu2 %2379  ;;  %v1842_v8 = vadd.f32 %v5279_v33, %v1841_v22 }
 0x148   : > { %3683 = vpow2.f32 %v3526_v2  ;;  %v2074_v2 = vand.u32 2147483648, %v5255_v21  ;;  %v2080_v1 = vsub.f32 1.0, %v2079_v13  ;;  %v2052_v53 = vadd.f32 %v5285_v9, %v2051_v35 }
 0x149   : > { %3685 = vpow2.f32 %v3511_v34  ;;  %2531 = vrot.lane.b32.xlu2 %v2467_v15, %s3830_s15  ;;  %v2485_v15 = vmul.f32 %v2408_v25, %v5385_v57  ;;  %v2066_v3 = vmul.f32 %v5328_v29, %v2065_v37  ;;  %vm2069_vm8 = vweird.f32 %v5328_v29 }
 0x14a   : > { %v5413_v47 = vor.u32 1.1754944e-38, %v2074_v2  ;;  %3687 = vrcp.f32 %v5392_v28  ;;  %v2483_v2 = vmul.f32 %v5292_v23, %v5222_v59  ;;  %vm2053_vm10 = vweird.f32 %v5208_v41  ;;  %vm5496_vm1 = vmor %vm2068_vm7, %vm2069_vm8 }
 0x14b   : > { %v3678_v45 = vpop.eup %3677  ;;  %3689 = vpow2.f32 %v3527_v46  ;;  %vm5447_vm11 = vcmp.eq.f32.partialorder %v2057_v31, 8.507059e+37  ;;  %v3529_v23 = vmul.f32 -1.442695, %v5033_v48  ;;  %vm5453_vm12 = vcmp.eq.f32.partialorder %v2072_v39, 8.507059e+37  ;;  %vm5463_vm13 = vmor %vm2053_vm10, %vm2054_vm6 }
 0x14c   : > { %v3680_v34 = vpop.eup %3679  ;;  %2433 = vrot.lane.b32.xlu1 %v3678_v45, %s3829_s14  ;;  %2401 = vrot.lane.b32.xlu0 %v3676_v36, %s3829_s14  ;;  %v2059_v36 = vand.u32 2147483648, %v5208_v41  ;;  %v2484_v45 = vmul.f32 %v5331_v18, %v5272_v10  ;;  %v1846_v51 = vsel %vm5442_vm9, %v5279_v33, %v1842_v8  ;;  %v2081_v13 = vmul.f32 %v5345_v0, %v2080_v1 }
 0x14d   : > { %v5390_v44 = vpop.eup %3681  ;;  %v5418_v63 = vadd.f32 1.0, %v3680_v34  ;;  %v2056_v48 = vsel %vm5463_vm13, %v5285_v9, %v2052_v53  ;;  %v3512_v35 = vmul.f32 -1.442695, %v5011_v32  ;;  %v3528_v39 = vmul.f32 -1.442695, %v5015_v16 }
 0x14e   : > { %v3684_v27 = vpop.eup %3683  ;;  %v1854_v25 = vmul.f32 %v5390_v44, %v5297_v12  ;;  %v2378_v22 = vpop.permute.xlu1 %2377  ;;  %v2060_v46 = vor.u32 1.1754944e-38, %v2059_v36  ;;  %vm2083_vm14 = vweird.f32 %v5261_v43  ;;  %v2082_v8 = vadd.f32 %v5345_v0, %v2081_v13 }
 0x14f   : > { %v3686_v60 = vpop.eup %3685  ;;  %v5424_v38 = vadd.f32 1.0, %v3684_v27  ;;  %3691 = vrcp.f32 %v5418_v63  ;;  %v2067_v27 = vadd.f32 %v5328_v29, %v2066_v3  ;;  %v2470_v9 = vmul.f32 %v2378_v22, %v5398_v19 }
 0x150   : > { %v5430_v6 = vadd.f32 1.0, %v3686_v60  ;;  %v1855_v33 = vsub.f32 1.0, %v1854_v25  ;;  %v5477_v37 = vpop.eup %3687  ;;  %v5482_v60 = vsel %vm5407_vm4, %v1850_v55, %v1846_v51  ;;  %v5488_v32 = vsel %vm5447_vm11, %v2060_v46, %v2056_v48  ;;  %v2412_v55 = vpop.permute.xlu2 %2411 }
 0x151   : > { %2567 = vrot.lane.b32.xlu2 %v2485_v15, %s3830_s15  ;;  %3693 = vrcp.f32 %v5424_v38  ;;  %v2087_v15 = vand.u32 2147483647, %v5261_v43  ;;  %v3690_v31 = vpop.eup %3689  ;;  %vm2084_vm15 = vweird.f32 %v5345_v0  ;;  %v2089_v36 = vand.u32 2147483648, %v5261_v43 }
 0x152   : > { %3695 = vrcp.f32 %v5430_v6  ;;  %v1856_v1 = vmul.f32 %v5390_v44, %v1855_v33  ;;  %vm1858_vm3 = vweird.f32 %v5297_v12  ;;  %v2071_v21 = vsel %vm5496_vm1, %v5328_v29, %v2067_v27  ;;  %vm5527_vm4 = vmor %vm2083_vm14, %vm2084_vm15 }
 0x153   : > { %3697 = vpow2.f32 %v3529_v23  ;;  %vm5501_vm2 = vcmp.eq.f32.partialorder %v2087_v15, 8.507059e+37  ;;  %v2469_v25 = vmul.f32 %v5374_v62, %v5264_v52  ;;  %v2468_v5 = vmul.f32 %v5295_v24, %v5226_v17 }
 0x154   : > { %2565 = vrot.lane.b32.xlu1 %v2484_v45, %s3830_s15  ;;  %2563 = vrot.lane.b32.xlu0 %v2483_v2, %s3830_s15  ;;  %3699 = vpow2.f32 %v3512_v35  ;;  %v2094_v45 = vmul.f32 %v5477_v37, %v5392_v28  ;;  %v5519_v2 = vadd.f32 1.0, %v3690_v31  ;;  %vm1859_vm5 = vweird.f32 %v5390_v44 }
 0x155   : > { %v5508_v53 = vpop.eup %3691  ;;  %3701 = vpow2.f32 %v3528_v39  ;;  %v3514_v34 = vmul.f32 -1.442695, %v5047_v7  ;;  %v2086_v24 = vsel %vm5527_vm4, %v5345_v0, %v2082_v8  ;;  %v1862_v23 = vand.u32 2147483647, %v5297_v12  ;;  %vm5558_vm6 = vmor %vm1858_vm3, %vm1859_vm5 }
 0x156   : > { %v1864_v43 = vand.u32 2147483648, %v5297_v12  ;;  %v5544_v51 = vsel %vm5453_vm12, %v5413_v47, %v2071_v21  ;;  %v2090_v22 = vor.u32 1.1754944e-38, %v2089_v36  ;;  %v1857_v7 = vadd.f32 %v5390_v44, %v1856_v1  ;;  %v2410_v48 = vpop.permute.xlu1 %2409 }
 0x157   : > { %v5517_v3 = vpop.eup %3693  ;;  %v1869_v41 = vmul.f32 %v5508_v53, %v5418_v63  ;;  %v2095_v15 = vsub.f32 1.0, %v2094_v45  ;;  %v2102_v33 = vand.u32 2147483647, %v5392_v28  ;;  %v2104_v18 = vand.u32 2147483648, %v5392_v28 }
 0x158   : > { %v5532_v62 = vpop.eup %3695  ;;  %v2109_v0 = vmul.f32 %v5517_v3, %v5424_v38  ;;  %3703 = vrcp.f32 %v5519_v2  ;;  %v3513_v35 = vmul.f32 -1.442695, %v5023_v14  ;;  %v5568_v46 = vsel %vm5501_vm2, %v2090_v22, %v2086_v24  ;;  %v2382_v29 = vpop.permute.xlu2 %2381 }
 0x159   : > { %2537 = vrot.lane.b32.xlu2 %v2470_v9, %s3830_s15  ;;  %v3698_v13 = vpop.eup %3697  ;;  %v1884_v27 = vmul.f32 %v5532_v62, %v5430_v6  ;;  %3705 = vpow2.f32 %v3514_v34  ;;  %vm5571_vm7 = vcmp.eq.f32.partialorder %v1862_v23, 8.507059e+37  ;;  %v1865_v8 = vor.u32 1.1754944e-38, %v1864_v43 }
 0x15a   : > { %v3700_v9 = vpop.eup %3699  ;;  %v5575_v36 = vadd.f32 1.0, %v3698_v13  ;;  %v2486_v14 = vmul.f32 %v2410_v48, %v5488_v32  ;;  %v1861_v4 = vsel %vm5558_vm6, %v5390_v44, %v1857_v7  ;;  %v1870_v1 = vsub.f32 1.0, %v1869_v41 }
 0x15b   : > { %v3702_v16 = vpop.eup %3701  ;;  %v2487_v21 = vmul.f32 %v2412_v55, %v5544_v51  ;;  %v2096_v45 = vmul.f32 %v5477_v37, %v2095_v15  ;;  %vm2098_vm8 = vweird.f32 %v5392_v28  ;;  %3707 = vpow2.f32 %v3513_v35 }
 0x15c   : > { %2535 = vrot.lane.b32.xlu1 %v2469_v25, %s3830_s15  ;;  %2533 = vrot.lane.b32.xlu0 %v2468_v5, %s3830_s15  ;;  %v2110_v25 = vsub.f32 1.0, %v2109_v0  ;;  %v5585_v5 = vadd.f32 1.0, %v3700_v9  ;;  %v1885_v34 = vsub.f32 1.0, %v1884_v27  ;;  %v2105_v24 = vor.u32 1.1754944e-38, %v2104_v18 }
 0x15d   : > { %v5587_v23 = vadd.f32 1.0, %v3702_v16  ;;  %vm1888_vm9 = vweird.f32 %v5430_v6  ;;  %v1892_v44 = vand.u32 2147483647, %v5430_v6  ;;  %vm5592_vm10 = vcmp.eq.f32.partialorder %v2102_v33, 8.507059e+37 }
 0x15e   : > { %v5598_v43 = vsel %vm5571_vm7, %v1865_v8, %v1861_v4  ;;  %v5600_v22 = vpop.eup %3703  ;;  %3709 = vrcp.f32 %v5575_v36  ;;  %v1894_v7 = vand.u32 2147483648, %v5430_v6  ;;  %vm2099_vm11 = vweird.f32 %v5477_v37 }
 0x15f   : > { %v2414_v39 = vpop.permute.xlu0 %2413  ;;  %v1871_v41 = vmul.f32 %v5508_v53, %v1870_v1  ;;  %v3706_v13 = vpop.eup %3705  ;;  %v3532_v48 = vmul.f32 -1.442695, %v5139_v61  ;;  %v2111_v0 = vmul.f32 %v5517_v3, %v2110_v25  ;;  %v2117_v15 = vand.u32 2147483647, %v5424_v38  ;;  %vm5630_vm2 = vmor %vm2098_vm8, %vm2099_vm11 }
 0x160   : > { %v2488_v12 = vmul.f32 %v2414_v39, %v5568_v46  ;;  %v2097_v33 = vadd.f32 %v5477_v37, %v2096_v45  ;;  %3711 = vrcp.f32 %v5585_v5  ;;  %v2119_v18 = vand.u32 2147483648, %v5424_v38  ;;  %v2418_v25 = vpop.permute.xlu2 %2417 }
 0x161   : > { %v1886_v47 = vmul.f32 %v5532_v62, %v1885_v34  ;;  %vm1873_vm12 = vweird.f32 %v5418_v63  ;;  %3713 = vrcp.f32 %v5587_v23  ;;  %vm1889_vm13 = vweird.f32 %v5532_v62  ;;  %v3708_v39 = vpop.eup %3707 }
 0x162   : > { %2573 = vrot.lane.b32.xlu2 %v2488_v12, %s3830_s15  ;;  %vm5617_vm14 = vcmp.eq.f32.partialorder %v1892_v44, 8.507059e+37  ;;  %vm1874_vm15 = vweird.f32 %v5508_v53  ;;  %v5623_v9 = vadd.f32 1.0, %v3706_v13  ;;  %vm2114_vm1 = vweird.f32 %v5517_v3  ;;  %vm5653_vm3 = vmor %vm1888_vm9, %vm1889_vm13 }
 0x163   : > { %v1872_v31 = vadd.f32 %v5508_v53, %v1871_v41  ;;  %v2124_v8 = vmul.f32 %v5600_v22, %v5519_v2  ;;  %3715 = vpow2.f32 %v3532_v48  ;;  %v2472_v16 = vmul.f32 %v2382_v29, %v5482_v60  ;;  %vm5670_vm6 = vmor %vm1873_vm12, %vm1874_vm15 }
 0x164   : > { %2571 = vrot.lane.b32.xlu1 %v2487_v21, %s3830_s15  ;;  %2569 = vrot.lane.b32.xlu0 %v2486_v14, %s3830_s15  ;;  %v2112_v14 = vadd.f32 %v5517_v3, %v2111_v0  ;;  %v2101_v4 = vsel %vm5630_vm2, %v5477_v37, %v2097_v33  ;;  %v5643_v28 = vpop.eup %3709  ;;  %v3530_v1 = vmul.f32 -1.442695, %v5052_v58  ;;  %v2471_v21 = vmul.f32 %v5411_v26, %v5404_v20 }
 0x165   : > { %v1887_v45 = vadd.f32 %v5532_v62, %v1886_v47  ;;  %v1879_v37 = vand.u32 2147483648, %v5418_v63  ;;  %v5658_v34 = vadd.f32 1.0, %v3708_v39  ;;  %vm2113_vm4 = vweird.f32 %v5424_v38 }
 0x166   : > { %vm5661_vm5 = vcmp.eq.f32.partialorder %v2117_v15, 8.507059e+37  ;;  %v1895_v26 = vor.u32 1.1754944e-38, %v1894_v7  ;;  %v5674_v41 = vpop.eup %3711  ;;  %3717 = vrcp.f32 %v5623_v9  ;;  %vm5679_vm7 = vmor %vm2113_vm4, %vm2114_vm1  ;;  %v2120_v7 = vor.u32 1.1754944e-38, %v2119_v18 }
 0x167   : > { %v2384_v35 = vpop.permute.xlu0 %2383  ;;  %v5686_v13 = vsel %vm5592_vm10, %v2105_v24, %v2101_v4  ;;  %v2125_v48 = vsub.f32 1.0, %v2124_v8  ;;  %v5688_v0 = vpop.eup %3713  ;;  %v3517_v15 = vmul.f32 -1.442695, %v5185_v42  ;;  %v2116_v33 = vsel %vm5679_vm7, %v5517_v3, %v2112_v14 }
 0x168   : > { %v2473_v27 = vmul.f32 %v2384_v35, %v5598_v43  ;;  %v2154_v47 = vmul.f32 %v5643_v28, %v5575_v36  ;;  %v1876_v18 = vsel %vm5670_vm6, %v5508_v53, %v1872_v31  ;;  %3719 = vpow2.f32 %v3530_v1 }
 0x169   : > { %v1891_v24 = vsel %vm5653_vm3, %v5532_v62, %v1887_v45  ;;  %v1877_v55 = vand.u32 2147483647, %v5418_v63  ;;  %v1880_v35 = vor.u32 1.1754944e-38, %v1879_v37  ;;  %v3716_v42 = vpop.eup %3715  ;;  %3721 = vrcp.f32 %v5658_v34  ;;  %v2388_v37 = vpop.permute.xlu2 %2387 }
 0x16a   : > { %2543 = vrot.lane.b32.xlu2 %v2473_v27, %s3830_s15  ;;  %v2416_v44 = vpop.permute.xlu1 %2415  ;;  %v2132_v3 = vand.u32 2147483647, %v5519_v2  ;;  %v2134_v27 = vand.u32 2147483648, %v5519_v2  ;;  %v1899_v39 = vmul.f32 %v5674_v41, %v5585_v5  ;;  %v5710_v53 = vsel %vm5661_vm5, %v2120_v7, %v2116_v33 }
 0x16b   : > { %v2489_v12 = vmul.f32 %v2416_v44, %v5686_v13  ;;  %v2126_v62 = vmul.f32 %v5600_v22, %v2125_v48  ;;  %v2139_v63 = vmul.f32 %v5688_v0, %v5587_v23  ;;  %v3515_v31 = vmul.f32 -1.442695, %v5069_v49 }
 0x16c   : > { %2541 = vrot.lane.b32.xlu1 %v2472_v16, %s3830_s15  ;;  %2539 = vrot.lane.b32.xlu0 %v2471_v21, %s3830_s15  ;;  %3723 = vpow2.f32 %v3517_v15  ;;  %v2490_v8 = vmul.f32 %v2418_v25, %v5710_v53  ;;  %v2155_v16 = vsub.f32 1.0, %v2154_v47  ;;  %v5718_v14 = vpop.eup %3717  ;;  %v5720_v4 = vadd.f32 1.0, %v3716_v42 }
 0x16d   : > { %v5724_v1 = vsel %vm5617_vm14, %v1895_v26, %v1891_v24  ;;  %vm1878_vm8 = vcmp.eq.f32.partialorder %v1877_v55, 8.507059e+37  ;;  %vm2128_vm9 = vweird.f32 %v5519_v2  ;;  %vm5730_vm10 = vcmp.eq.f32.partialorder %v2132_v3, 8.507059e+37 }
 0x16e   : > { %v5728_v21 = vsel %vm1878_vm8, %v1880_v35, %v1876_v18  ;;  %v2135_v25 = vor.u32 1.1754944e-38, %v2134_v27  ;;  %v1900_v45 = vsub.f32 1.0, %v1899_v39  ;;  %v3720_v29 = vpop.eup %3719  ;;  %v2127_v61 = vadd.f32 %v5600_v22, %v2126_v62 }
 0x16f   : > { %vm2129_vm11 = vweird.f32 %v5600_v22  ;;  %v2140_v58 = vsub.f32 1.0, %v2139_v63  ;;  %vm1903_vm12 = vweird.f32 %v5585_v5  ;;  %v5738_v26 = vpop.eup %3721  ;;  %3725 = vpow2.f32 %v3515_v31 }
 0x170   : > { %v2156_v44 = vmul.f32 %v5643_v28, %v2155_v16  ;;  %v1929_v38 = vmul.f32 %v5718_v14, %v5623_v9  ;;  %vm1904_vm13 = vweird.f32 %v5674_v41  ;;  %v3531_v7 = vmul.f32 -1.442695, %v5087_v40  ;;  %vm5754_vm14 = vmor %vm2128_vm9, %vm2129_vm11 }
 0x171   : > { %3727 = vrcp.f32 %v5720_v4  ;;  %v1907_v48 = vand.u32 2147483647, %v5585_v5  ;;  %v1909_v15 = vand.u32 2147483648, %v5585_v5  ;;  %v5748_v47 = vadd.f32 1.0, %v3720_v29  ;;  %vm5817_vm9 = vmor %vm1903_vm12, %vm1904_vm13 }
 0x172   : > { %v2386_v6 = vpop.permute.xlu1 %2385  ;;  %v3724_v33 = vpop.eup %3723  ;;  %vm2143_vm15 = vweird.f32 %v5587_v23  ;;  %v2147_v40 = vand.u32 2147483647, %v5587_v23  ;;  %v1901_v24 = vmul.f32 %v5674_v41, %v1900_v45  ;;  %v2131_v35 = vsel %vm5754_vm14, %v5600_v22, %v2127_v61 }
 0x173   : > { %v2474_v55 = vmul.f32 %v2386_v6, %v5728_v21  ;;  %v2141_v42 = vmul.f32 %v5688_v0, %v2140_v58  ;;  %v1914_v2 = vmul.f32 %v5738_v26, %v5658_v34  ;;  %v2475_v3 = vmul.f32 %v2388_v37, %v5724_v1 }
 0x174   : > { %2577 = vrot.lane.b32.xlu1 %v2490_v8, %s3830_s15  ;;  %2575 = vrot.lane.b32.xlu0 %v2489_v12, %s3830_s15  ;;  %v2157_v27 = vadd.f32 %v5643_v28, %v2156_v44  ;;  %vm2159_vm1 = vweird.f32 %v5643_v28  ;;  %v1930_v39 = vsub.f32 1.0, %v1929_v38  ;;  %3729 = vpow2.f32 %v3531_v7 }
 0x175   : > { %v5771_v12 = vadd.f32 1.0, %v3724_v33  ;;  %v2164_v62 = vand.u32 2147483648, %v5575_v36  ;;  %v2149_v63 = vand.u32 2147483648, %v5587_v23  ;;  %v3726_v22 = vpop.eup %3725  ;;  %3731 = vrcp.f32 %v5748_v47 }
 0x176   : > { %vm2158_vm2 = vweird.f32 %v5575_v36  ;;  %v2162_v31 = vand.u32 2147483647, %v5575_v36  ;;  %vm5779_vm3 = vcmp.eq.f32.partialorder %v2147_v40, 8.507059e+37  ;;  %vm5783_vm4 = vcmp.eq.f32.partialorder %v1907_v48, 8.507059e+37 }
 0x177   : > { %v5787_v45 = vpop.eup %3727  ;;  %v3516_v29 = vmul.f32 -1.442695, %v5131_v11  ;;  %vm5792_vm5 = vmor %vm2158_vm2, %vm2159_vm1  ;;  %v5799_v36 = vsel %vm5730_vm10, %v2135_v25, %v2131_v35  ;;  %vm2144_vm6 = vweird.f32 %v5688_v0  ;;  %v1902_v58 = vadd.f32 %v5674_v41, %v1901_v24 }
 0x178   : > { %v2424_v61 = vpop.permute.xlu2 %2423  ;;  %v2161_v11 = vsel %vm5792_vm5, %v5643_v28, %v2157_v27  ;;  %v1931_v44 = vmul.f32 %v5718_v14, %v1930_v39  ;;  %v2142_v38 = vadd.f32 %v5688_v0, %v2141_v42  ;;  %v1915_v7 = vsub.f32 1.0, %v1914_v2  ;;  %vm5831_vm11 = vmor %vm2143_vm15, %vm2144_vm6 }
 0x179   : > { %3733 = vrcp.f32 %v5771_v12  ;;  %v2165_v48 = vor.u32 1.1754944e-38, %v2164_v62  ;;  %v2150_v25 = vor.u32 1.1754944e-38, %v2149_v63  ;;  %v5810_v33 = vadd.f32 1.0, %v3726_v22 }
 0x17a   : > { %vm2163_vm7 = vcmp.eq.f32.partialorder %v2162_v31, 8.507059e+37  ;;  %vm1933_vm8 = vweird.f32 %v5623_v9  ;;  %v2199_v18 = vmul.f32 %v5787_v45, %v5720_v4  ;;  %v3730_v40 = vpop.eup %3729  ;;  %3735 = vpow2.f32 %v3516_v29 }
 0x17b   : > { %v5823_v24 = vsel %vm2163_vm7, %v2165_v48, %v2161_v11  ;;  %vm1934_vm10 = vweird.f32 %v5718_v14  ;;  %v5838_v35 = vpop.eup %3731  ;;  %v1932_v2 = vadd.f32 %v5718_v14, %v1931_v44  ;;  %v1916_v23 = vmul.f32 %v5738_v26, %v1915_v7 }
 0x17c   : > { %2547 = vrot.lane.b32.xlu1 %v2475_v3, %s3830_s15  ;;  %2545 = vrot.lane.b32.xlu0 %v2474_v55, %s3830_s15  ;;  %v1906_v55 = vsel %vm5817_vm9, %v5674_v41, %v1902_v58  ;;  %v2493_v42 = vmul.f32 %v2424_v61, %v5823_v24  ;;  %v2146_v3 = vsel %vm5831_vm11, %v5688_v0, %v2142_v38  ;;  %v1937_v27 = vand.u32 2147483647, %v5623_v9  ;;  %vm5860_vm14 = vmor %vm1933_vm8, %vm1934_vm10 }
 0x17d   : > { %v2420_v6 = vpop.permute.xlu0 %2419  ;;  %v1939_v39 = vand.u32 2147483648, %v5623_v9  ;;  %v1910_v62 = vor.u32 1.1754944e-38, %v1909_v15  ;;  %vm1918_vm12 = vweird.f32 %v5658_v34  ;;  %3737 = vrcp.f32 %v5810_v33 }
 0x17e   : > { %v2491_v49 = vmul.f32 %v2420_v6, %v5799_v36  ;;  %v5850_v41 = vadd.f32 1.0, %v3730_v40  ;;  %v2200_v63 = vsub.f32 1.0, %v2199_v18  ;;  %vm1919_vm13 = vweird.f32 %v5738_v26 }
 0x17f   : > { %v5854_v22 = vpop.eup %3733  ;;  %v5866_v15 = vsel %vm5779_vm3, %v2150_v25, %v2146_v3  ;;  %v5870_v29 = vsel %vm5783_vm4, %v1910_v62, %v1906_v55  ;;  %v1924_v37 = vand.u32 2147483648, %v5658_v34  ;;  %v2169_v61 = vmul.f32 %v5838_v35, %v5748_v47  ;;  %vm5886_vm15 = vmor %vm1918_vm12, %vm1919_vm13 }
 0x180   : > { %2579 = vrot.lane.b32.xlu2 %v2491_v49, %s3830_s15  ;;  %v1936_v9 = vsel %vm5860_vm14, %v5718_v14, %v1932_v2  ;;  %v1917_v8 = vadd.f32 %v5738_v26, %v1916_v23  ;;  %v1922_v44 = vand.u32 2147483647, %v5658_v34  ;;  %v3736_v6 = vpop.eup %3735  ;;  %v1940_v16 = vor.u32 1.1754944e-38, %v1939_v39  ;;  %v2394_v38 = vpop.permute.xlu2 %2393 }
 0x181   : > { %3739 = vrcp.f32 %v5850_v41  ;;  %vm1938_vm1 = vcmp.eq.f32.partialorder %v1937_v27, 8.507059e+37  ;;  %v2201_v14 = vmul.f32 %v5787_v45, %v2200_v63  ;;  %v1974_v49 = vmul.f32 %v5854_v22, %v5771_v12 }
 0x182   : > { %v5895_v25 = vsel %vm1938_vm1, %v1940_v16, %v1936_v9  ;;  %v1925_v28 = vor.u32 1.1754944e-38, %v1924_v37  ;;  %v2170_v34 = vsub.f32 1.0, %v2169_v61  ;;  %v3533_v40 = vmul.f32 -1.442695, %v5238_v56 }
 0x183   : > { %v5898_v18 = vpop.eup %3737  ;;  %v2478_v5 = vmul.f32 %v2394_v38, %v5895_v25  ;;  %v1921_v55 = vsel %vm5886_vm15, %v5738_v26, %v1917_v8  ;;  %vm1923_vm2 = vcmp.eq.f32.partialorder %v1922_v44, 8.507059e+37  ;;  %v2202_v2 = vadd.f32 %v5787_v45, %v2201_v14 }
 0x184   : > { %2583 = vrot.lane.b32.xlu1 %v2493_v42, %s3830_s15  ;;  %v5905_v42 = vadd.f32 1.0, %v3736_v6  ;;  %vm2204_vm3 = vweird.f32 %v5787_v45  ;;  %v1975_v3 = vsub.f32 1.0, %v1974_v49  ;;  %v2209_v23 = vand.u32 2147483648, %v5720_v4 }
 0x185   : > { %v2422_v31 = vpop.permute.xlu1 %2421  ;;  %v2390_v11 = vpop.permute.xlu0 %2389  ;;  %v5911_v27 = vsel %vm1923_vm2, %v1925_v28, %v1921_v55  ;;  %v2171_v39 = vmul.f32 %v5838_v35, %v2170_v34  ;;  %v1944_v26 = vmul.f32 %v5898_v18, %v5810_v33  ;;  %3741 = vpow2.f32 %v3533_v40 }
 0x186   : > { %v2492_v58 = vmul.f32 %v2422_v31, %v5866_v15  ;;  %v2476_v7 = vmul.f32 %v2390_v11, %v5870_v29  ;;  %vm2203_vm4 = vweird.f32 %v5720_v4  ;;  %v2207_v63 = vand.u32 2147483647, %v5720_v4 }
 0x187   : > { %v5916_v62 = vpop.eup %3739  ;;  %3743 = vrcp.f32 %v5905_v42  ;;  %vm5922_vm5 = vmor %vm2203_vm4, %vm2204_vm3  ;;  %v2177_v37 = vand.u32 2147483647, %v5748_v47  ;;  %v1976_v9 = vmul.f32 %v5854_v22, %v1975_v3  ;;  %vm2174_vm6 = vweird.f32 %v5838_v35 }
 0x188   : > { %2581 = vrot.lane.b32.xlu0 %v2492_v58, %s3830_s15  ;;  %2549 = vrot.lane.b32.xlu2 %v2476_v7, %s3830_s15  ;;  %v2206_v61 = vsel %vm5922_vm5, %v5787_v45, %v2202_v2  ;;  %v2179_v4 = vand.u32 2147483648, %v5748_v47  ;;  %v2210_v58 = vor.u32 1.1754944e-38, %v2209_v23  ;;  %v2172_v11 = vadd.f32 %v5838_v35, %v2171_v39 }
 0x189   : > { %v2184_v8 = vmul.f32 %v5916_v62, %v5850_v41  ;;  %v1945_v44 = vsub.f32 1.0, %v1944_v26  ;;  %v3518_v6 = vmul.f32 -1.442695, %v5290_v50  ;;  %vm2208_vm7 = vcmp.eq.f32.partialorder %v2207_v63, 8.507059e+37 }
 0x18a   : > { %vm1978_vm8 = vweird.f32 %v5771_v12  ;;  %vm1979_vm9 = vweird.f32 %v5854_v22  ;;  %v5940_v45 = vsel %vm2208_vm7, %v2210_v58, %v2206_v61  ;;  %v1984_v38 = vand.u32 2147483648, %v5771_v12 }
 0x18b   : > { %vm2173_vm10 = vweird.f32 %v5748_v47  ;;  %v3742_v7 = vpop.eup %3741  ;;  %v1977_v14 = vadd.f32 %v5854_v22, %v1976_v9  ;;  %v1982_v49 = vand.u32 2147483647, %v5771_v12  ;;  %vm5955_vm12 = vmor %vm1978_vm8, %vm1979_vm9  ;;  %v2185_v40 = vsub.f32 1.0, %v2184_v8 }
 0x18c   : > { %2553 = vrot.lane.b32.xlu1 %v2478_v5, %s3830_s15  ;;  %vm5949_vm11 = vmor %vm2173_vm10, %vm2174_vm6  ;;  %v1946_v5 = vmul.f32 %v5898_v18, %v1945_v44  ;;  %3745 = vpow2.f32 %v3518_v6  ;;  %vm2178_vm13 = vcmp.eq.f32.partialorder %v2177_v37, 8.507059e+37  ;;  %v2180_v12 = vor.u32 1.1754944e-38, %v2179_v4 }
 0x18d   : > { %v2392_v56 = vpop.permute.xlu1 %2391  ;;  %v5953_v28 = vpop.eup %3743  ;;  %v2176_v47 = vsel %vm5949_vm11, %v5838_v35, %v2172_v11  ;;  %vm1948_vm14 = vweird.f32 %v5810_v33  ;;  %v5965_v55 = vadd.f32 1.0, %v3742_v7  ;;  %v1985_v2 = vor.u32 1.1754944e-38, %v1984_v38  ;;  %v2275_v38 = vld [vmem:[%s5993_s19] sm:$0xff] }
 0x18e   : > { %v2477_v0 = vmul.f32 %v2392_v56, %v5911_v27  ;;  %vm1949_vm15 = vweird.f32 %v5898_v18  ;;  %v1952_v3 = vand.u32 2147483647, %v5810_v33  ;;  %v1981_v35 = vsel %vm5955_vm12, %v5854_v22, %v1977_v14 }
 0x18f   : > { %vm1983_vm1 = vcmp.eq.f32.partialorder %v1982_v49, 8.507059e+37  ;;  %v5972_v23 = vsel %vm2178_vm13, %v2180_v12, %v2176_v47  ;;  %v1954_v39 = vand.u32 2147483648, %v5810_v33  ;;  %v2186_v63 = vmul.f32 %v5916_v62, %v2185_v40  ;;  %vm5980_vm2 = vmor %vm1948_vm14, %vm1949_vm15 }
 0x190   : > { %2551 = vrot.lane.b32.xlu0 %v2477_v0, %s3830_s15  ;;  %v1947_v0 = vadd.f32 %v5898_v18, %v1946_v5  ;;  %v1959_v31 = vmul.f32 %v5953_v28, %v5905_v42  ;;  %3747 = vrcp.f32 %v5965_v55  ;;  %v5985_v22 = vsel %vm1983_vm1, %v1985_v2, %v1981_v35 }
 0x191   : > { %vm1953_vm3 = vcmp.eq.f32.partialorder %v1952_v3, 8.507059e+37  ;;  %v1955_v4 = vor.u32 1.1754944e-38, %v1954_v39  ;;  %v2187_v58 = vadd.f32 %v5916_v62, %v2186_v63  ;;  %vm2189_vm4 = vweird.f32 %v5916_v62 }
 0x192   : > { %v3746_v33 = vpop.eup %3745  ;;  %v1951_v11 = vsel %vm5980_vm2, %v5898_v18, %v1947_v0  ;;  %v1960_v8 = vsub.f32 1.0, %v1959_v31  ;;  %v2194_v44 = vand.u32 2147483648, %v5850_v41  ;;  %vm2188_vm5 = vweird.f32 %v5850_v41 }
 0x193   : > { %v2430_v16 = vpop.permute.xlu2 %2429  ;;  %v6002_v6 = vadd.f32 1.0, %v3746_v33  ;;  %vm2190_vm6 = vmor %vm2188_vm5, %vm2189_vm4  ;;  %v6007_v7 = vsel %vm1953_vm3, %v1955_v4, %v1951_v11  ;;  %v2307_v47 = vmul.f32 %v2275_v38, %v5162_v54  ;;  %vm1963_vm8 = vweird.f32 %v5905_v42 }
 0x194   : > { %v2496_v48 = vmul.f32 %v2430_v16, %v5940_v45  ;;  %v2192_v16 = vand.u32 2147483647, %v5850_v41  ;;  %v2191_v49 = vsel %vm2190_vm6, %v5916_v62, %v2187_v58  ;;  %v1961_v50 = vmul.f32 %v5953_v28, %v1960_v8 }
 0x195   : > { %v2195_v34 = vor.u32 1.1754944e-38, %v2194_v44  ;;  %3749 = vrcp.f32 %v6002_v6  ;;  %vm1964_vm9 = vweird.f32 %v5953_v28  ;;  %v1969_v35 = vand.u32 2147483648, %v5905_v42 }
 0x196   : > { %2589 = vrot.lane.b32.xlu1 %v2496_v48, %s3830_s15  ;;  %v3748_v14 = vpop.eup %3747  ;;  %vm2193_vm7 = vcmp.eq.f32.partialorder %v2192_v16, 8.507059e+37  ;;  %v1962_v3 = vadd.f32 %v5953_v28, %v1961_v50  ;;  %vm1965_vm10 = vmor %vm1963_vm8, %vm1964_vm9  ;;  %v3534_v0 = vmul.f32 -1.442695, %v5300_v30  ;;  %v2224_v58 = vand.u32 2147483648, %v5965_v55 }
 0x197   : > { %v6015_v41 = vsel %vm2193_vm7, %v2195_v34, %v2191_v49  ;;  %v2214_v2 = vmul.f32 %v3748_v14, %v5965_v55  ;;  %v1970_v31 = vor.u32 1.1754944e-38, %v1969_v35  ;;  %vm2219_vm12 = vweird.f32 %v3748_v14  ;;  %v2292_v35 = vld [vmem:[%s5993_s19 + $0x88] sm:$0xff] }
 0x198   : > { %v2426_v56 = vpop.permute.xlu0 %2425  ;;  %v1966_v63 = vsel %vm1965_vm10, %v5953_v28, %v1962_v3  ;;  %vm2218_vm13 = vweird.f32 %v5965_v55  ;;  %v2222_v11 = vand.u32 2147483647, %v5965_v55  ;;  %v2225_v38 = vor.u32 1.1754944e-38, %v2224_v58 }
 0x199   : > { %v2494_v26 = vmul.f32 %v2426_v56, %v5972_v23  ;;  %v1967_v56 = vand.u32 2147483647, %v5905_v42  ;;  %v2215_v39 = vsub.f32 1.0, %v2214_v2  ;;  %vm2220_vm14 = vmor %vm2218_vm13, %vm2219_vm12  ;;  %vm1993_vm1 = vweird.f32 %v6002_v6 }
 0x19a   : > { %vm2223_vm15 = vcmp.eq.f32.partialorder %v2222_v11, 8.507059e+37  ;;  %v1999_v55 = vand.u32 2147483648, %v6002_v6  ;;  %vm3139_vm9 = vcmask 523264  }
 0x19b   : > { %v2400_v61 = vpop.permute.xlu2 %2399  ;;  %2585 = vrot.lane.b32.xlu2 %v2494_v26, %s3830_s15  ;;  %v3750_v26 = vpop.eup %3749  ;;  %vm1968_vm11 = vcmp.eq.f32.partialorder %v1967_v56, 8.507059e+37  ;;  %v2291_v56 = vld [vmem:[%s5993_s19 + $0x80] sm:$0xff] }
 0x19c   : > { %v2481_v9 = vmul.f32 %v2400_v61, %v5985_v22  ;;  %v6028_v61 = vsel %vm1968_vm11, %v1970_v31, %v1966_v63  ;;  %v1989_v4 = vmul.f32 %v3750_v26, %v6002_v6  ;;  %vm1994_vm2 = vweird.f32 %v3750_v26 }
 0x19d   : > { %vm1995_vm3 = vmor %vm1993_vm1, %vm1994_vm2 }
 0x19e   : > { %2559 = vrot.lane.b32.xlu1 %v2481_v9, %s3830_s15  ;;  %v2216_v9 = vmul.f32 %v3748_v14, %v2215_v39  ;;  %v1990_v28 = vsub.f32 1.0, %v1989_v4 }
 0x1a0   : > { %v2396_v48 = vpop.permute.xlu0 %2395  ;;  %v2217_v30 = vadd.f32 %v3748_v14, %v2216_v9  ;;  %v1991_v16 = vmul.f32 %v3750_v26, %v1990_v28  ;;  %v2276_v28 = vld [vmem:[%s5993_s19 + $0x8] sm:$0xff] }
 0x1a1   : > { %v2479_v18 = vmul.f32 %v2396_v48, %v6007_v7 }
 0x1a2   : > { %v2221_v44 = vsel %vm2220_vm14, %v3748_v14, %v2217_v30  ;;  %v1992_v34 = vadd.f32 %v3750_v26, %v1991_v16  ;;  %v1997_v14 = vand.u32 2147483647, %v6002_v6  ;;  %v2308_v16 = vmul.f32 %v2276_v28, %v5226_v17 }
 0x1a3   : > { %v2532_v40 = vpop.permute.xlu2 %2531  ;;  %2555 = vrot.lane.b32.xlu2 %v2479_v18, %s3830_s15  ;;  %v2428_v5 = vpop.permute.xlu1 %2427  ;;  %v6039_v49 = vsel %vm2223_vm15, %v2225_v38, %v2221_v44 }
 0x1a4   : > { %v2627_v12 = vadd.f32 %v2532_v40, %v2307_v47  ;;  %v2495_v62 = vmul.f32 %v2428_v5, %v6015_v41  ;;  %v1996_v47 = vsel %vm1995_vm3, %v3750_v26, %v1992_v34  ;;  %v2000_v40 = vor.u32 1.1754944e-38, %v1999_v55 }
 0x1a5   : > { %vm1998_vm4 = vcmp.eq.f32.partialorder %v1997_v14, 8.507059e+37  ;;  %v2324_v26 = vmul.f32 %v2292_v35, %v5272_v10 }
 0x1a6   : > { %3751 = vtanh.f32 %v2627_v12  ;;  %2587 = vrot.lane.b32.xlu0 %v2495_v62, %s3830_s15 }
 0x1a7   : > { %3753 = vpow2.f32 %v3534_v0  ;;  %v2323_v0 = vmul.f32 %v2291_v56, %v5222_v59 }
 0x1ab   : > { %3011 = vrot.lane.b32.xlu2 %v2627_v12, %s3831_s20  ;;  %v2398_v33 = vpop.permute.xlu1 %2397  ;;  %v6047_v12 = vsel %vm1998_vm4, %v2000_v40, %v1996_v47  ;;  %v2568_v39 = vpop.permute.xlu2 %2567  ;;  %v2278_v47 = vld [vmem:[%s5993_s19 + $0x18] sm:$0xff] }
 0x1ac   : > { %v3752_v37 = vpop.eup %3751  ;;  %v2480_v42 = vmul.f32 %v2398_v33, %v6028_v61  ;;  %v2293_v33 = vld [vmem:[%s5993_s19 + $0x90] sm:$0xff] }
 0x1ad   : > { %2723 = vrot.lane.b32.xlu1 %v3752_v37, %s3829_s14  ;;  %v3754_v8 = vpop.eup %3753  ;;  %v2325_v30 = vmul.f32 %v2293_v33, %v5385_v57 }
 0x1ae   : > { %2557 = vrot.lane.b32.xlu0 %v2480_v42, %s3830_s15  ;;  %v6037_v48 = vadd.f32 1.0, %v3754_v8  ;;  %v2277_v42 = vld [vmem:[%s5993_s19 + $0x10] sm:$0xff] }
 0x1af   : > { %v2645_v11 = vadd.f32 %v2568_v39, %v2325_v30  ;;  %v2309_v8 = vmul.f32 %v2277_v42, %v5264_v52 }
 0x1b0   : > { %3755 = vrcp.f32 %v6037_v48  ;;  %v2239_v40 = vand.u32 2147483648, %v6037_v48  ;;  %vm2233_vm6 = vweird.f32 %v6037_v48 }
 0x1b2   : > { %v2240_v56 = vor.u32 1.1754944e-38, %v2239_v40 }
 0x1b3   : > { %v2538_v38 = vpop.permute.xlu2 %2537 }
 0x1b6   : > { %v2432_v18 = vpop.permute.xlu0 %2431  ;;  %v3756_v3 = vpop.eup %3755 }
 0x1b7   : > { %v2497_v50 = vmul.f32 %v2432_v18, %v6039_v49  ;;  %v2229_v6 = vmul.f32 %v3756_v3, %v6037_v48  ;;  %vm2234_vm5 = vweird.f32 %v3756_v3 }
 0x1b8   : > { %vm2235_vm7 = vmor %vm2233_vm6, %vm2234_vm5 }
 0x1b9   : > { %2591 = vrot.lane.b32.xlu2 %v2497_v50, %s3830_s15  ;;  %v2230_v9 = vsub.f32 1.0, %v2229_v6 }
 0x1bb   : > { %v2231_v58 = vmul.f32 %v3756_v3, %v2230_v9  ;;  %v2294_v9 = vld [vmem:[%s5993_s19 + $0x98] sm:$0xff] }
 0x1bc   : > { %v2326_v30 = vmul.f32 %v2294_v9, %v5488_v32 }
 0x1bd   : > { %v2232_v55 = vadd.f32 %v3756_v3, %v2231_v58 }
 0x1be   : > { %v2434_v5 = vpop.permute.xlu1 %2433  ;;  %v2402_v2 = vpop.permute.xlu0 %2401 }
 0x1bf   : > { %v2482_v62 = vmul.f32 %v2402_v2, %v6047_v12  ;;  %v2237_v2 = vand.u32 2147483647, %v6037_v48  ;;  %v2236_v35 = vsel %vm2235_vm7, %v3756_v3, %v2232_v55 }
 0x1c1   : > { %2561 = vrot.lane.b32.xlu2 %v2482_v62, %s3830_s15  ;;  %v2310_v62 = vmul.f32 %v2278_v47, %v5398_v19  ;;  %vm2238_vm8 = vcmp.eq.f32.partialorder %v2237_v2, 8.507059e+37 }
 0x1c3   : > { %v2630_v6 = vadd.f32 %v2538_v38, %v2310_v62 }
 0x1c6   : > { %v2566_v63 = vpop.permute.xlu1 %2565  ;;  %v2564_v37 = vpop.permute.xlu0 %2563 }
 0x1c7   : > { %v2644_v31 = vadd.f32 %v2566_v63, %v2324_v26  ;;  %v2643_v4 = vadd.f32 %v2564_v37, %v2323_v0  ;;  %v6072_v26 = vsel %vm2238_vm8, %v2240_v56, %v2236_v35  ;;  %v2574_v63 = vpop.permute.xlu2 %2573  ;;  %v2281_v35 = vld [vmem:[%s5993_s19 + $0x30] sm:$0xff] }
 0x1c8   : > { %v2498_v37 = vmul.f32 %v2434_v5, %v6072_v26  ;;  %v2295_v5 = vld [vmem:[%s5993_s19 + $0xa0] sm:$0xff] }
 0x1c9   : > { %3045 = vrot.lane.b32.xlu1 %v2644_v31, %s3831_s20  ;;  %3757 = vtanh.f32 %v2643_v4  ;;  %3043 = vrot.lane.b32.xlu0 %v2643_v4, %s3831_s20 }
 0x1ca   : > { %3759 = vtanh.f32 %v2645_v11 }
 0x1ce   : > { %v2536_v44 = vpop.permute.xlu1 %2535  ;;  %v2534_v50 = vpop.permute.xlu0 %2533 }
 0x1cf   : > { %v2629_v18 = vadd.f32 %v2536_v44, %v2309_v8  ;;  %v3758_v34 = vpop.eup %3757  ;;  %v2628_v14 = vadd.f32 %v2534_v50, %v2308_v16  ;;  %v2544_v33 = vpop.permute.xlu2 %2543  ;;  %v2296_v8 = vld [vmem:[%s5993_s19 + $0xa8] sm:$0xff]  ;;  %v2279_v16 = vld [vmem:[%s5993_s19 + $0x20] sm:$0xff] }
 0x1d0   : > { %2755 = vrot.lane.b32.xlu2 %v3758_v34, %s3829_s14  ;;  %v3760_v39 = vpop.eup %3759  ;;  %v2311_v55 = vmul.f32 %v2279_v16, %v5404_v20 }
 0x1d1   : > { %3015 = vrot.lane.b32.xlu1 %v2629_v18, %s3831_s20  ;;  %3761 = vtanh.f32 %v2628_v14  ;;  %3013 = vrot.lane.b32.xlu0 %v2628_v14, %s3831_s20 }
 0x1d2   : > { %3763 = vtanh.f32 %v2630_v6 }
 0x1d3   : > { %3765 = vtanh.f32 %v2644_v31  ;;  %v2327_v31 = vmul.f32 %v2295_v5, %v5544_v51  ;;  %v2298_v5 = vld [vmem:[%s5993_s19 + $0xb8] sm:$0xff] }
 0x1d4   : > { %3767 = vtanh.f32 %v2629_v18  ;;  %v2328_v18 = vmul.f32 %v2296_v8, %v5568_v46 }
 0x1d6   : > { %v2570_v4 = vpop.permute.xlu0 %2569  ;;  %v2572_v42 = vpop.permute.xlu1 %2571  ;;  %v2648_v14 = vadd.f32 %v2574_v63, %v2328_v18  ;;  %v2283_v18 = vld [vmem:[%s5993_s19 + $0x40] sm:$0xff] }
 0x1d7   : > { %v3762_v0 = vpop.eup %3761  ;;  %v2646_v28 = vadd.f32 %v2570_v4, %v2326_v30  ;;  %v2647_v58 = vadd.f32 %v2572_v42, %v2327_v31  ;;  %v2297_v4 = vld [vmem:[%s5993_s19 + $0xb0] sm:$0xff]  ;;  %v2330_v30 = vmul.f32 %v2298_v5, %v5710_v53 }
 0x1d8   : > { %2725 = vrot.lane.b32.xlu2 %v3762_v0, %s3829_s14  ;;  %v3764_v48 = vpop.eup %3763  ;;  %v2329_v42 = vmul.f32 %v2297_v4, %v5686_v13 }
 0x1d9   : > { %2759 = vrot.lane.b32.xlu1 %v3760_v39, %s3829_s14  ;;  %2593 = vrot.lane.b32.xlu0 %v2498_v37, %s3830_s15  ;;  %v3766_v3 = vpop.eup %3765  ;;  %3769 = vtanh.f32 %v2646_v28 }
 0x1da   : > { %v3768_v44 = vpop.eup %3767  ;;  %v2580_v38 = vpop.permute.xlu2 %2579  ;;  %3771 = vtanh.f32 %v2648_v14 }
 0x1de   : > { %v2540_v50 = vpop.permute.xlu0 %2539  ;;  %v2542_v34 = vpop.permute.xlu1 %2541 }
 0x1df   : > { %v2631_v40 = vadd.f32 %v2540_v50, %v2311_v55  ;;  %v3770_v62 = vpop.eup %3769 }
 0x1e0   : > { %3047 = vrot.lane.b32.xlu2 %v2645_v11, %s3831_s20  ;;  %v2280_v11 = vld [vmem:[%s5993_s19 + $0x28] sm:$0xff]  ;;  %v3772_v63 = vpop.eup %3771 }
 0x1e1   : > { %2729 = vrot.lane.b32.xlu1 %v3764_v48, %s3829_s14  ;;  %2757 = vrot.lane.b32.xlu0 %v3766_v3, %s3829_s14  ;;  %v2312_v47 = vmul.f32 %v2280_v11, %v5482_v60  ;;  %3773 = vtanh.f32 %v2631_v40  ;;  %v2282_v11 = vld [vmem:[%s5993_s19 + $0x38] sm:$0xff] }
 0x1e2   : > { %v2550_v56 = vpop.permute.xlu2 %2549  ;;  %v2314_v55 = vmul.f32 %v2282_v11, %v5728_v21 }
 0x1e3   : > { %v2632_v2 = vadd.f32 %v2542_v34, %v2312_v47  ;;  %v2315_v47 = vmul.f32 %v2283_v18, %v5724_v1  ;;  %v2302_v18 = vld [vmem:[%s5993_s19 + $0xd8] sm:$0xff] }
 0x1e6   : > { %v2578_v37 = vpop.permute.xlu1 %2577 }
 0x1e7   : > { %v3774_v0 = vpop.eup %3773  ;;  %v2650_v8 = vadd.f32 %v2578_v37, %v2330_v30  ;;  %v2301_v30 = vld [vmem:[%s5993_s19 + $0xd0] sm:$0xff] }
 0x1e8   : > { %3017 = vrot.lane.b32.xlu2 %v2630_v6, %s3831_s20  ;;  %v2313_v6 = vmul.f32 %v2281_v35, %v5598_v43 }
 0x1e9   : > { %3051 = vrot.lane.b32.xlu1 %v2647_v58, %s3831_s20  ;;  %2727 = vrot.lane.b32.xlu0 %v3768_v44, %s3829_s14  ;;  %v2299_v44 = vld [vmem:[%s5993_s19 + $0xc0] sm:$0xff] }
 0x1ea   : > { %v2633_v39 = vadd.f32 %v2544_v33, %v2313_v6  ;;  %v2576_v33 = vpop.permute.xlu0 %2575  ;;  %v2331_v50 = vmul.f32 %v2299_v44, %v5799_v36  ;;  %v2333_v44 = vmul.f32 %v2301_v30, %v5823_v24 }
 0x1ec   : > { %3775 = vtanh.f32 %v2633_v39 }
 0x1ed   : > { %3777 = vtanh.f32 %v2647_v58  ;;  %v2649_v58 = vadd.f32 %v2576_v33, %v2329_v42 }
 0x1ee   : > { %3779 = vtanh.f32 %v2632_v2  ;;  %v2548_v31 = vpop.permute.xlu1 %2547 }
 0x1ef   : > { %3781 = vtanh.f32 %v2649_v58 }
 0x1f0   : > { %2761 = vrot.lane.b32.xlu2 %v3770_v62, %s3829_s14 }
 0x1f1   : > { %3021 = vrot.lane.b32.xlu1 %v2632_v2, %s3831_s20  ;;  %3049 = vrot.lane.b32.xlu0 %v2646_v28, %s3831_s20  ;;  %v2635_v2 = vadd.f32 %v2548_v31, %v2315_v47  ;;  %v2334_v47 = vmul.f32 %v2302_v18, %v5972_v23  ;;  %v2305_v18 = vld [vmem:[%s5993_s19 + $0xf0] sm:$0xff] }
 0x1f2   : > { %v3776_v3 = vpop.eup %3775  ;;  %v2546_v34 = vpop.permute.xlu0 %2545 }
 0x1f3   : > { %v3778_v9 = vpop.eup %3777 }
 0x1f4   : > { %v3780_v16 = vpop.eup %3779 }
 0x1f5   : > { %v6102_v48 = vpop.permute.xlu2 %2585  ;;  %v3782_v6 = vpop.eup %3781 }
 0x1f6   : > { %v2584_v62 = vpop.permute.xlu1 %2583 }
 0x1f7   : > { %v2653_v11 = vadd.f32 %v2584_v62, %v2333_v44 }
 0x1f8   : > { %2731 = vrot.lane.b32.xlu2 %v3774_v0, %s3829_s14 }
 0x1f9   : > { %2765 = vrot.lane.b32.xlu1 %v3772_v63, %s3829_s14  ;;  %3019 = vrot.lane.b32.xlu0 %v2631_v40, %s3831_s20  ;;  %v2634_v40 = vadd.f32 %v2546_v34, %v2314_v55  ;;  %v2285_v34 = vld [vmem:[%s5993_s19 + $0x50] sm:$0xff]  ;;  %v2286_v55 = vld [vmem:[%s5993_s19 + $0x58] sm:$0xff] }
 0x1fa   : > { %v2317_v62 = vmul.f32 %v2285_v34, %v5911_v27  ;;  %v2289_v34 = vld [vmem:[%s5993_s19 + $0x70] sm:$0xff] }
 0x1fd   : > { %v6111_v28 = vpop.permute.xlu2 %2555 }
 0x200   : > { %3053 = vrot.lane.b32.xlu2 %v2648_v14, %s3831_s20  ;;  %v2651_v14 = vadd.f32 %v2580_v38, %v2331_v50 }
 0x201   : > { %2735 = vrot.lane.b32.xlu1 %v3776_v3, %s3829_s14  ;;  %2763 = vrot.lane.b32.xlu0 %v3778_v9, %s3829_s14  ;;  %v2582_v3 = vpop.permute.xlu0 %2581  ;;  %v2554_v9 = vpop.permute.xlu1 %2553 }
 0x202   : > { %3783 = vtanh.f32 %v2651_v14 }
 0x203   : > { %3785 = vtanh.f32 %v2634_v40 }
 0x205   : > { %v6122_v35 = vpop.permute.xlu2 %3011 }
 0x208   : > { %3023 = vrot.lane.b32.xlu2 %v2633_v39, %s3831_s20  ;;  %v2284_v39 = vld [vmem:[%s5993_s19 + $0x48] sm:$0xff]  ;;  %v3784_v0 = vpop.eup %3783 }
 0x209   : > { %3057 = vrot.lane.b32.xlu1 %v2650_v8, %s3831_s20  ;;  %2733 = vrot.lane.b32.xlu0 %v3780_v16, %s3829_s14  ;;  %v2316_v38 = vmul.f32 %v2284_v39, %v5870_v29  ;;  %v3786_v37 = vpop.eup %3785  ;;  %v6135_v42 = vpop.permute.xlu1 %2589  ;;  %v2318_v39 = vmul.f32 %v2286_v55, %v5895_v25 }
 0x20a   : > { %v2552_v31 = vpop.permute.xlu0 %2551 }
 0x20b   : > { %v2636_v63 = vadd.f32 %v2550_v56, %v2316_v38  ;;  %v2300_v56 = vld [vmem:[%s5993_s19 + $0xc8] sm:$0xff]  ;;  %v2637_v38 = vadd.f32 %v2552_v31, %v2317_v62 }
 0x20d   : > { %3787 = vtanh.f32 %v2636_v63 }
 0x20e   : > { %3789 = vtanh.f32 %v2650_v8  ;;  %v2332_v8 = vmul.f32 %v2300_v56, %v5866_v15 }
 0x20f   : > { %3791 = vtanh.f32 %v2635_v2 }
 0x210   : > { %2767 = vrot.lane.b32.xlu2 %v3782_v6, %s3829_s14  ;;  %v2652_v16 = vadd.f32 %v2582_v3, %v2332_v8  ;;  %v2654_v6 = vadd.f32 %v6102_v48, %v2334_v47 }
 0x211   : > { %3027 = vrot.lane.b32.xlu1 %v2635_v2, %s3831_s20  ;;  %3055 = vrot.lane.b32.xlu0 %v2649_v58, %s3831_s20 }
 0x212   : > { %3793 = vtanh.f32 %v2652_v16 }
 0x213   : > { %v6129_v4 = vpop.permute.xlu2 %2591  ;;  %v3788_v33 = vpop.eup %3787  ;;  %3795 = vtanh.f32 %v2654_v6 }
 0x214   : > { %v3790_v5 = vpop.eup %3789  ;;  %3797 = vtanh.f32 %v2637_v38 }
 0x215   : > { %v3792_v50 = vpop.eup %3791 }
 0x218   : > { %2737 = vrot.lane.b32.xlu2 %v3786_v37, %s3829_s14  ;;  %v2287_v37 = vld [vmem:[%s5993_s19 + $0x60] sm:$0xff] }
 0x219   : > { %2771 = vrot.lane.b32.xlu1 %v3784_v0, %s3829_s14  ;;  %3025 = vrot.lane.b32.xlu0 %v2634_v40, %s3831_s20  ;;  %v2560_v40 = vpop.permute.xlu1 %2559  ;;  %v3794_v0 = vpop.eup %3793  ;;  %v2319_v48 = vmul.f32 %v2287_v37, %v6007_v7 }
 0x21a   : > { %v3796_v56 = vpop.eup %3795 }
 0x21b   : > { %v6141_v58 = vpop.permute.xlu2 %2561  ;;  %v3798_v30 = vpop.eup %3797 }
 0x220   : > { %3059 = vrot.lane.b32.xlu2 %v2651_v14, %s3831_s20  ;;  %v2588_v14 = vpop.permute.xlu0 %2587 }
 0x221   : > { %2741 = vrot.lane.b32.xlu1 %v3788_v33, %s3829_s14  ;;  %2769 = vrot.lane.b32.xlu0 %v3790_v5, %s3829_s14  ;;  %v6161_v3 = vpop.permute.xlu1 %2723 }
 0x228   : > { %3029 = vrot.lane.b32.xlu2 %v2636_v63, %s3831_s20  ;;  %v2638_v63 = vadd.f32 %v2554_v9, %v2318_v39  ;;  %v2558_v5 = vpop.permute.xlu0 %2557  ;;  %v2639_v9 = vadd.f32 %v6111_v28, %v2319_v48  ;;  %v2290_v48 = vld [vmem:[%s5993_s19 + $0x78] sm:$0xff] }
 0x229   : > { %3063 = vrot.lane.b32.xlu1 %v2653_v11, %s3831_s20  ;;  %2739 = vrot.lane.b32.xlu0 %v3792_v50, %s3829_s14  ;;  %v2303_v50 = vld [vmem:[%s5993_s19 + $0xe0] sm:$0xff] }
 0x22a   : > { %v6152_v2 = vpop.permute.xlu2 %2755  ;;  %3799 = vtanh.f32 %v2639_v9  ;;  %v2335_v62 = vmul.f32 %v2303_v50, %v6015_v41 }
 0x22b   : > { %3801 = vtanh.f32 %v2653_v11  ;;  %v2337_v11 = vmul.f32 %v2305_v18, %v6039_v49 }
 0x22c   : > { %3803 = vtanh.f32 %v2638_v63 }
 0x230   : > { %2773 = vrot.lane.b32.xlu2 %v3794_v0, %s3829_s14  ;;  %v2655_v0 = vadd.f32 %v2588_v14, %v2335_v62 }
 0x231   : > { %3033 = vrot.lane.b32.xlu1 %v2638_v63, %s3831_s20  ;;  %3061 = vrot.lane.b32.xlu0 %v2652_v16, %s3831_s20  ;;  %v3800_v16 = vpop.eup %3799  ;;  %v2288_v63 = vld [vmem:[%s5993_s19 + $0x68] sm:$0xff] }
 0x232   : > { %v6163_v33 = vpop.permute.xlu2 %2725  ;;  %v3802_v28 = vpop.eup %3801  ;;  %v2320_v14 = vmul.f32 %v2288_v63, %v6028_v61  ;;  %v2306_v63 = vld [vmem:[%s5993_s19 + $0xf8] sm:$0xff] }
 0x238   : > { %2743 = vrot.lane.b32.xlu2 %v3798_v30, %s3829_s14  ;;  %v2322_v30 = vmul.f32 %v2290_v48, %v6047_v12 }
 0x239   : > { %2777 = vrot.lane.b32.xlu1 %v3796_v56, %s3829_s14  ;;  %3031 = vrot.lane.b32.xlu0 %v2637_v38, %s3831_s20  ;;  %v2321_v38 = vmul.f32 %v2289_v34, %v5985_v22  ;;  %v3804_v56 = vpop.eup %3803 }
 0x23a   : > { %v6170_v31 = vpop.permute.xlu2 %3047  ;;  %v2642_v18 = vadd.f32 %v6141_v58, %v2322_v30 }
 0x23b   : > { %v6172_v8 = vpop.permute.xlu1 %3045  ;;  %v6174_v44 = vpop.permute.xlu0 %3043  ;;  %v2641_v37 = vadd.f32 %v2560_v40, %v2321_v38 }
 0x240   : > { %3065 = vrot.lane.b32.xlu2 %v2654_v6, %s3831_s20  ;;  %v6192_v6 = vadd.f32 %v6129_v4, %v2337_v11 }
 0x241   : > { %2747 = vrot.lane.b32.xlu1 %v3800_v16, %s3829_s14  ;;  %2775 = vrot.lane.b32.xlu0 %v3802_v28, %s3829_s14  ;;  %v2640_v28 = vadd.f32 %v2558_v5, %v2320_v14  ;;  %v2338_v14 = vmul.f32 %v2306_v63, %v6072_v26 }
 0x242   : > { %v6183_v55 = vpop.permute.xlu2 %3017  ;;  %3805 = vtanh.f32 %v6192_v6 }
 0x243   : > { %v6185_v47 = vpop.permute.xlu1 %3015  ;;  %v6188_v39 = vpop.permute.xlu0 %3013  ;;  %3807 = vtanh.f32 %v2655_v0 }
 0x244   : > { %3809 = vtanh.f32 %v2642_v18 }
 0x245   : > { %3811 = vtanh.f32 %v2640_v28 }
 0x248   : > { %3035 = vrot.lane.b32.xlu2 %v2639_v9, %s3831_s20  ;;  %v3806_v50 = vpop.eup %3805  ;;  %v2304_v9 = vld [vmem:[%s5993_s19 + $0xe8] sm:$0xff] }
 0x249   : > { %3039 = vrot.lane.b32.xlu1 %v2641_v37, %s3831_s20  ;;  %2745 = vrot.lane.b32.xlu0 %v3804_v56, %s3829_s14  ;;  %v3808_v34 = vpop.eup %3807  ;;  %v2336_v48 = vmul.f32 %v2304_v9, %v5940_v45 }
 0x24a   : > { %v2762_v16 = vpop.permute.xlu2 %2761  ;;  %v3810_v56 = vpop.eup %3809 }
 0x24b   : > { %v2760_v4 = vpop.permute.xlu1 %2759  ;;  %v2594_v40 = vpop.permute.xlu0 %2593  ;;  %v6209_v58 = vadd.f32 %v6135_v42, %v2336_v48  ;;  %v2835_v42 = vmul.f32 %v6152_v2, %v5222_v59  ;;  %v2838_v63 = vmul.f32 %v2762_v16, %v5488_v32 }
 0x24c   : > { %v3812_v5 = vpop.eup %3811  ;;  %v2837_v32 = vmul.f32 %v2760_v4, %v5385_v57 }
 0x24d   : > { %3813 = vtanh.f32 %v6209_v58 }
 0x250   : > { %2779 = vrot.lane.b32.xlu2 %v3808_v34, %s3829_s14  ;;  %v6221_v34 = vadd.f32 %v2594_v40, %v2338_v14  ;;  %v2820_v40 = vmul.f32 %v6163_v33, %v5226_v17 }
 0x251   : > { %2783 = vrot.lane.b32.xlu1 %v3806_v50, %s3829_s14  ;;  %3067 = vrot.lane.b32.xlu0 %v2655_v0, %s3831_s20 }
 0x252   : > { %v2732_v11 = vpop.permute.xlu2 %2731  ;;  %3815 = vtanh.f32 %v6221_v34 }
 0x253   : > { %v2730_v62 = vpop.permute.xlu1 %2729  ;;  %v2758_v38 = vpop.permute.xlu0 %2757  ;;  %3817 = vtanh.f32 %v2641_v37 }
 0x254   : > { %v3814_v9 = vpop.eup %3813  ;;  %v2836_v14 = vmul.f32 %v2758_v38, %v5272_v10 }
 0x258   : > { %2749 = vrot.lane.b32.xlu2 %v3812_v5, %s3829_s14  ;;  %v3816_v59 = vpop.eup %3815 }
 0x259   : > { %2753 = vrot.lane.b32.xlu1 %v3810_v56, %s3829_s14  ;;  %3037 = vrot.lane.b32.xlu0 %v2640_v28, %s3831_s20  ;;  %v3818_v2 = vpop.eup %3817 }
 0x25a   : > { %v6216_v0 = vpop.permute.xlu2 %3053 }
 0x25b   : > { %v6218_v30 = vpop.permute.xlu1 %3051  ;;  %v2728_v50 = vpop.permute.xlu0 %2727 }
 0x260   : > { %3041 = vrot.lane.b32.xlu2 %v2642_v18, %s3831_s20 }
 0x261   : > { %2915 = vrot.lane.b32.xlu1 %v2835_v42, %s3829_s14  ;;  %2781 = vrot.lane.b32.xlu0 %v3814_v9, %s3829_s14  ;;  %v2819_v42 = vmul.f32 %v6161_v3, %v5162_v54 }
 0x262   : > { %v6229_v28 = vpop.permute.xlu2 %3023 }
 0x263   : > { %v6231_v48 = vpop.permute.xlu1 %3021  ;;  %v6233_v56 = vpop.permute.xlu0 %3049 }
 0x268   : > { %2785 = vrot.lane.b32.xlu2 %v3816_v59, %s3829_s14  ;;  %v2821_v59 = vmul.f32 %v2728_v50, %v5264_v52 }
 0x269   : > { %2885 = vrot.lane.b32.xlu1 %v2820_v40, %s3829_s14  ;;  %2751 = vrot.lane.b32.xlu0 %v3818_v2, %s3829_s14  ;;  %v2823_v40 = vmul.f32 %v2732_v11, %v5404_v20  ;;  %v2822_v20 = vmul.f32 %v2730_v62, %v5398_v19 }
 0x26a   : > { %v2768_v18 = vpop.permute.xlu2 %2767 }
 0x26b   : > { %v2766_v5 = vpop.permute.xlu1 %2765  ;;  %v6240_v37 = vpop.permute.xlu0 %3019  ;;  %v2841_v16 = vmul.f32 %v2768_v18, %v5686_v13 }
 0x270   : > { %2917 = vrot.lane.b32.xlu2 %v2836_v14, %s3829_s14 }
 0x271   : > { %2921 = vrot.lane.b32.xlu1 %v2838_v63, %s3829_s14  ;;  %2883 = vrot.lane.b32.xlu0 %v2819_v42, %s3829_s14 }
 0x272   : > { %v2738_v17 = vpop.permute.xlu2 %2737 }
 0x273   : > { %v2736_v33 = vpop.permute.xlu1 %2735  ;;  %v2764_v9 = vpop.permute.xlu0 %2763  ;;  %v2826_v11 = vmul.f32 %v2738_v17, %v5728_v21 }
 0x274   : > { %v2839_v38 = vmul.f32 %v2764_v9, %v5544_v51  ;;  %v2840_v51 = vmul.f32 %v2766_v5, %v5568_v46  ;;  %v2825_v18 = vmul.f32 %v2736_v33, %v5598_v43 }
 0x278   : > { %2887 = vrot.lane.b32.xlu2 %v2821_v59, %s3829_s14 }
 0x279   : > { %2891 = vrot.lane.b32.xlu1 %v2823_v40, %s3829_s14  ;;  %2919 = vrot.lane.b32.xlu0 %v2837_v32, %s3829_s14 }
 0x27a   : > { %v6255_v54 = vpop.permute.xlu2 %3059 }
 0x27b   : > { %v6257_v10 = vpop.permute.xlu1 %3057  ;;  %v2734_v3 = vpop.permute.xlu0 %2733 }
 0x27c   : > { %v2824_v13 = vmul.f32 %v2734_v3, %v5482_v60 }
 0x280   : > { %2923 = vrot.lane.b32.xlu2 %v2839_v38, %s3829_s14 }
 0x281   : > { %2927 = vrot.lane.b32.xlu1 %v2841_v16, %s3829_s14  ;;  %2889 = vrot.lane.b32.xlu0 %v2822_v20, %s3829_s14 }
 0x282   : > { %v6265_v52 = vpop.permute.xlu2 %3029 }
 0x283   : > { %v6267_v57 = vpop.permute.xlu1 %3027  ;;  %v6269_v4 = vpop.permute.xlu0 %3055 }
 0x288   : > { %2893 = vrot.lane.b32.xlu2 %v2824_v13, %s3829_s14 }
 0x289   : > { %2897 = vrot.lane.b32.xlu1 %v2826_v11, %s3829_s14  ;;  %2925 = vrot.lane.b32.xlu0 %v2840_v51, %s3829_s14 }
 0x28a   : > { %v2774_v19 = vpop.permute.xlu2 %2773 }
 0x28b   : > { %v2772_v62 = vpop.permute.xlu1 %2771  ;;  %v6277_v50 = vpop.permute.xlu0 %3025  ;;  %v2844_v2 = vmul.f32 %v2774_v19, %v5866_v15 }
 0x28c   : > { %v2843_v14 = vmul.f32 %v2772_v62, %v5799_v36 }
 0x291   : > { %2933 = vrot.lane.b32.xlu1 %v2844_v2, %s3829_s14  ;;  %2895 = vrot.lane.b32.xlu0 %v2825_v18, %s3829_s14 }
 0x292   : > { %v2744_v60 = vpop.permute.xlu2 %2743 }
 0x293   : > { %v2742_v46 = vpop.permute.xlu1 %2741  ;;  %v2770_v21 = vpop.permute.xlu0 %2769  ;;  %v2829_v63 = vmul.f32 %v2744_v60, %v5911_v27 }
 0x294   : > { %v2842_v5 = vmul.f32 %v2770_v21, %v5710_v53  ;;  %v2828_v53 = vmul.f32 %v2742_v46, %v5870_v29 }
 0x296   : > { %2929 = vrot.lane.b32.xlu2 %v2842_v5, %s3829_s14 }
 0x299   : > { %2903 = vrot.lane.b32.xlu1 %v2829_v63, %s3829_s14  ;;  %2931 = vrot.lane.b32.xlu0 %v2843_v14, %s3829_s14 }
 0x29a   : > { %v6289_v43 = vpop.permute.xlu2 %3065 }
 0x29b   : > { %v6291_v15 = vpop.permute.xlu1 %3063  ;;  %v2740_v42 = vpop.permute.xlu0 %2739 }
 0x29c   : > { %v2827_v17 = vmul.f32 %v2740_v42, %v5724_v1 }
 0x29e   : > { %2899 = vrot.lane.b32.xlu2 %v2827_v17, %s3829_s14 }
 0x2a1   : > { %2901 = vrot.lane.b32.xlu0 %v2828_v53, %s3829_s14 }
 0x2a2   : > { %v6297_v27 = vpop.permute.xlu2 %3035 }
 0x2a3   : > { %v6299_v36 = vpop.permute.xlu1 %3033  ;;  %v6301_v33 = vpop.permute.xlu0 %3061 }
 0x2aa   : > { %v2780_v9 = vpop.permute.xlu2 %2779 }
 0x2ab   : > { %v2778_v40 = vpop.permute.xlu1 %2777  ;;  %v2847_v59 = vmul.f32 %v2780_v9, %v6015_v41  ;;  %v6304_v32 = vpop.permute.xlu0 %3031 }
 0x2ac   : > { %v2846_v1 = vmul.f32 %v2778_v40, %v5972_v23 }
 0x2ad   : > { %2939 = vrot.lane.b32.xlu1 %v2847_v59, %s3829_s14 }
 0x2ae   : > { %2937 = vrot.lane.b32.xlu0 %v2846_v1, %s3829_s14 }
 0x2b2   : > { %v2750_v29 = vpop.permute.xlu2 %2749 }
 0x2b3   : > { %v2748_v3 = vpop.permute.xlu1 %2747  ;;  %v2832_v16 = vmul.f32 %v2750_v29, %v6028_v61  ;;  %v2776_v38 = vpop.permute.xlu0 %2775 }
 0x2b4   : > { %v2831_v20 = vmul.f32 %v2748_v3, %v6007_v7  ;;  %v2845_v11 = vmul.f32 %v2776_v38, %v5823_v24 }
 0x2b5   : > { %2909 = vrot.lane.b32.xlu1 %v2832_v16, %s3829_s14 }
 0x2b6   : > { %2907 = vrot.lane.b32.xlu0 %v2831_v20, %s3829_s14  ;;  %2935 = vrot.lane.b32.xlu2 %v2845_v11, %s3829_s14 }
 0x2ba   : > { %v6315_v23 = vpop.permute.xlu2 %3041 }
 0x2bb   : > { %v6317_v41 = vpop.permute.xlu1 %3039  ;;  %v2746_v13 = vpop.permute.xlu0 %2745 }
 0x2bc   : > { %v2830_v51 = vmul.f32 %v2746_v13, %v5895_v25 }
 0x2be   : > { %2905 = vrot.lane.b32.xlu2 %v2830_v51, %s3829_s14 }
 0x2c2   : > { %v2786_v61 = vpop.permute.xlu2 %2785 }
 0x2c3   : > { %v2784_v7 = vpop.permute.xlu1 %2783  ;;  %v2850_v24 = vmul.f32 %v2786_v61, %v6072_v26  ;;  %v6322_v19 = vpop.permute.xlu0 %3067 }
 0x2c4   : > { %v2849_v62 = vmul.f32 %v2784_v7, %v6039_v49 }
 0x2c5   : > { %2945 = vrot.lane.b32.xlu1 %v2850_v24, %s3829_s14 }
 0x2c6   : > { %2943 = vrot.lane.b32.xlu0 %v2849_v62, %s3829_s14 }
 0x2ca   : > { %v2918_v25 = vpop.permute.xlu2 %2917 }
 0x2cb   : > { %v2754_v2 = vpop.permute.xlu1 %2753  ;;  %v3124_v26 = vsel %vm1312_vm0, %v2918_v25, %v6172_v8  ;;  %v6335_v18 = vpop.permute.xlu0 %3037 }
 0x2cc   : > { %v2834_v49 = vmul.f32 %v2754_v2, %v6047_v12  ;;  %3157 = vst.msk [vmem:[%s6331_s23 + $0x88] sm:$0xff] %vm3139_vm9, %v3124_v26 }
 0x2cd   : > { %3069 = vrot.lane.b32.xlu1 %v6209_v58, %s3831_s20 }
 0x2ce   : > { %2913 = vrot.lane.b32.xlu0 %v2834_v49, %s3829_s14 }
 0x2d2   : > { %v2888_v60 = vpop.permute.xlu2 %2887 }
 0x2d3   : > { %v2916_v46 = vpop.permute.xlu1 %2915  ;;  %v3109_v21 = vsel %vm1312_vm0, %v2888_v60, %v6185_v47  ;;  %v2782_v5 = vpop.permute.xlu0 %2781 }
 0x2d4   : > { %v3123_v8 = vsel %vm1312_vm0, %v2916_v46, %v6174_v44  ;;  %3142 = vst.msk [vmem:[%s6331_s23 + $0x10] sm:$0xff] %vm3139_vm9, %v3109_v21  ;;  %v2848_v12 = vmul.f32 %v2782_v5, %v5940_v45 }
 0x2d5   : > { %3156 = vst.msk [vmem:[%s6331_s23 + $0x80] sm:$0xff] %vm3139_vm9, %v3123_v8 }
 0x2d6   : > { %3073 = vrot.lane.b32.xlu0 %v6221_v34, %s3831_s20  ;;  %2941 = vrot.lane.b32.xlu2 %v2848_v12, %s3829_s14 }
 0x2da   : > { %v2924_v58 = vpop.permute.xlu2 %2923 }
 0x2db   : > { %v2886_v63 = vpop.permute.xlu1 %2885  ;;  %v3127_v47 = vsel %vm1312_vm0, %v2924_v58, %v6218_v30  ;;  %v2752_v44 = vpop.permute.xlu0 %2751 }
 0x2dc   : > { %v3108_v14 = vsel %vm1312_vm0, %v2886_v63, %v6188_v39  ;;  %3160 = vst.msk [vmem:[%s6331_s23 + $0xa0] sm:$0xff] %vm3139_vm9, %v3127_v47  ;;  %v2833_v45 = vmul.f32 %v2752_v44, %v5985_v22 }
 0x2dd   : > { %3141 = vst.msk [vmem:[%s6331_s23 + $0x8] sm:$0xff] %vm3139_vm9, %v3108_v14 }
 0x2de   : > { %2911 = vrot.lane.b32.xlu2 %v2833_v45, %s3829_s14 }
 0x2e2   : > { %v2894_v34 = vpop.permute.xlu2 %2893 }
 0x2e3   : > { %v2922_v42 = vpop.permute.xlu1 %2921  ;;  %v3112_v17 = vsel %vm1312_vm0, %v2894_v34, %v6231_v48  ;;  %v2884_v30 = vpop.permute.xlu0 %2883 }
 0x2e4   : > { %v3126_v39 = vsel %vm1312_vm0, %v2922_v42, %v6233_v56  ;;  %3145 = vst.msk [vmem:[%s6331_s23 + $0x28] sm:$0xff] %vm3139_vm9, %v3112_v17  ;;  %v3107_v22 = vsel %vm1312_vm0, %v2884_v30, %v6122_v35 }
 0x2e5   : > { %3140 = vst.msk [vmem:[%s6331_s23] sm:$0xff] %vm3139_vm9, %v3107_v22 }
 0x2e6   : > { %3159 = vst.msk [vmem:[%s6331_s23 + $0x98] sm:$0xff] %vm3139_vm9, %v3126_v39  ;;  %3071 = vrot.lane.b32.xlu2 %v6192_v6, %s3831_s20 }
 0x2eb   : > { %v2892_v48 = vpop.permute.xlu1 %2891  ;;  %v2920_v53 = vpop.permute.xlu0 %2919 }
 0x2ec   : > { %v3111_v56 = vsel %vm1312_vm0, %v2892_v48, %v6240_v37  ;;  %v3125_v9 = vsel %vm1312_vm0, %v2920_v53, %v6170_v31 }
 0x2ed   : > { %3144 = vst.msk [vmem:[%s6331_s23 + $0x20] sm:$0xff] %vm3139_vm9, %v3111_v56 }
 0x2ee   : > { %3158 = vst.msk [vmem:[%s6331_s23 + $0x90] sm:$0xff] %vm3139_vm9, %v3125_v9 }
 0x2f0   : > { %v2930_v35 = vpop.permute.xlu2 %2929 }
 0x2f1   : > { %v3130_v40 = vsel %vm1312_vm0, %v2930_v35, %v6257_v10 }
 0x2f2   : > { %3163 = vst.msk [vmem:[%s6331_s23 + $0xb8] sm:$0xff] %vm3139_vm9, %v3130_v40 }
 0x2f3   : > { %v2928_v6 = vpop.permute.xlu1 %2927  ;;  %v2890_v59 = vpop.permute.xlu0 %2889 }
 0x2f4   : > { %v3129_v37 = vsel %vm1312_vm0, %v2928_v6, %v6269_v4  ;;  %v3110_v31 = vsel %vm1312_vm0, %v2890_v59, %v6183_v55 }
 0x2f5   : > { %3162 = vst.msk [vmem:[%s6331_s23 + $0xb0] sm:$0xff] %vm3139_vm9, %v3129_v37 }
 0x2f6   : > { %3143 = vst.msk [vmem:[%s6331_s23 + $0x18] sm:$0xff] %vm3139_vm9, %v3110_v31 }
 0x2f8   : > { %v2900_v1 = vpop.permute.xlu2 %2899 }
 0x2f9   : > { %v3115_v10 = vsel %vm1312_vm0, %v2900_v1, %v6267_v57 }
 0x2fa   : > { %3148 = vst.msk [vmem:[%s6331_s23 + $0x40] sm:$0xff] %vm3139_vm9, %v3115_v10 }
 0x2fb   : > { %v2898_v29 = vpop.permute.xlu1 %2897  ;;  %v2926_v3 = vpop.permute.xlu0 %2925 }
 0x2fc   : > { %v3114_v4 = vsel %vm1312_vm0, %v2898_v29, %v6277_v50  ;;  %v3128_v55 = vsel %vm1312_vm0, %v2926_v3, %v6216_v0 }
 0x2fd   : > { %3147 = vst.msk [vmem:[%s6331_s23 + $0x38] sm:$0xff] %vm3139_vm9, %v3114_v4 }
 0x2fe   : > { %3161 = vst.msk [vmem:[%s6331_s23 + $0xa8] sm:$0xff] %vm3139_vm9, %v3128_v55 }
 0x303   : > { %v2934_v16 = vpop.permute.xlu1 %2933  ;;  %v2896_v38 = vpop.permute.xlu0 %2895 }
 0x304   : > { %v3132_v57 = vsel %vm1312_vm0, %v2934_v16, %v6301_v33  ;;  %v3113_v20 = vsel %vm1312_vm0, %v2896_v38, %v6229_v28 }
 0x305   : > { %3165 = vst.msk [vmem:[%s6331_s23 + $0xc8] sm:$0xff] %vm3139_vm9, %v3132_v57 }
 0x306   : > { %3146 = vst.msk [vmem:[%s6331_s23 + $0x30] sm:$0xff] %vm3139_vm9, %v3113_v20 }
 0x30b   : > { %v2904_v0 = vpop.permute.xlu1 %2903  ;;  %v2932_v50 = vpop.permute.xlu0 %2931 }
 0x30c   : > { %v3117_v11 = vsel %vm1312_vm0, %v2904_v0, %v6304_v32  ;;  %v3131_v13 = vsel %vm1312_vm0, %v2932_v50, %v6255_v54 }
 0x30d   : > { %3150 = vst.msk [vmem:[%s6331_s23 + $0x50] sm:$0xff] %vm3139_vm9, %v3117_v11 }
 0x30e   : > { %3164 = vst.msk [vmem:[%s6331_s23 + $0xc0] sm:$0xff] %vm3139_vm9, %v3131_v13 }
 0x310   : > { %v2936_v28 = vpop.permute.xlu2 %2935 }
 0x311   : > { %v3133_v33 = vsel %vm1312_vm0, %v2936_v28, %v6291_v15 }
 0x312   : > { %3166 = vst.msk [vmem:[%s6331_s23 + $0xd0] sm:$0xff] %vm3139_vm9, %v3133_v33 }
 0x313   : > { %v2902_v51 = vpop.permute.xlu0 %2901 }
 0x314   : > { %v3116_v32 = vsel %vm1312_vm0, %v2902_v51, %v6265_v52 }
 0x315   : > { %3149 = vst.msk [vmem:[%s6331_s23 + $0x48] sm:$0xff] %vm3139_vm9, %v3116_v32 }
 0x318   : > { %v2906_v54 = vpop.permute.xlu2 %2905 }
 0x319   : > { %v3118_v61 = vsel %vm1312_vm0, %v2906_v54, %v6299_v36 }
 0x31a   : > { %3151 = vst.msk [vmem:[%s6331_s23 + $0x58] sm:$0xff] %vm3139_vm9, %v3118_v61 }
 0x31f   : > { %v2940_v7 = vpop.permute.xlu1 %2939 }
 0x320   : > { %v2938_v24 = vpop.permute.xlu0 %2937  ;;  %v3135_v15 = vsel %vm1312_vm0, %v2940_v7, %v6322_v19 }
 0x321   : > { %v3134_v62 = vsel %vm1312_vm0, %v2938_v24, %v6289_v43  ;;  %3168 = vst.msk [vmem:[%s6331_s23 + $0xe0] sm:$0xff] %vm3139_vm9, %v3135_v15 }
 0x322   : > { %3167 = vst.msk [vmem:[%s6331_s23 + $0xd8] sm:$0xff] %vm3139_vm9, %v3134_v62 }
 0x327   : > { %v2910_v52 = vpop.permute.xlu1 %2909 }
 0x328   : > { %v2908_v25 = vpop.permute.xlu0 %2907  ;;  %v3120_v36 = vsel %vm1312_vm0, %v2910_v52, %v6335_v18 }
 0x329   : > { %v3119_v2 = vsel %vm1312_vm0, %v2908_v25, %v6297_v27  ;;  %3153 = vst.msk [vmem:[%s6331_s23 + $0x68] sm:$0xff] %vm3139_vm9, %v3120_v36 }
 0x32a   : > { %3152 = vst.msk [vmem:[%s6331_s23 + $0x60] sm:$0xff] %vm3139_vm9, %v3119_v2 }
 0x330   : > { %v2942_v43 = vpop.permute.xlu2 %2941 }
 0x337   : > { %v2946_v19 = vpop.permute.xlu1 %2945 }
 0x338   : > { %v2944_v26 = vpop.permute.xlu0 %2943  ;;  %v2912_v49 = vpop.permute.xlu2 %2911 }
 0x339   : > { %v3121_v60 = vsel %vm1312_vm0, %v2912_v49, %v6317_v41 }
 0x33a   : > { %3154 = vst.msk [vmem:[%s6331_s23 + $0x70] sm:$0xff] %vm3139_vm9, %v3121_v60 }
 0x33f   : > { %v3070_v18 = vpop.permute.xlu1 %3069 }
 0x340   : > { %v2914_v46 = vpop.permute.xlu0 %2913  ;;  %v3136_v27 = vsel %vm1312_vm0, %v2942_v43, %v3070_v18  ;;  %v3072_v21 = vpop.permute.xlu2 %3071 }
 0x341   : > { %v3122_v5 = vsel %vm1312_vm0, %v2914_v46, %v6315_v23  ;;  %3169 = vst.msk [vmem:[%s6331_s23 + $0xe8] sm:$0xff] %vm3139_vm9, %v3136_v27  ;;  %v3137_v8 = vsel %vm1312_vm0, %v2944_v26, %v3072_v21 }
 0x342   : > { %3170 = vst.msk [vmem:[%s6331_s23 + $0xf0] sm:$0xff] %vm3139_vm9, %v3137_v8 }
 0x343   : > { %3155 = vst.msk [vmem:[%s6331_s23 + $0x78] sm:$0xff] %vm3139_vm9, %v3122_v5 }
 0x348   : > { %v3074_v12 = vpop.permute.xlu0 %3073 }
 0x349   : > { %v3138_v41 = vsel %vm1312_vm0, %v2946_v19, %v3074_v12 }
 0x34a   : > { %3171 = vst.msk [vmem:[%s6331_s23 + $0xf8] sm:$0xff] %vm3139_vm9, %v3138_v41 }
 0x34b PF: > { %s18_s27 = sadd.s32 1, %s3827_s27  }
 0x34c   : > { %p15_p4 = scmp.ge.s32.totalorder %s18_s27, 4  }
 0x34e   :  { %17 = sbr.rel (!%p15_p4) target bundleno = 1 (0x1), region = 90 }

</bundles_post_ra>
